<compile_context>
chip_gen: v7x
topology: tpu7x:2x2x1
jax: 0.10.0
libtpu: 0.0.40
codegen_flags: <defaults>
</compile_context>

<pallas_src>
import functools
import math

import jax
import jax.numpy as jnp
from jax import lax
from jax.experimental import pallas as pl
from jax.experimental.pallas import tpu as pltpu


_CIN1_PAD = 8  # conv1 input channels zero-padded 3 -> 8 so K = 4*4*8 = 128


# ----------------------------- Pallas kernels ------------------------------

def _matmul_kernel(a_ref, b_ref, o_ref, *, activation):
    """(tm, K) @ (K, Np), f32 accumulate, optional fused LeakyReLU(0.2)."""
    acc = jnp.dot(a_ref[...], b_ref[...], preferred_element_type=jnp.float32)
    if activation == "lrelu":
        acc = jnp.where(acc >= 0.0, acc, 0.2 * acc)
    o_ref[...] = acc.astype(o_ref.dtype)


def _conv_sa_kernel(p_ref, w_ref, wq_ref, bq_ref, wk_ref, bk_ref,
                    wv_ref, bv_ref, g_ref, o_ref):
    """Per-batch fused conv (im2col GEMM) + LeakyReLU + SAGAN self-attention.

    p_ref : (HW, K)  bf16 im2col patches of one batch element
    w_ref : (K, C)   bf16 conv weight (im2col layout, no bias)
    wq/wk : (C, Cq)  bf16 1x1-conv weights;  bq/bk: (1, Cq) f32
    wv    : (C, C)   bf16;                    bv  : (1, C)  f32
    g_ref : (1, 1)   f32 gamma
    o_ref : (HW, C)  bf16 output  (= gamma*attn_out + lrelu(conv))
    """
    x = jnp.dot(p_ref[...], w_ref[...], preferred_element_type=jnp.float32)
    x = jnp.where(x >= 0.0, x, 0.2 * x)                       # LeakyReLU(0.2)
    xb = x.astype(jnp.bfloat16)
    q = jnp.dot(xb, wq_ref[...], preferred_element_type=jnp.float32) + bq_ref[...]
    k = jnp.dot(xb, wk_ref[...], preferred_element_type=jnp.float32) + bk_ref[...]
    v = jnp.dot(xb, wv_ref[...], preferred_element_type=jnp.float32) + bv_ref[...]
    # s[i, j] = <q_i, k_j>: trans-B matmul, no materialized transpose.
    s = lax.dot_general(q.astype(jnp.bfloat16), k.astype(jnp.bfloat16),
                        (((1,), (1,)), ((), ())),
                        preferred_element_type=jnp.float32)   # (HW, HW) f32
    s = s - jnp.max(s, axis=-1, keepdims=True)
    e = jnp.exp(s)
    inv = pl.reciprocal(jnp.sum(e, axis=-1, keepdims=True), approx=True)
    attn = (e * inv).astype(jnp.bfloat16)                     # softmax over keys
    out = jnp.dot(attn, v.astype(jnp.bfloat16),
                  preferred_element_type=jnp.float32)         # (HW, C) f32
    o_ref[...] = (g_ref[0, 0] * out + x).astype(o_ref.dtype)


def _conv_head_kernel(p_ref, emb_ref, w5_ref, wfc_ref, bfc_ref, o_ref):
    """Per-batch fused conv5 + LeakyReLU + flatten + (fc + x . embed(labels)).

    p_ref  : (HW, K5) bf16 conv5 im2col patches of one batch element
    emb_ref: (HW, C)  f32 label embedding in (hw, c) layout
    w5_ref : (K5, C)  bf16;  wfc_ref: (HW, C) f32;  bfc_ref: (1,1) f32
    o_ref  : (1, 1)   f32
    """
    x = jnp.dot(p_ref[...], w5_ref[...], preferred_element_type=jnp.float32)
    x = jnp.where(x >= 0.0, x, 0.2 * x)                       # LeakyReLU(0.2)
    t = x * (wfc_ref[...] + emb_ref[...])
    r = jnp.sum(t, axis=1, keepdims=True)                     # (HW, 1)
    o_ref[...] = jnp.sum(r, axis=0, keepdims=True) + bfc_ref[...]


# --------------------------- Pallas call wrappers ---------------------------

def _pick_tm(M):
    # >=2 "parallel" grid blocks for larger GEMMs so v7x's 2 TensorCores both
    # get work; one block for small M (per-step overhead dominates; the extra
    # step on single-TC v5e/v6e is ~0.35us, negligible).
    if M >= 512 and (M // 2) % 8 == 0:
        return M // 2
    return M


def pallas_matmul(a, b, activation=None, out_dtype=jnp.bfloat16):
    """GEMM (M, K) @ (K, N): bf16 operands, f32 accumulate, bf16 output.

    N is padded to a multiple of 128 so output stores are lane-dense
    (unmasked vst); the padding is sliced off after the call."""
    M, K = a.shape
    K2, N = b.shape
    assert K == K2
    Np = ((N + 127) // 128) * 128
    if Np != N:
        b = jnp.pad(b, ((0, 0), (0, Np - N)))
    tm = _pick_tm(M)
    assert M % tm == 0, (M, tm)
    grid = (M // tm,)
    out = pl.pallas_call(
        functools.partial(_matmul_kernel, activation=activation),
        out_shape=jax.ShapeDtypeStruct((M, Np), out_dtype),
        grid=grid,
        in_specs=[
            pl.BlockSpec((tm, K), lambda i: (i, 0)),
            pl.BlockSpec((K, Np), lambda i: (0, 0)),
        ],
        out_specs=pl.BlockSpec((tm, Np), lambda i: (i, 0)),
        compiler_params=pltpu.CompilerParams(
            dimension_semantics=("parallel",)),
    )(a, b)
    return out if Np == N else out[:, :N]


# ------------------------------ JAX glue ops --------------------------------

def im2col(x, kh, kw, stride, pad):
    """x: (B, H, W, Cin) bf16 -> patches (B, Ho, Wo, kh*kw*Cin), bf16.

    TODO(synk): an in-kernel gather via index_map/manual DMA would avoid
    materializing the patches matrix in HBM entirely."""
    B, H, W, Cin = x.shape
    Ho = (H + 2 * pad - kh) // stride + 1
    Wo = (W + 2 * pad - kw) // stride + 1
    xp = jnp.pad(x, ((0, 0), (pad, pad), (pad, pad), (0, 0)))
    cols = []
    for a in range(kh):
        for c in range(kw):
            cols.append(xp[:, a:a + (Ho - 1) * stride + 1:stride,
                           c:c + (Wo - 1) * stride + 1:stride, :])
    patches = jnp.concatenate(cols, axis=-1)       # (B, Ho, Wo, kh*kw*Cin)
    return patches, Ho, Wo


def conv2d_nhwc(x, w_col, ksz, stride, pad, activation=None):
    """Conv2d (no bias), NHWC, via im2col GEMM. w_col: (kh*kw*Cin, Cout) bf16."""
    B = x.shape[0]
    patches, Ho, Wo = im2col(x, ksz, ksz, stride, pad)
    K, Cout = w_col.shape
    A = patches.reshape(B * Ho * Wo, K)
    out = pallas_matmul(A, w_col, activation=activation)
    return out.reshape(B, Ho, Wo, Cout)


def conv_sa_fused(x, w_col, sa, ksz, stride, pad):
    """Fused conv + LeakyReLU + self-attention, one pallas_call, grid=(B,)."""
    B = x.shape[0]
    patches, Ho, Wo = im2col(x, ksz, ksz, stride, pad)
    HW = Ho * Wo
    K, C = w_col.shape
    Cq = sa["wq"].shape[1]
    p = patches.reshape(B, HW, K)
    out = pl.pallas_call(
        _conv_sa_kernel,
        out_shape=jax.ShapeDtypeStruct((B, HW, C), jnp.bfloat16),
        grid=(B,),
        in_specs=[
            pl.BlockSpec((None, HW, K), lambda b: (b, 0, 0)),
            pl.BlockSpec((K, C), lambda b: (0, 0)),
            pl.BlockSpec((C, Cq), lambda b: (0, 0)),
            pl.BlockSpec((1, Cq), lambda b: (0, 0)),
            pl.BlockSpec((C, Cq), lambda b: (0, 0)),
            pl.BlockSpec((1, Cq), lambda b: (0, 0)),
            pl.BlockSpec((C, C), lambda b: (0, 0)),
            pl.BlockSpec((1, C), lambda b: (0, 0)),
            pl.BlockSpec((1, 1), lambda b: (0, 0)),
        ],
        out_specs=pl.BlockSpec((None, HW, C), lambda b: (b, 0, 0)),
        compiler_params=pltpu.CompilerParams(
            dimension_semantics=("parallel",)),   # B=2 splits over v7x's 2 TCs
    )(p, w_col, sa["wq"], sa["bq"], sa["wk"], sa["bk"],
      sa["wv"], sa["bv"], sa["gamma2d"])
    return out.reshape(B, Ho, Wo, C)


def conv_head_fused(x, w5_col, labels, params):
    """Fused conv5 + LeakyReLU + flatten + fc/embedding head, grid=(B,)."""
    B = x.shape[0]
    patches, Ho, Wo = im2col(x, 3, 3, 1, 1)
    HW = Ho * Wo
    K, C = w5_col.shape
    p = patches.reshape(B, HW, K)
    # Label embedding: tiny (B, ncls) @ (ncls, D) matvec in XLA. we_t_hwc is
    # stored pre-permuted to the NHWC (hw, c) flatten order so no transpose
    # of the conv5 output is ever needed.
    emb = labels.astype(jnp.float32) @ params["we_t_hwc"] + params["be"]
    emb = emb.reshape(B, HW, C)
    out = pl.pallas_call(
        _conv_head_kernel,
        out_shape=jax.ShapeDtypeStruct((B, 1, 1), jnp.float32),
        grid=(B,),
        in_specs=[
            pl.BlockSpec((None, HW, K), lambda b: (b, 0, 0)),
            pl.BlockSpec((None, HW, C), lambda b: (b, 0, 0)),
            pl.BlockSpec((K, C), lambda b: (0, 0)),
            pl.BlockSpec((HW, C), lambda b: (0, 0)),
            pl.BlockSpec((1, 1), lambda b: (0, 0)),
        ],
        out_specs=pl.BlockSpec((None, 1, 1), lambda b: (b, 0, 0)),
        compiler_params=pltpu.CompilerParams(
            dimension_semantics=("parallel",)),
    )(p, emb, w5_col, params["wfc2d"], params["bfc"])
    return out.reshape(B)


# ----------------------------- parameter setup ------------------------------

def _kaiming_uniform(key, shape, fan_in, a):
    gain = math.sqrt(2.0 / (1.0 + a * a))
    bound = math.sqrt(3.0) * gain / math.sqrt(float(fan_in))
    return jax.random.uniform(key, shape, jnp.float32, -bound, bound)


def _spectral_normalize(w):
    """Divide weight by its largest singular value (dim-0 reshape, as PyTorch).

    TODO(synk): PyTorch spectral_norm does one power-iteration step per forward
    from a persistent random u; here a converged power iteration runs once at
    parameter-setup time (deterministic, same normalization target).
    """
    wm = w.reshape(w.shape[0], -1)
    u0 = jnp.ones((wm.shape[0],), jnp.float32) / jnp.sqrt(float(wm.shape[0]))

    def body(_, u):
        v = wm.T @ u
        v = v / (jnp.linalg.norm(v) + 1e-12)
        u = wm @ v
        return u / (jnp.linalg.norm(u) + 1e-12)

    u = lax.fori_loop(0, 50, body, u0)
    v = wm.T @ u
    v = v / (jnp.linalg.norm(v) + 1e-12)
    sigma = u @ (wm @ v)
    return w / sigma


def _conv1x1_params(key, cin, cout):
    kw_, kb_ = jax.random.split(key)
    # PyTorch Conv2d default init: kaiming_uniform_(a=sqrt(5)), bias uniform.
    w = _kaiming_uniform(kw_, (cout, cin), cin, a=math.sqrt(5.0))
    bound = 1.0 / math.sqrt(float(cin))
    b = jax.random.uniform(kb_, (cout,), jnp.float32, -bound, bound)
    return w, b


def _sa_params(key, c):
    k1, k2, k3 = jax.random.split(key, 3)
    cq = max(c // 8, 1)
    wq, bq = _conv1x1_params(k1, c, cq)
    wk, bk = _conv1x1_params(k2, c, cq)
    wv, bv = _conv1x1_params(k3, c, c)
    return {
        "wq": wq.T.astype(jnp.bfloat16), "bq": bq.reshape(1, cq),
        "wk": wk.T.astype(jnp.bfloat16), "bk": bk.reshape(1, cq),
        "wv": wv.T.astype(jnp.bfloat16), "bv": bv.reshape(1, c),
        "gamma2d": jnp.zeros((1, 1), jnp.float32),
    }


def init_params(key, nc, ndf, num_classes):
    keys = jax.random.split(key, 9)

    def sn_conv(k, cout, cin, ksz):
        w = _kaiming_uniform(k, (cout, cin, ksz, ksz), cin * ksz * ksz, a=1.0)
        return _spectral_normalize(w)

    def to_col(w):
        # PyTorch (Cout, Cin, kh, kw) -> im2col (kh*kw*Cin, Cout), matching the
        # (a, c, ci) patch-feature ordering of im2col(); stored bf16 for MXU.
        cout = w.shape[0]
        return jnp.transpose(w, (2, 3, 1, 0)).reshape(-1, cout).astype(jnp.bfloat16)

    p = {}
    w1 = sn_conv(keys[0], ndf, nc, 4)
    # Zero-pad Cin 3 -> 8 so conv1's K = 4*4*8 = 128 (numerically identical).
    w1 = jnp.pad(w1, ((0, 0), (0, _CIN1_PAD - nc), (0, 0), (0, 0)))
    p["w1_col"] = to_col(w1)
    p["w2_col"] = to_col(sn_conv(keys[1], ndf * 2, ndf, 4))
    p["w3_col"] = to_col(sn_conv(keys[2], ndf * 4, ndf * 2, 4))
    p["w4_col"] = to_col(sn_conv(keys[3], ndf * 8, ndf * 4, 4))
    p["w5_col"] = to_col(sn_conv(keys[4], ndf * 8, ndf * 8, 3))
    p["sa3"] = _sa_params(keys[5], ndf * 4)
    p["sa4"] = _sa_params(keys[6], ndf * 8)
    # NOTE: bn2..bn5 are constructed in the PyTorch module but never used in
    # its forward(), so no BN parameters are needed here.

    # Head. PyTorch flattens the (B, C, 4, 4) map in NCHW order (d = c*16+hw);
    # store fc / embed weights re-indexed into the NHWC (hw, c) order so the
    # conv5 output needs no transpose before the head.
    C, HW = ndf * 8, 16
    D = C * HW                                   # == ndf * 128
    wfc = _spectral_normalize(_kaiming_uniform(keys[7], (1, D), D, a=1.0))
    p["wfc2d"] = wfc.reshape(C, HW).T            # (HW, C)
    p["bfc"] = jnp.zeros((1, 1), jnp.float32)    # module's spectral_norm() zeroes biases
    we = _spectral_normalize(
        _kaiming_uniform(keys[8], (D, num_classes), num_classes, a=1.0))
    p["we_t_hwc"] = (we.reshape(C, HW, num_classes)
                       .transpose(1, 0, 2)
                       .reshape(HW * C, num_classes).T)        # (ncls, D), (hw,c) order
    p["be"] = jnp.zeros((1, D), jnp.float32)     # embed bias also zeroed
    return p


# ------------------------------ forward pass --------------------------------

def discriminator_forward(params, x_nchw, labels):
    # Single NCHW->NHWC transpose + bf16 cast at the boundary; everything else
    # stays NHWC / bf16.
    x = jnp.transpose(x_nchw, (0, 2, 3, 1)).astype(jnp.bfloat16)
    # conv1: pad Cin 3 -> 8 (zeros) so K = 128 (lane-dense A, full MXU pass).
    x = jnp.pad(x, ((0, 0), (0, 0), (0, 0), (0, _CIN1_PAD - x.shape[-1])))
    x = conv2d_nhwc(x, params["w1_col"], 4, 2, 1, activation="lrelu")  # (B,32,32, ndf)
    x = conv2d_nhwc(x, params["w2_col"], 4, 2, 1, activation="lrelu")  # (B,16,16,2ndf)
    x = conv_sa_fused(x, params["w3_col"], params["sa3"], 4, 2, 1)     # (B, 8, 8,4ndf)
    x = conv_sa_fused(x, params["w4_col"], params["sa4"], 4, 2, 1)     # (B, 4, 4,8ndf)
    # conv5 + lrelu + flatten + (fc + x . embed(labels)) in one fused kernel.
    return conv_head_fused(x, params["w5_col"], labels, params)        # (B,)


if __name__ == "__main__":
    B, nc, ndf, num_classes = 2, 3, 8, 10   # 64x64 input is implied by the
                                            # x.view(-1, ndf*128) flatten

    key = jax.random.PRNGKey(0)
    k_param, k_x, k_lbl = jax.random.split(key, 3)

    params = init_params(k_param, nc, ndf, num_classes)

    x = jax.random.normal(k_x, (B, nc, 64, 64), jnp.float32)
    label_idx = jax.random.randint(k_lbl, (B,), 0, num_classes)
    labels = jax.nn.one_hot(label_idx, num_classes, dtype=jnp.float32)  # (B,ncls)

    fwd = jax.jit(discriminator_forward)
    out = fwd(params, x, labels)
    out = jax.block_until_ready(out)

    assert out.shape == (B,), out.shape
    assert bool(jnp.all(jnp.isfinite(out)))
    print("KERNEL_OK")
</pallas_src>

<mosaic_0001>
module attributes {stable_mosaic.version = 11 : i64} {
  func.func @_matmul_kernel(%arg0: i32, %arg1: memref<1024x128xbf16, #tpu.memory_space<vmem>>, %arg2: memref<128x128xbf16, #tpu.memory_space<vmem>>, %arg3: memref<1024x128xbf16, #tpu.memory_space<vmem>>) attributes {dimension_semantics = [#tpu.dimension_semantics<parallel>], iteration_bounds = array<i64: 2>, scalar_prefetch = 0 : i64, scratch_operands = 0 : i64, tpu.core_type = #tpu.core_type<tc>, window_params = [{transform_indices = @transform_0, window_bounds = array<i64: 1024, 128>}, {pipeline_mode = #tpu.pipeline_mode<synchronous>, transform_indices = @transform_1, window_bounds = array<i64: 128, 128>}, {transform_indices = @transform_2, window_bounds = array<i64: 1024, 128>}]} {
    %c0 = arith.constant 0 : index
    %c0_0 = arith.constant 0 : index
    %0 = vector.load %arg1[%c0, %c0_0] : memref<1024x128xbf16, #tpu.memory_space<vmem>>, vector<1024x128xbf16>
    %c0_1 = arith.constant 0 : index
    %c0_2 = arith.constant 0 : index
    %1 = vector.load %arg2[%c0_1, %c0_2] : memref<128x128xbf16, #tpu.memory_space<vmem>>, vector<128x128xbf16>
    %cst = arith.constant dense<0.000000e+00> : vector<1024x128xf32>
    %2 = tpu.matmul %0, %1, %cst {dimension_numbers = #tpu.dot_dimension_numbers<[1], [0], [0], [1], [0, 0, 1, 1], [], []>} : vector<1024x128xbf16>, vector<128x128xbf16>, vector<1024x128xf32> -> vector<1024x128xf32>
    %cst_3 = arith.constant 0.000000e+00 : f32
    %3 = vector.broadcast %cst_3 : f32 to vector<1024x128xf32>
    %4 = arith.cmpf oge, %2, %3 : vector<1024x128xf32>
    %cst_4 = arith.constant 2.000000e-01 : f32
    %5 = vector.broadcast %cst_4 : f32 to vector<1024x128xf32>
    %6 = arith.mulf %5, %2 : vector<1024x128xf32>
    %7 = arith.select %4, %2, %6 : vector<1024x128xi1>, vector<1024x128xf32>
    %8 = arith.truncf %7 : vector<1024x128xf32> to vector<1024x128xbf16>
    %c0_5 = arith.constant 0 : index
    %c0_6 = arith.constant 0 : index
    %9 = vector.load %arg3[%c0_5, %c0_6] : memref<1024x128xbf16, #tpu.memory_space<vmem>>, vector<1024x128xbf16>
    tpu.vector_store %arg3[%c0_5, %c0_6], %8 {strides = array<i32>} : memref<1024x128xbf16, #tpu.memory_space<vmem>>, vector<1024x128xbf16>,
    return
  }
  func.func @transform_0(%arg0: i32) -> (i32, i32) {
    %c0_i32 = arith.constant 0 : i32
    %c0_i32_0 = arith.constant 0 : i32
    return %arg0, %c0_i32 : i32, i32
  }
  func.func @transform_1(%arg0: i32) -> (i32, i32) {
    %c0_i32 = arith.constant 0 : i32
    %c0_i32_0 = arith.constant 0 : i32
    %c0_i32_1 = arith.constant 0 : i32
    return %c0_i32, %c0_i32_0 : i32, i32
  }
  func.func @transform_2(%arg0: i32) -> (i32, i32) {
    %c0_i32 = arith.constant 0 : i32
    %c0_i32_0 = arith.constant 0 : i32
    return %arg0, %c0_i32 : i32, i32
  }
}

module attributes {stable_mosaic.version = 11 : i64} {
  func.func @_matmul_kernel(%arg0: i32, %arg1: memref<256x128xbf16, #tpu.memory_space<vmem>>, %arg2: memref<128x128xbf16, #tpu.memory_space<vmem>>, %arg3: memref<256x128xbf16, #tpu.memory_space<vmem>>) attributes {dimension_semantics = [#tpu.dimension_semantics<parallel>], iteration_bounds = array<i64: 2>, scalar_prefetch = 0 : i64, scratch_operands = 0 : i64, tpu.core_type = #tpu.core_type<tc>, window_params = [{transform_indices = @transform_0, window_bounds = array<i64: 256, 128>}, {pipeline_mode = #tpu.pipeline_mode<synchronous>, transform_indices = @transform_1, window_bounds = array<i64: 128, 128>}, {transform_indices = @transform_2, window_bounds = array<i64: 256, 128>}]} {
    %c0 = arith.constant 0 : index
    %c0_0 = arith.constant 0 : index
    %0 = vector.load %arg1[%c0, %c0_0] : memref<256x128xbf16, #tpu.memory_space<vmem>>, vector<256x128xbf16>
    %c0_1 = arith.constant 0 : index
    %c0_2 = arith.constant 0 : index
    %1 = vector.load %arg2[%c0_1, %c0_2] : memref<128x128xbf16, #tpu.memory_space<vmem>>, vector<128x128xbf16>
    %cst = arith.constant dense<0.000000e+00> : vector<256x128xf32>
    %2 = tpu.matmul %0, %1, %cst {dimension_numbers = #tpu.dot_dimension_numbers<[1], [0], [0], [1], [0, 0, 1, 1], [], []>} : vector<256x128xbf16>, vector<128x128xbf16>, vector<256x128xf32> -> vector<256x128xf32>
    %cst_3 = arith.constant 0.000000e+00 : f32
    %3 = vector.broadcast %cst_3 : f32 to vector<256x128xf32>
    %4 = arith.cmpf oge, %2, %3 : vector<256x128xf32>
    %cst_4 = arith.constant 2.000000e-01 : f32
    %5 = vector.broadcast %cst_4 : f32 to vector<256x128xf32>
    %6 = arith.mulf %5, %2 : vector<256x128xf32>
    %7 = arith.select %4, %2, %6 : vector<256x128xi1>, vector<256x128xf32>
    %8 = arith.truncf %7 : vector<256x128xf32> to vector<256x128xbf16>
    %c0_5 = arith.constant 0 : index
    %c0_6 = arith.constant 0 : index
    %9 = vector.load %arg3[%c0_5, %c0_6] : memref<256x128xbf16, #tpu.memory_space<vmem>>, vector<256x128xbf16>
    tpu.vector_store %arg3[%c0_5, %c0_6], %8 {strides = array<i32>} : memref<256x128xbf16, #tpu.memory_space<vmem>>, vector<256x128xbf16>,
    return
  }
  func.func @transform_0(%arg0: i32) -> (i32, i32) {
    %c0_i32 = arith.constant 0 : i32
    %c0_i32_0 = arith.constant 0 : i32
    return %arg0, %c0_i32 : i32, i32
  }
  func.func @transform_1(%arg0: i32) -> (i32, i32) {
    %c0_i32 = arith.constant 0 : i32
    %c0_i32_0 = arith.constant 0 : i32
    %c0_i32_1 = arith.constant 0 : i32
    return %c0_i32, %c0_i32_0 : i32, i32
  }
  func.func @transform_2(%arg0: i32) -> (i32, i32) {
    %c0_i32 = arith.constant 0 : i32
    %c0_i32_0 = arith.constant 0 : i32
    return %arg0, %c0_i32 : i32, i32
  }
}

module attributes {stable_mosaic.version = 11 : i64} {
  func.func @_conv_sa_kernel(%arg0: i32, %arg1: memref<1x64x256xbf16, #tpu.memory_space<vmem>>, %arg2: memref<256x32xbf16, #tpu.memory_space<vmem>>, %arg3: memref<32x4xbf16, #tpu.memory_space<vmem>>, %arg4: memref<1x4xf32, #tpu.memory_space<vmem>>, %arg5: memref<32x4xbf16, #tpu.memory_space<vmem>>, %arg6: memref<1x4xf32, #tpu.memory_space<vmem>>, %arg7: memref<32x32xbf16, #tpu.memory_space<vmem>>, %arg8: memref<1x32xf32, #tpu.memory_space<vmem>>, %arg9: memref<1x1xf32, #tpu.memory_space<vmem>>, %arg10: memref<1x64x32xbf16, #tpu.memory_space<vmem>>) attributes {dimension_semantics = [#tpu.dimension_semantics<parallel>], iteration_bounds = array<i64: 2>, scalar_prefetch = 0 : i64, scratch_operands = 0 : i64, tpu.core_type = #tpu.core_type<tc>, window_params = [{transform_indices = @transform_0, window_bounds = array<i64: 1, 64, 256>}, {pipeline_mode = #tpu.pipeline_mode<synchronous>, transform_indices = @transform_1, window_bounds = array<i64: 256, 32>}, {pipeline_mode = #tpu.pipeline_mode<synchronous>, transform_indices = @transform_2, window_bounds = array<i64: 32, 4>}, {pipeline_mode = #tpu.pipeline_mode<synchronous>, transform_indices = @transform_3, window_bounds = array<i64: 1, 4>}, {pipeline_mode = #tpu.pipeline_mode<synchronous>, transform_indices = @transform_4, window_bounds = array<i64: 32, 4>}, {pipeline_mode = #tpu.pipeline_mode<synchronous>, transform_indices = @transform_5, window_bounds = array<i64: 1, 4>}, {pipeline_mode = #tpu.pipeline_mode<synchronous>, transform_indices = @transform_6, window_bounds = array<i64: 32, 32>}, {pipeline_mode = #tpu.pipeline_mode<synchronous>, transform_indices = @transform_7, window_bounds = array<i64: 1, 32>}, {pipeline_mode = #tpu.pipeline_mode<synchronous>, transform_indices = @transform_8, window_bounds = array<i64: 1, 1>}, {transform_indices = @transform_9, window_bounds = array<i64: 1, 64, 32>}]} {
    %c0 = arith.constant 0 : index
    %c0_0 = arith.constant 0 : index
    %c0_1 = arith.constant 0 : index
    %0 = vector.load %arg1[%c0, %c0_0, %c0_1] : memref<1x64x256xbf16, #tpu.memory_space<vmem>>, vector<1x64x256xbf16>
    %1 = vector.shape_cast %0 : vector<1x64x256xbf16> to vector<64x256xbf16>
    %c0_2 = arith.constant 0 : index
    %c0_3 = arith.constant 0 : index
    %2 = vector.load %arg2[%c0_2, %c0_3] : memref<256x32xbf16, #tpu.memory_space<vmem>>, vector<256x32xbf16>
    %cst = arith.constant dense<0.000000e+00> : vector<64x32xf32>
    %3 = tpu.matmul %1, %2, %cst {dimension_numbers = #tpu.dot_dimension_numbers<[1], [0], [0], [1], [0, 0, 1, 1], [], []>} : vector<64x256xbf16>, vector<256x32xbf16>, vector<64x32xf32> -> vector<64x32xf32>
    %cst_4 = arith.constant 0.000000e+00 : f32
    %4 = vector.broadcast %cst_4 : f32 to vector<64x32xf32>
    %5 = arith.cmpf oge, %3, %4 : vector<64x32xf32>
    %cst_5 = arith.constant 2.000000e-01 : f32
    %6 = vector.broadcast %cst_5 : f32 to vector<64x32xf32>
    %7 = arith.mulf %6, %3 : vector<64x32xf32>
    %8 = arith.select %5, %3, %7 : vector<64x32xi1>, vector<64x32xf32>
    %9 = arith.truncf %8 : vector<64x32xf32> to vector<64x32xbf16>
    %c0_6 = arith.constant 0 : index
    %c0_7 = arith.constant 0 : index
    %10 = vector.load %arg3[%c0_6, %c0_7] : memref<32x4xbf16, #tpu.memory_space<vmem>>, vector<32x4xbf16>
    %cst_8 = arith.constant dense<0.000000e+00> : vector<64x4xf32>
    %11 = tpu.matmul %9, %10, %cst_8 {dimension_numbers = #tpu.dot_dimension_numbers<[1], [0], [0], [1], [0, 0, 1, 1], [], []>} : vector<64x32xbf16>, vector<32x4xbf16>, vector<64x4xf32> -> vector<64x4xf32>
    %c0_9 = arith.constant 0 : index
    %c0_10 = arith.constant 0 : index
    %12 = vector.load %arg4[%c0_9, %c0_10] : memref<1x4xf32, #tpu.memory_space<vmem>>, vector<1x4xf32>
    %13 = vector.broadcast %12 : vector<1x4xf32> to vector<64x4xf32>
    %14 = arith.addf %11, %13 : vector<64x4xf32>
    %c0_11 = arith.constant 0 : index
    %c0_12 = arith.constant 0 : index
    %15 = vector.load %arg5[%c0_11, %c0_12] : memref<32x4xbf16, #tpu.memory_space<vmem>>, vector<32x4xbf16>
    %cst_13 = arith.constant dense<0.000000e+00> : vector<64x4xf32>
    %16 = tpu.matmul %9, %15, %cst_13 {dimension_numbers = #tpu.dot_dimension_numbers<[1], [0], [0], [1], [0, 0, 1, 1], [], []>} : vector<64x32xbf16>, vector<32x4xbf16>, vector<64x4xf32> -> vector<64x4xf32>
    %c0_14 = arith.constant 0 : index
    %c0_15 = arith.constant 0 : index
    %17 = vector.load %arg6[%c0_14, %c0_15] : memref<1x4xf32, #tpu.memory_space<vmem>>, vector<1x4xf32>
    %18 = vector.broadcast %17 : vector<1x4xf32> to vector<64x4xf32>
    %19 = arith.addf %16, %18 : vector<64x4xf32>
    %c0_16 = arith.constant 0 : index
    %c0_17 = arith.constant 0 : index
    %20 = vector.load %arg7[%c0_16, %c0_17] : memref<32x32xbf16, #tpu.memory_space<vmem>>, vector<32x32xbf16>
    %cst_18 = arith.constant dense<0.000000e+00> : vector<64x32xf32>
    %21 = tpu.matmul %9, %20, %cst_18 {dimension_numbers = #tpu.dot_dimension_numbers<[1], [0], [0], [1], [0, 0, 1, 1], [], []>} : vector<64x32xbf16>, vector<32x32xbf16>, vector<64x32xf32> -> vector<64x32xf32>
    %c0_19 = arith.constant 0 : index
    %c0_20 = arith.constant 0 : index
    %22 = vector.load %arg8[%c0_19, %c0_20] : memref<1x32xf32, #tpu.memory_space<vmem>>, vector<1x32xf32>
    %23 = vector.broadcast %22 : vector<1x32xf32> to vector<64x32xf32>
    %24 = arith.addf %21, %23 : vector<64x32xf32>
    %25 = arith.truncf %14 : vector<64x4xf32> to vector<64x4xbf16>
    %26 = arith.truncf %19 : vector<64x4xf32> to vector<64x4xbf16>
    %cst_21 = arith.constant dense<0.000000e+00> : vector<64x64xf32>
    %27 = tpu.matmul %25, %26, %cst_21 {dimension_numbers = #tpu.dot_dimension_numbers<[1], [1], [0], [0], [0, 0, 1, 0], [], []>} : vector<64x4xbf16>, vector<64x4xbf16>, vector<64x64xf32> -> vector<64x64xf32>
    %cst_22 = arith.constant dense<0xFF800000> : vector<64xf32>
    %28 = vector.multi_reduction <maximumf>, %27, %cst_22 [1] : vector<64x64xf32> to vector<64xf32>
    %29 = vector.shape_cast %28 : vector<64xf32> to vector<64x1xf32>
    %30 = vector.broadcast %29 : vector<64x1xf32> to vector<64x64xf32>
    %31 = arith.subf %27, %30 : vector<64x64xf32>
    %32 = math.exp %31 : vector<64x64xf32>
    %cst_23 = arith.constant dense<0.000000e+00> : vector<64xf32>
    %33 = vector.multi_reduction <add>, %32, %cst_23 [1] : vector<64x64xf32> to vector<64xf32>
    %34 = vector.shape_cast %33 : vector<64xf32> to vector<64x1xf32>
    %35 = tpu.reciprocal %34 {approx = true} : vector<64x1xf32> -> vector<64x1xf32>
    %36 = vector.broadcast %35 : vector<64x1xf32> to vector<64x64xf32>
    %37 = arith.mulf %32, %36 : vector<64x64xf32>
    %38 = arith.truncf %37 : vector<64x64xf32> to vector<64x64xbf16>
    %39 = arith.truncf %24 : vector<64x32xf32> to vector<64x32xbf16>
    %cst_24 = arith.constant dense<0.000000e+00> : vector<64x32xf32>
    %40 = tpu.matmul %38, %39, %cst_24 {dimension_numbers = #tpu.dot_dimension_numbers<[1], [0], [0], [1], [0, 0, 1, 1], [], []>} : vector<64x64xbf16>, vector<64x32xbf16>, vector<64x32xf32> -> vector<64x32xf32>
    %c0_25 = arith.constant 0 : index
    %c0_26 = arith.constant 0 : index
    %41 = vector.load %arg9[%c0_25, %c0_26] : memref<1x1xf32, #tpu.memory_space<vmem>>, vector<1x1xf32>
    %42 = vector.extract %41[0, 0] : f32 from vector<1x1xf32>
    %43 = vector.broadcast %42 : f32 to vector<64x32xf32>
    %44 = arith.mulf %43, %40 : vector<64x32xf32>
    %45 = arith.addf %44, %8 : vector<64x32xf32>
    %46 = arith.truncf %45 : vector<64x32xf32> to vector<64x32xbf16>
    %c0_27 = arith.constant 0 : index
    %c0_28 = arith.constant 0 : index
    %c0_29 = arith.constant 0 : index
    %47 = vector.load %arg10[%c0_27, %c0_28, %c0_29] : memref<1x64x32xbf16, #tpu.memory_space<vmem>>, vector<1x64x32xbf16>
    %48 = vector.shape_cast %47 : vector<1x64x32xbf16> to vector<64x32xbf16>
    %49 = vector.shape_cast %46 : vector<64x32xbf16> to vector<1x64x32xbf16>
    tpu.vector_store %arg10[%c0_27, %c0_28, %c0_29], %49 {strides = array<i32>} : memref<1x64x32xbf16, #tpu.memory_space<vmem>>, vector<1x64x32xbf16>,
    return
  }
  func.func @transform_0(%arg0: i32) -> (i32, i32, i32) {
    %c0_i32 = arith.constant 0 : i32
    %c0_i32_0 = arith.constant 0 : i32
    %c0_i32_1 = arith.constant 0 : i32
    return %arg0, %c0_i32, %c0_i32_0 : i32, i32, i32
  }
  func.func @transform_1(%arg0: i32) -> (i32, i32) {
    %c0_i32 = arith.constant 0 : i32
    %c0_i32_0 = arith.constant 0 : i32
    %c0_i32_1 = arith.constant 0 : i32
    return %c0_i32, %c0_i32_0 : i32, i32
  }
  func.func @transform_2(%arg0: i32) -> (i32, i32) {
    %c0_i32 = arith.constant 0 : i32
    %c0_i32_0 = arith.constant 0 : i32
    %c0_i32_1 = arith.constant 0 : i32
    return %c0_i32, %c0_i32_0 : i32, i32
  }
  func.func @transform_3(%arg0: i32) -> (i32, i32) {
    %c0_i32 = arith.constant 0 : i32
    %c0_i32_0 = arith.constant 0 : i32
    %c0_i32_1 = arith.constant 0 : i32
    return %c0_i32, %c0_i32_0 : i32, i32
  }
  func.func @transform_4(%arg0: i32) -> (i32, i32) {
    %c0_i32 = arith.constant 0 : i32
    %c0_i32_0 = arith.constant 0 : i32
    %c0_i32_1 = arith.constant 0 : i32
    return %c0_i32, %c0_i32_0 : i32, i32
  }
  func.func @transform_5(%arg0: i32) -> (i32, i32) {
    %c0_i32 = arith.constant 0 : i32
    %c0_i32_0 = arith.constant 0 : i32
    %c0_i32_1 = arith.constant 0 : i32
    return %c0_i32, %c0_i32_0 : i32, i32
  }
  func.func @transform_6(%arg0: i32) -> (i32, i32) {
    %c0_i32 = arith.constant 0 : i32
    %c0_i32_0 = arith.constant 0 : i32
    %c0_i32_1 = arith.constant 0 : i32
    return %c0_i32, %c0_i32_0 : i32, i32
  }
  func.func @transform_7(%arg0: i32) -> (i32, i32) {
    %c0_i32 = arith.constant 0 : i32
    %c0_i32_0 = arith.constant 0 : i32
    %c0_i32_1 = arith.constant 0 : i32
    return %c0_i32, %c0_i32_0 : i32, i32
  }
  func.func @transform_8(%arg0: i32) -> (i32, i32) {
    %c0_i32 = arith.constant 0 : i32
    %c0_i32_0 = arith.constant 0 : i32
    %c0_i32_1 = arith.constant 0 : i32
    return %c0_i32, %c0_i32_0 : i32, i32
  }
  func.func @transform_9(%arg0: i32) -> (i32, i32, i32) {
    %c0_i32 = arith.constant 0 : i32
    %c0_i32_0 = arith.constant 0 : i32
    %c0_i32_1 = arith.constant 0 : i32
    return %arg0, %c0_i32, %c0_i32_0 : i32, i32, i32
  }
}

module attributes {stable_mosaic.version = 11 : i64} {
  func.func @_conv_sa_kernel(%arg0: i32, %arg1: memref<1x16x512xbf16, #tpu.memory_space<vmem>>, %arg2: memref<512x64xbf16, #tpu.memory_space<vmem>>, %arg3: memref<64x8xbf16, #tpu.memory_space<vmem>>, %arg4: memref<1x8xf32, #tpu.memory_space<vmem>>, %arg5: memref<64x8xbf16, #tpu.memory_space<vmem>>, %arg6: memref<1x8xf32, #tpu.memory_space<vmem>>, %arg7: memref<64x64xbf16, #tpu.memory_space<vmem>>, %arg8: memref<1x64xf32, #tpu.memory_space<vmem>>, %arg9: memref<1x1xf32, #tpu.memory_space<vmem>>, %arg10: memref<1x16x64xbf16, #tpu.memory_space<vmem>>) attributes {dimension_semantics = [#tpu.dimension_semantics<parallel>], iteration_bounds = array<i64: 2>, scalar_prefetch = 0 : i64, scratch_operands = 0 : i64, tpu.core_type = #tpu.core_type<tc>, window_params = [{transform_indices = @transform_0, window_bounds = array<i64: 1, 16, 512>}, {pipeline_mode = #tpu.pipeline_mode<synchronous>, transform_indices = @transform_1, window_bounds = array<i64: 512, 64>}, {pipeline_mode = #tpu.pipeline_mode<synchronous>, transform_indices = @transform_2, window_bounds = array<i64: 64, 8>}, {pipeline_mode = #tpu.pipeline_mode<synchronous>, transform_indices = @transform_3, window_bounds = array<i64: 1, 8>}, {pipeline_mode = #tpu.pipeline_mode<synchronous>, transform_indices = @transform_4, window_bounds = array<i64: 64, 8>}, {pipeline_mode = #tpu.pipeline_mode<synchronous>, transform_indices = @transform_5, window_bounds = array<i64: 1, 8>}, {pipeline_mode = #tpu.pipeline_mode<synchronous>, transform_indices = @transform_6, window_bounds = array<i64: 64, 64>}, {pipeline_mode = #tpu.pipeline_mode<synchronous>, transform_indices = @transform_7, window_bounds = array<i64: 1, 64>}, {pipeline_mode = #tpu.pipeline_mode<synchronous>, transform_indices = @transform_8, window_bounds = array<i64: 1, 1>}, {transform_indices = @transform_9, window_bounds = array<i64: 1, 16, 64>}]} {
    %c0 = arith.constant 0 : index
    %c0_0 = arith.constant 0 : index
    %c0_1 = arith.constant 0 : index
    %0 = vector.load %arg1[%c0, %c0_0, %c0_1] : memref<1x16x512xbf16, #tpu.memory_space<vmem>>, vector<1x16x512xbf16>
    %1 = vector.shape_cast %0 : vector<1x16x512xbf16> to vector<16x512xbf16>
    %c0_2 = arith.constant 0 : index
    %c0_3 = arith.constant 0 : index
    %2 = vector.load %arg2[%c0_2, %c0_3] : memref<512x64xbf16, #tpu.memory_space<vmem>>, vector<512x64xbf16>
    %cst = arith.constant dense<0.000000e+00> : vector<16x64xf32>
    %3 = tpu.matmul %1, %2, %cst {dimension_numbers = #tpu.dot_dimension_numbers<[1], [0], [0], [1], [0, 0, 1, 1], [], []>} : vector<16x512xbf16>, vector<512x64xbf16>, vector<16x64xf32> -> vector<16x64xf32>
    %cst_4 = arith.constant 0.000000e+00 : f32
    %4 = vector.broadcast %cst_4 : f32 to vector<16x64xf32>
    %5 = arith.cmpf oge, %3, %4 : vector<16x64xf32>
    %cst_5 = arith.constant 2.000000e-01 : f32
    %6 = vector.broadcast %cst_5 : f32 to vector<16x64xf32>
    %7 = arith.mulf %6, %3 : vector<16x64xf32>
    %8 = arith.select %5, %3, %7 : vector<16x64xi1>, vector<16x64xf32>
    %9 = arith.truncf %8 : vector<16x64xf32> to vector<16x64xbf16>
    %c0_6 = arith.constant 0 : index
    %c0_7 = arith.constant 0 : index
    %10 = vector.load %arg3[%c0_6, %c0_7] : memref<64x8xbf16, #tpu.memory_space<vmem>>, vector<64x8xbf16>
    %cst_8 = arith.constant dense<0.000000e+00> : vector<16x8xf32>
    %11 = tpu.matmul %9, %10, %cst_8 {dimension_numbers = #tpu.dot_dimension_numbers<[1], [0], [0], [1], [0, 0, 1, 1], [], []>} : vector<16x64xbf16>, vector<64x8xbf16>, vector<16x8xf32> -> vector<16x8xf32>
    %c0_9 = arith.constant 0 : index
    %c0_10 = arith.constant 0 : index
    %12 = vector.load %arg4[%c0_9, %c0_10] : memref<1x8xf32, #tpu.memory_space<vmem>>, vector<1x8xf32>
    %13 = vector.broadcast %12 : vector<1x8xf32> to vector<16x8xf32>
    %14 = arith.addf %11, %13 : vector<16x8xf32>
    %c0_11 = arith.constant 0 : index
    %c0_12 = arith.constant 0 : index
    %15 = vector.load %arg5[%c0_11, %c0_12] : memref<64x8xbf16, #tpu.memory_space<vmem>>, vector<64x8xbf16>
    %cst_13 = arith.constant dense<0.000000e+00> : vector<16x8xf32>
    %16 = tpu.matmul %9, %15, %cst_13 {dimension_numbers = #tpu.dot_dimension_numbers<[1], [0], [0], [1], [0, 0, 1, 1], [], []>} : vector<16x64xbf16>, vector<64x8xbf16>, vector<16x8xf32> -> vector<16x8xf32>
    %c0_14 = arith.constant 0 : index
    %c0_15 = arith.constant 0 : index
    %17 = vector.load %arg6[%c0_14, %c0_15] : memref<1x8xf32, #tpu.memory_space<vmem>>, vector<1x8xf32>
    %18 = vector.broadcast %17 : vector<1x8xf32> to vector<16x8xf32>
    %19 = arith.addf %16, %18 : vector<16x8xf32>
    %c0_16 = arith.constant 0 : index
    %c0_17 = arith.constant 0 : index
    %20 = vector.load %arg7[%c0_16, %c0_17] : memref<64x64xbf16, #tpu.memory_space<vmem>>, vector<64x64xbf16>
    %cst_18 = arith.constant dense<0.000000e+00> : vector<16x64xf32>
    %21 = tpu.matmul %9, %20, %cst_18 {dimension_numbers = #tpu.dot_dimension_numbers<[1], [0], [0], [1], [0, 0, 1, 1], [], []>} : vector<16x64xbf16>, vector<64x64xbf16>, vector<16x64xf32> -> vector<16x64xf32>
    %c0_19 = arith.constant 0 : index
    %c0_20 = arith.constant 0 : index
    %22 = vector.load %arg8[%c0_19, %c0_20] : memref<1x64xf32, #tpu.memory_space<vmem>>, vector<1x64xf32>
    %23 = vector.broadcast %22 : vector<1x64xf32> to vector<16x64xf32>
    %24 = arith.addf %21, %23 : vector<16x64xf32>
    %25 = arith.truncf %14 : vector<16x8xf32> to vector<16x8xbf16>
    %26 = arith.truncf %19 : vector<16x8xf32> to vector<16x8xbf16>
    %cst_21 = arith.constant dense<0.000000e+00> : vector<16x16xf32>
    %27 = tpu.matmul %25, %26, %cst_21 {dimension_numbers = #tpu.dot_dimension_numbers<[1], [1], [0], [0], [0, 0, 1, 0], [], []>} : vector<16x8xbf16>, vector<16x8xbf16>, vector<16x16xf32> -> vector<16x16xf32>
    %cst_22 = arith.constant dense<0xFF800000> : vector<16xf32>
    %28 = vector.multi_reduction <maximumf>, %27, %cst_22 [1] : vector<16x16xf32> to vector<16xf32>
    %29 = vector.shape_cast %28 : vector<16xf32> to vector<16x1xf32>
    %30 = vector.broadcast %29 : vector<16x1xf32> to vector<16x16xf32>
    %31 = arith.subf %27, %30 : vector<16x16xf32>
    %32 = math.exp %31 : vector<16x16xf32>
    %cst_23 = arith.constant dense<0.000000e+00> : vector<16xf32>
    %33 = vector.multi_reduction <add>, %32, %cst_23 [1] : vector<16x16xf32> to vector<16xf32>
    %34 = vector.shape_cast %33 : vector<16xf32> to vector<16x1xf32>
    %35 = tpu.reciprocal %34 {approx = true} : vector<16x1xf32> -> vector<16x1xf32>
    %36 = vector.broadcast %35 : vector<16x1xf32> to vector<16x16xf32>
    %37 = arith.mulf %32, %36 : vector<16x16xf32>
    %38 = arith.truncf %37 : vector<16x16xf32> to vector<16x16xbf16>
    %39 = arith.truncf %24 : vector<16x64xf32> to vector<16x64xbf16>
    %cst_24 = arith.constant dense<0.000000e+00> : vector<16x64xf32>
    %40 = tpu.matmul %38, %39, %cst_24 {dimension_numbers = #tpu.dot_dimension_numbers<[1], [0], [0], [1], [0, 0, 1, 1], [], []>} : vector<16x16xbf16>, vector<16x64xbf16>, vector<16x64xf32> -> vector<16x64xf32>
    %c0_25 = arith.constant 0 : index
    %c0_26 = arith.constant 0 : index
    %41 = vector.load %arg9[%c0_25, %c0_26] : memref<1x1xf32, #tpu.memory_space<vmem>>, vector<1x1xf32>
    %42 = vector.extract %41[0, 0] : f32 from vector<1x1xf32>
    %43 = vector.broadcast %42 : f32 to vector<16x64xf32>
    %44 = arith.mulf %43, %40 : vector<16x64xf32>
    %45 = arith.addf %44, %8 : vector<16x64xf32>
    %46 = arith.truncf %45 : vector<16x64xf32> to vector<16x64xbf16>
    %c0_27 = arith.constant 0 : index
    %c0_28 = arith.constant 0 : index
    %c0_29 = arith.constant 0 : index
    %47 = vector.load %arg10[%c0_27, %c0_28, %c0_29] : memref<1x16x64xbf16, #tpu.memory_space<vmem>>, vector<1x16x64xbf16>
    %48 = vector.shape_cast %47 : vector<1x16x64xbf16> to vector<16x64xbf16>
    %49 = vector.shape_cast %46 : vector<16x64xbf16> to vector<1x16x64xbf16>
    tpu.vector_store %arg10[%c0_27, %c0_28, %c0_29], %49 {strides = array<i32>} : memref<1x16x64xbf16, #tpu.memory_space<vmem>>, vector<1x16x64xbf16>,
    return
  }
  func.func @transform_0(%arg0: i32) -> (i32, i32, i32) {
    %c0_i32 = arith.constant 0 : i32
    %c0_i32_0 = arith.constant 0 : i32
    %c0_i32_1 = arith.constant 0 : i32
    return %arg0, %c0_i32, %c0_i32_0 : i32, i32, i32
  }
  func.func @transform_1(%arg0: i32) -> (i32, i32) {
    %c0_i32 = arith.constant 0 : i32
    %c0_i32_0 = arith.constant 0 : i32
    %c0_i32_1 = arith.constant 0 : i32
    return %c0_i32, %c0_i32_0 : i32, i32
  }
  func.func @transform_2(%arg0: i32) -> (i32, i32) {
    %c0_i32 = arith.constant 0 : i32
    %c0_i32_0 = arith.constant 0 : i32
    %c0_i32_1 = arith.constant 0 : i32
    return %c0_i32, %c0_i32_0 : i32, i32
  }
  func.func @transform_3(%arg0: i32) -> (i32, i32) {
    %c0_i32 = arith.constant 0 : i32
    %c0_i32_0 = arith.constant 0 : i32
    %c0_i32_1 = arith.constant 0 : i32
    return %c0_i32, %c0_i32_0 : i32, i32
  }
  func.func @transform_4(%arg0: i32) -> (i32, i32) {
    %c0_i32 = arith.constant 0 : i32
    %c0_i32_0 = arith.constant 0 : i32
    %c0_i32_1 = arith.constant 0 : i32
    return %c0_i32, %c0_i32_0 : i32, i32
  }
  func.func @transform_5(%arg0: i32) -> (i32, i32) {
    %c0_i32 = arith.constant 0 : i32
    %c0_i32_0 = arith.constant 0 : i32
    %c0_i32_1 = arith.constant 0 : i32
    return %c0_i32, %c0_i32_0 : i32, i32
  }
  func.func @transform_6(%arg0: i32) -> (i32, i32) {
    %c0_i32 = arith.constant 0 : i32
    %c0_i32_0 = arith.constant 0 : i32
    %c0_i32_1 = arith.constant 0 : i32
    return %c0_i32, %c0_i32_0 : i32, i32
  }
  func.func @transform_7(%arg0: i32) -> (i32, i32) {
    %c0_i32 = arith.constant 0 : i32
    %c0_i32_0 = arith.constant 0 : i32
    %c0_i32_1 = arith.constant 0 : i32
    return %c0_i32, %c0_i32_0 : i32, i32
  }
  func.func @transform_8(%arg0: i32) -> (i32, i32) {
    %c0_i32 = arith.constant 0 : i32
    %c0_i32_0 = arith.constant 0 : i32
    %c0_i32_1 = arith.constant 0 : i32
    return %c0_i32, %c0_i32_0 : i32, i32
  }
  func.func @transform_9(%arg0: i32) -> (i32, i32, i32) {
    %c0_i32 = arith.constant 0 : i32
    %c0_i32_0 = arith.constant 0 : i32
    %c0_i32_1 = arith.constant 0 : i32
    return %arg0, %c0_i32, %c0_i32_0 : i32, i32, i32
  }
}

module attributes {stable_mosaic.version = 11 : i64} {
  func.func @_conv_head_kernel(%arg0: i32, %arg1: memref<1x16x576xbf16, #tpu.memory_space<vmem>>, %arg2: memref<1x16x64xf32, #tpu.memory_space<vmem>>, %arg3: memref<576x64xbf16, #tpu.memory_space<vmem>>, %arg4: memref<16x64xf32, #tpu.memory_space<vmem>>, %arg5: memref<1x1xf32, #tpu.memory_space<vmem>>, %arg6: memref<1x1x1xf32, #tpu.memory_space<vmem>>) attributes {dimension_semantics = [#tpu.dimension_semantics<parallel>], iteration_bounds = array<i64: 2>, scalar_prefetch = 0 : i64, scratch_operands = 0 : i64, tpu.core_type = #tpu.core_type<tc>, window_params = [{transform_indices = @transform_0, window_bounds = array<i64: 1, 16, 576>}, {transform_indices = @transform_1, window_bounds = array<i64: 1, 16, 64>}, {pipeline_mode = #tpu.pipeline_mode<synchronous>, transform_indices = @transform_2, window_bounds = array<i64: 576, 64>}, {pipeline_mode = #tpu.pipeline_mode<synchronous>, transform_indices = @transform_3, window_bounds = array<i64: 16, 64>}, {pipeline_mode = #tpu.pipeline_mode<synchronous>, transform_indices = @transform_4, window_bounds = array<i64: 1, 1>}, {transform_indices = @transform_5, window_bounds = array<i64: 1, 1, 1>}]} {
    %c0 = arith.constant 0 : index
    %c0_0 = arith.constant 0 : index
    %c0_1 = arith.constant 0 : index
    %0 = vector.load %arg1[%c0, %c0_0, %c0_1] : memref<1x16x576xbf16, #tpu.memory_space<vmem>>, vector<1x16x576xbf16>
    %1 = vector.shape_cast %0 : vector<1x16x576xbf16> to vector<16x576xbf16>
    %c0_2 = arith.constant 0 : index
    %c0_3 = arith.constant 0 : index
    %2 = vector.load %arg3[%c0_2, %c0_3] : memref<576x64xbf16, #tpu.memory_space<vmem>>, vector<576x64xbf16>
    %cst = arith.constant dense<0.000000e+00> : vector<16x64xf32>
    %3 = tpu.matmul %1, %2, %cst {dimension_numbers = #tpu.dot_dimension_numbers<[1], [0], [0], [1], [0, 0, 1, 1], [], []>} : vector<16x576xbf16>, vector<576x64xbf16>, vector<16x64xf32> -> vector<16x64xf32>
    %cst_4 = arith.constant 0.000000e+00 : f32
    %4 = vector.broadcast %cst_4 : f32 to vector<16x64xf32>
    %5 = arith.cmpf oge, %3, %4 : vector<16x64xf32>
    %cst_5 = arith.constant 2.000000e-01 : f32
    %6 = vector.broadcast %cst_5 : f32 to vector<16x64xf32>
    %7 = arith.mulf %6, %3 : vector<16x64xf32>
    %8 = arith.select %5, %3, %7 : vector<16x64xi1>, vector<16x64xf32>
    %c0_6 = arith.constant 0 : index
    %c0_7 = arith.constant 0 : index
    %9 = vector.load %arg4[%c0_6, %c0_7] : memref<16x64xf32, #tpu.memory_space<vmem>>, vector<16x64xf32>
    %c0_8 = arith.constant 0 : index
    %c0_9 = arith.constant 0 : index
    %c0_10 = arith.constant 0 : index
    %10 = vector.load %arg2[%c0_8, %c0_9, %c0_10] : memref<1x16x64xf32, #tpu.memory_space<vmem>>, vector<1x16x64xf32>
    %11 = vector.shape_cast %10 : vector<1x16x64xf32> to vector<16x64xf32>
    %12 = arith.addf %9, %11 : vector<16x64xf32>
    %13 = arith.mulf %8, %12 : vector<16x64xf32>
    %cst_11 = arith.constant dense<0.000000e+00> : vector<16xf32>
    %14 = vector.multi_reduction <add>, %13, %cst_11 [1] : vector<16x64xf32> to vector<16xf32>
    %15 = vector.shape_cast %14 : vector<16xf32> to vector<16x1xf32>
    %cst_12 = arith.constant dense<0.000000e+00> : vector<1xf32>
    %16 = vector.multi_reduction <add>, %15, %cst_12 [0] : vector<16x1xf32> to vector<1xf32>
    %17 = vector.shape_cast %16 : vector<1xf32> to vector<1x1xf32>
    %c0_13 = arith.constant 0 : index
    %c0_14 = arith.constant 0 : index
    %18 = vector.load %arg5[%c0_13, %c0_14] : memref<1x1xf32, #tpu.memory_space<vmem>>, vector<1x1xf32>
    %19 = arith.addf %17, %18 : vector<1x1xf32>
    %c0_15 = arith.constant 0 : index
    %c0_16 = arith.constant 0 : index
    %c0_17 = arith.constant 0 : index
    %20 = vector.load %arg6[%c0_15, %c0_16, %c0_17] : memref<1x1x1xf32, #tpu.memory_space<vmem>>, vector<1x1x1xf32>
    %21 = vector.shape_cast %20 : vector<1x1x1xf32> to vector<1x1xf32>
    %22 = vector.shape_cast %19 : vector<1x1xf32> to vector<1x1x1xf32>
    tpu.vector_store %arg6[%c0_15, %c0_16, %c0_17], %22 {strides = array<i32>} : memref<1x1x1xf32, #tpu.memory_space<vmem>>, vector<1x1x1xf32>,
    return
  }
  func.func @transform_0(%arg0: i32) -> (i32, i32, i32) {
    %c0_i32 = arith.constant 0 : i32
    %c0_i32_0 = arith.constant 0 : i32
    %c0_i32_1 = arith.constant 0 : i32
    return %arg0, %c0_i32, %c0_i32_0 : i32, i32, i32
  }
  func.func @transform_1(%arg0: i32) -> (i32, i32, i32) {
    %c0_i32 = arith.constant 0 : i32
    %c0_i32_0 = arith.constant 0 : i32
    %c0_i32_1 = arith.constant 0 : i32
    return %arg0, %c0_i32, %c0_i32_0 : i32, i32, i32
  }
  func.func @transform_2(%arg0: i32) -> (i32, i32) {
    %c0_i32 = arith.constant 0 : i32
    %c0_i32_0 = arith.constant 0 : i32
    %c0_i32_1 = arith.constant 0 : i32
    return %c0_i32, %c0_i32_0 : i32, i32
  }
  func.func @transform_3(%arg0: i32) -> (i32, i32) {
    %c0_i32 = arith.constant 0 : i32
    %c0_i32_0 = arith.constant 0 : i32
    %c0_i32_1 = arith.constant 0 : i32
    return %c0_i32, %c0_i32_0 : i32, i32
  }
  func.func @transform_4(%arg0: i32) -> (i32, i32) {
    %c0_i32 = arith.constant 0 : i32
    %c0_i32_0 = arith.constant 0 : i32
    %c0_i32_1 = arith.constant 0 : i32
    return %c0_i32, %c0_i32_0 : i32, i32
  }
  func.func @transform_5(%arg0: i32) -> (i32, i32, i32) {
    %c0_i32 = arith.constant 0 : i32
    %c0_i32_0 = arith.constant 0 : i32
    %c0_i32_1 = arith.constant 0 : i32
    return %arg0, %c0_i32, %c0_i32_0 : i32, i32, i32
  }
}

</mosaic_0001>

<bundles_post_ra>
// kernel: discriminator_forward.5
= control target key start
LH: loop header
LB: loop body
LE: loop exit
PB: predicated region body
PF: predicated region fallthrough
CT: control target
= control target key end

     0   :  { %s3406_s9 = smov 0   ;;  %s3601_s0 = inlined_call_operand.vmem [shape: bf16[2048,128], index: 0, kind: input, shape index: {}]   ;;  %s3602_s1 = inlined_call_operand.vmem [shape: bf16[128,128], index: 1, kind: input, shape index: {}]   ;;  %s3603_s2 = inlined_call_operand.vmem [shape: bf16[2048,128], index: 2, kind: output, shape index: {}]  }
   0x1 LB: > { %s2349_s10 = sadd.s32 4294967295, %s3389_s9   ;;  %p2353_p0 = scmp.ge.s32.totalorder %s3389_s9, 1  ;;  %s3389_s9 = sphi %s3406_s9, %s12_s9  }
   0x2   : > { %p113_p1 = scmp.lt.s32.totalorder %s3389_s9, 3 }
   0x4   : > { %p114_p2 = pnand %p2353_p0, %p113_p1 }
   0x5   : > { %v3311_v0 = vld [vmem:[%s3602_s1] sm:$0xff] (!%p114_p2)   ;;  %s2354_s13 = sshll.u32 (!%p114_p2), %s2349_s10, 7  ;;  %v3312_v1 = vld [vmem:[%s3602_s1 + $0x8] sm:$0xff] (!%p114_p2)   ;;  %v3313_v2 = vld [vmem:[%s3602_s1 + $0x10] sm:$0xff] (!%p114_p2)  }
   0x6   : > { %117 = sbr.rel (%p114_p2) target bundleno = 381 (0x17d), region = 28  ;;  %p136_p3 = scmp.lt.s32.totalorder (!%p114_p2), %s2354_s13, 255  ;;  %3143 = vmatprep.subr.bf16.mxu0 (!%p114_p2), %v3311_v0  ;;  %3287 = vmatprep.subr.bf16.mxu1 (!%p114_p2), %v3311_v0  ;;  %v3314_v3 = vld [vmem:[%s3602_s1 + $0x18] sm:$0xff] (!%p114_p2)   ;;  %v3315_v6 = vld [vmem:[%s3602_s1 + $0x20] sm:$0xff] (!%p114_p2)   ;;  %v3316_v7 = vld [vmem:[%s3602_s1 + $0x28] sm:$0xff] (!%p114_p2)  }
   0x7   : > { %3144 = vmatpush3.bf16.msra.mxu0 (!%p114_p2), %v3311_v0  ;;  %3295 = vmatpush3.bf16.msra.mxu1 (!%p114_p2), %v3311_v0  ;;  %v3317_v8 = vld [vmem:[%s3602_s1 + $0x30] sm:$0xff] (!%p114_p2)   ;;  %v3318_v9 = vld [vmem:[%s3602_s1 + $0x38] sm:$0xff] (!%p114_p2)  }
   0x8   : > { %3145 = vmatprep.subr.bf16.mxu0 (!%p114_p2), %v3312_v1  ;;  %3288 = vmatprep.subr.bf16.mxu1 (!%p114_p2), %v3312_v1 }
   0xb   : > { %3146 = vmatpush3.bf16.msra.mxu0 (!%p114_p2), %v3312_v1  ;;  %3296 = vmatpush3.bf16.msra.mxu1 (!%p114_p2), %v3312_v1 }
   0xc   : > { %3147 = vmatprep.subr.bf16.mxu0 (!%p114_p2), %v3313_v2  ;;  %3289 = vmatprep.subr.bf16.mxu1 (!%p114_p2), %v3313_v2 }
   0xd   : > { %s3605_s13 = smov (!%p136_p3, %s2354_s13), 255 }
   0xe   : > { %s2355_s18 = sshll.u32 %s3605_s13, 2 }
   0xf   : > { %s3431_s21 = scalar_lea.vmem %s3601_s0, %s2355_s18  ;;  %3148 = vmatpush3.bf16.msra.mxu0 %v3313_v2  ;;  %3297 = vmatpush3.bf16.msra.mxu1 %v3313_v2  ;;  %s3517_s6 = scalar_lea.vmem %s3603_s2, %s2355_s18 }
  0x10   : > { %v3319_v4 = vld [vmem:[%s3431_s21] sm:$0xff]   ;;  %3149 = vmatprep.subr.bf16.mxu0 %v3314_v3  ;;  %3290 = vmatprep.subr.bf16.mxu1 %v3314_v3  ;;  %v3321_v10 = vld [vmem:[%s3431_s21 + $0x8] sm:$0xff]   ;;  %v3323_v12 = vld [vmem:[%s3431_s21 + $0x10] sm:$0xff]  }
  0x11   : > { %v3320_v5 = vld [vmem:[%s3431_s21 + $0x100] sm:$0xff]   ;;  %3159 = vmatprep.mubr.bf16.mxu0 %v3319_v4  ;;  %v3322_v11 = vld [vmem:[%s3431_s21 + $0x108] sm:$0xff]   ;;  %v3324_v13 = vld [vmem:[%s3431_s21 + $0x110] sm:$0xff]  }
  0x12   : > { %3223 = vmatprep.mubr.bf16.mxu1 %v3320_v5  ;;  %v3325_v14 = vld [vmem:[%s3431_s21 + $0x18] sm:$0xff]   ;;  %v3327_v16 = vld [vmem:[%s3431_s21 + $0x20] sm:$0xff]   ;;  %v3329_v18 = vld [vmem:[%s3431_s21 + $0x28] sm:$0xff]  }
  0x13   : > { %3150 = vmatpush3.bf16.msra.mxu0 %v3314_v3  ;;  %3298 = vmatpush3.bf16.msra.mxu1 %v3314_v3  ;;  %v3326_v15 = vld [vmem:[%s3431_s21 + $0x118] sm:$0xff]   ;;  %v3328_v17 = vld [vmem:[%s3431_s21 + $0x120] sm:$0xff]   ;;  %v3330_v19 = vld [vmem:[%s3431_s21 + $0x128] sm:$0xff]  }
  0x14   : > { %3151 = vmatprep.subr.bf16.mxu0 %v3315_v6  ;;  %3291 = vmatprep.subr.bf16.mxu1 %v3315_v6  ;;  %v3331_v20 = vld [vmem:[%s3431_s21 + $0x30] sm:$0xff]   ;;  %v3333_v22 = vld [vmem:[%s3431_s21 + $0x38] sm:$0xff]   ;;  %v3335_v24 = vld [vmem:[%s3431_s21 + $0x40] sm:$0xff]  }
  0x15   : > { %v3332_v21 = vld [vmem:[%s3431_s21 + $0x130] sm:$0xff]   ;;  %v3334_v23 = vld [vmem:[%s3431_s21 + $0x138] sm:$0xff]   ;;  %v3336_v25 = vld [vmem:[%s3431_s21 + $0x140] sm:$0xff]  }
  0x16   : > { %v3337_v26 = vld [vmem:[%s3431_s21 + $0x48] sm:$0xff]   ;;  %v3339_v28 = vld [vmem:[%s3431_s21 + $0x50] sm:$0xff]   ;;  %v3341_v30 = vld [vmem:[%s3431_s21 + $0x58] sm:$0xff]  }
  0x17   : > { %3152 = vmatpush3.bf16.msra.mxu0 %v3315_v6  ;;  %3299 = vmatpush3.bf16.msra.mxu1 %v3315_v6  ;;  %v3338_v27 = vld [vmem:[%s3431_s21 + $0x148] sm:$0xff]   ;;  %v3340_v29 = vld [vmem:[%s3431_s21 + $0x150] sm:$0xff]   ;;  %v3342_v31 = vld [vmem:[%s3431_s21 + $0x158] sm:$0xff]  }
  0x18   : > { %3153 = vmatprep.subr.bf16.mxu0 %v3316_v7  ;;  %3292 = vmatprep.subr.bf16.mxu1 %v3316_v7  ;;  %v3343_v32 = vld [vmem:[%s3431_s21 + $0x60] sm:$0xff]   ;;  %v3345_v34 = vld [vmem:[%s3431_s21 + $0x68] sm:$0xff]   ;;  %v3347_v36 = vld [vmem:[%s3431_s21 + $0x70] sm:$0xff]  }
  0x19   : > { %v3344_v33 = vld [vmem:[%s3431_s21 + $0x160] sm:$0xff]   ;;  %v3346_v35 = vld [vmem:[%s3431_s21 + $0x168] sm:$0xff]   ;;  %v3348_v37 = vld [vmem:[%s3431_s21 + $0x170] sm:$0xff]  }
  0x1a   : > { %v3349_v38 = vld [vmem:[%s3431_s21 + $0x78] sm:$0xff]   ;;  %v3351_v40 = vld [vmem:[%s3431_s21 + $0x80] sm:$0xff]   ;;  %v3353_v42 = vld [vmem:[%s3431_s21 + $0x88] sm:$0xff]  }
  0x1b   : > { %3154 = vmatpush3.bf16.msra.mxu0 %v3316_v7  ;;  %3300 = vmatpush3.bf16.msra.mxu1 %v3316_v7  ;;  %v3350_v39 = vld [vmem:[%s3431_s21 + $0x178] sm:$0xff]   ;;  %v3352_v41 = vld [vmem:[%s3431_s21 + $0x180] sm:$0xff]   ;;  %v3354_v43 = vld [vmem:[%s3431_s21 + $0x188] sm:$0xff]  }
  0x1c   : > { %3155 = vmatprep.subr.bf16.mxu0 %v3317_v8  ;;  %3293 = vmatprep.subr.bf16.mxu1 %v3317_v8  ;;  %v3355_v44 = vld [vmem:[%s3431_s21 + $0x90] sm:$0xff]   ;;  %v3357_v46 = vld [vmem:[%s3431_s21 + $0x98] sm:$0xff]   ;;  %v3359_v48 = vld [vmem:[%s3431_s21 + $0xa0] sm:$0xff]  }
  0x1d   : > { %v3356_v45 = vld [vmem:[%s3431_s21 + $0x190] sm:$0xff]   ;;  %v3358_v47 = vld [vmem:[%s3431_s21 + $0x198] sm:$0xff]   ;;  %v3360_v49 = vld [vmem:[%s3431_s21 + $0x1a0] sm:$0xff]  }
  0x1e   : > { %v3361_v50 = vld [vmem:[%s3431_s21 + $0xa8] sm:$0xff]   ;;  %v3363_v52 = vld [vmem:[%s3431_s21 + $0xb0] sm:$0xff]   ;;  %v3365_v54 = vld [vmem:[%s3431_s21 + $0xb8] sm:$0xff]  }
  0x1f   : > { %3156 = vmatpush3.bf16.msra.mxu0 %v3317_v8  ;;  %3301 = vmatpush3.bf16.msra.mxu1 %v3317_v8  ;;  %v3362_v51 = vld [vmem:[%s3431_s21 + $0x1a8] sm:$0xff]   ;;  %v3364_v53 = vld [vmem:[%s3431_s21 + $0x1b0] sm:$0xff]   ;;  %v3366_v55 = vld [vmem:[%s3431_s21 + $0x1b8] sm:$0xff]  }
  0x20   : > { %3157 = vmatprep.subr.bf16.mxu0 %v3318_v9  ;;  %3294 = vmatprep.subr.bf16.mxu1 %v3318_v9  ;;  %v3367_v56 = vld [vmem:[%s3431_s21 + $0xc0] sm:$0xff]   ;;  %v3369_v58 = vld [vmem:[%s3431_s21 + $0xc8] sm:$0xff]   ;;  %v3371_v60 = vld [vmem:[%s3431_s21 + $0xd0] sm:$0xff]  }
  0x21   : > { %v3368_v57 = vld [vmem:[%s3431_s21 + $0x1c0] sm:$0xff]   ;;  %v3370_v59 = vld [vmem:[%s3431_s21 + $0x1c8] sm:$0xff]   ;;  %v3372_v61 = vld [vmem:[%s3431_s21 + $0x1d0] sm:$0xff]  }
  0x22   : > { %v3373_v62 = vld [vmem:[%s3431_s21 + $0xd8] sm:$0xff]   ;;  %v3375_v0 = vld [vmem:[%s3431_s21 + $0xe0] sm:$0xff]   ;;  %v3377_v2 = vld [vmem:[%s3431_s21 + $0xe8] sm:$0xff]  }
  0x23   : > { %3158 = vmatpush3.bf16.msra.mxu0 %v3318_v9  ;;  %3302 = vmatpush3.bf16.msra.mxu1 %v3318_v9  ;;  %v3374_v63 = vld [vmem:[%s3431_s21 + $0x1d8] sm:$0xff]   ;;  %v3376_v1 = vld [vmem:[%s3431_s21 + $0x1e0] sm:$0xff]   ;;  %v3378_v3 = vld [vmem:[%s3431_s21 + $0x1e8] sm:$0xff]  }
  0x24   : > { %v3379_v4 = vld [vmem:[%s3431_s21 + $0xf0] sm:$0xff]   ;;  %v3381_v6 = vld [vmem:[%s3431_s21 + $0xf8] sm:$0xff]  }
  0x25   : > { %v3380_v5 = vld [vmem:[%s3431_s21 + $0x1f0] sm:$0xff]   ;;  %v3382_v7 = vld [vmem:[%s3431_s21 + $0x1f8] sm:$0xff]  }
  0x26   : > { %3160 = vmatmul.mubr.bf16.vlgmr.msra.gmra.mrb[0].mxu0 %v3321_v10  ;;  %3224 = vmatmul.mubr.bf16.vlgmr.msra.gmra.mrb[0].mxu1 %v3322_v11 }
  0x27   : > { %3163 = vmatprep.mubr.bf16.mxu0 %v3323_v12  ;;  %3227 = vmatprep.mubr.bf16.mxu1 %v3324_v13 }
  0x2e   : > { %3164 = vmatmul.mubr.bf16.gmra.mrb[4].mxu0 %v3325_v14  ;;  %3228 = vmatmul.mubr.bf16.gmra.mrb[4].mxu1 %v3326_v15 }
  0x2f   : > { %3167 = vmatprep.mubr.bf16.mxu0 %v3327_v16  ;;  %3231 = vmatprep.mubr.bf16.mxu1 %v3328_v17 }
  0x36   : > { %3168 = vmatmul.mubr.bf16.gmra.mrb[8].mxu0 %v3329_v18  ;;  %3232 = vmatmul.mubr.bf16.gmra.mrb[8].mxu1 %v3330_v19 }
  0x37   : > { %3171 = vmatprep.mubr.bf16.mxu0 %v3331_v20  ;;  %3235 = vmatprep.mubr.bf16.mxu1 %v3332_v21 }
  0x3e   : > { %3172 = vmatmul.mubr.bf16.gmra.mrb[12].mxu0 %v3333_v22  ;;  %3236 = vmatmul.mubr.bf16.gmra.mrb[12].mxu1 %v3334_v23 }
  0x3f   : > { %3175 = vmatprep.mubr.bf16.mxu0 %v3335_v24  ;;  %3239 = vmatprep.mubr.bf16.mxu1 %v3336_v25 }
  0x46   : > { %3176 = vmatmul.mubr.bf16.gmra.mrb[16].mxu0 %v3337_v26  ;;  %3240 = vmatmul.mubr.bf16.gmra.mrb[16].mxu1 %v3338_v27 }
  0x47   : > { %3179 = vmatprep.mubr.bf16.mxu0 %v3339_v28  ;;  %3243 = vmatprep.mubr.bf16.mxu1 %v3340_v29 }
  0x4e   : > { %3180 = vmatmul.mubr.bf16.gmra.mrb[20].mxu0 %v3341_v30  ;;  %3244 = vmatmul.mubr.bf16.gmra.mrb[20].mxu1 %v3342_v31 }
  0x4f   : > { %3183 = vmatprep.mubr.bf16.mxu0 %v3343_v32  ;;  %3247 = vmatprep.mubr.bf16.mxu1 %v3344_v33 }
  0x56   : > { %3184 = vmatmul.mubr.bf16.gmra.mrb[24].mxu0 %v3345_v34  ;;  %3248 = vmatmul.mubr.bf16.gmra.mrb[24].mxu1 %v3346_v35 }
  0x57   : > { %3187 = vmatprep.mubr.bf16.mxu0 %v3347_v36  ;;  %3251 = vmatprep.mubr.bf16.mxu1 %v3348_v37 }
  0x5e   : > { %3188 = vmatmul.mubr.bf16.gmra.mrb[28].mxu0 %v3349_v38  ;;  %3252 = vmatmul.mubr.bf16.gmra.mrb[28].mxu1 %v3350_v39 }
  0x5f   : > { %3191 = vmatprep.mubr.bf16.mxu0 %v3351_v40  ;;  %3255 = vmatprep.mubr.bf16.mxu1 %v3352_v41 }
  0x66   : > { %3192 = vmatmul.mubr.bf16.gmra.mrb[32].mxu0 %v3353_v42  ;;  %3256 = vmatmul.mubr.bf16.gmra.mrb[32].mxu1 %v3354_v43 }
  0x67   : > { %3195 = vmatprep.mubr.bf16.mxu0 %v3355_v44  ;;  %3259 = vmatprep.mubr.bf16.mxu1 %v3356_v45 }
  0x6e   : > { %3196 = vmatmul.mubr.bf16.gmra.mrb[36].mxu0 %v3357_v46  ;;  %3260 = vmatmul.mubr.bf16.gmra.mrb[36].mxu1 %v3358_v47 }
  0x6f   : > { %3199 = vmatprep.mubr.bf16.mxu0 %v3359_v48  ;;  %3263 = vmatprep.mubr.bf16.mxu1 %v3360_v49 }
  0x76   : > { %3200 = vmatmul.mubr.bf16.gmra.mrb[40].mxu0 %v3361_v50  ;;  %3264 = vmatmul.mubr.bf16.gmra.mrb[40].mxu1 %v3362_v51 }
  0x77   : > { %3203 = vmatprep.mubr.bf16.mxu0 %v3363_v52  ;;  %3267 = vmatprep.mubr.bf16.mxu1 %v3364_v53 }
  0x7e   : > { %3204 = vmatmul.mubr.bf16.gmra.mrb[44].mxu0 %v3365_v54  ;;  %3268 = vmatmul.mubr.bf16.gmra.mrb[44].mxu1 %v3366_v55 }
  0x7f   : > { %3207 = vmatprep.mubr.bf16.mxu0 %v3367_v56  ;;  %3271 = vmatprep.mubr.bf16.mxu1 %v3368_v57 }
  0x86   : > { %3208 = vmatmul.mubr.bf16.gmra.mrb[48].mxu0 %v3369_v58  ;;  %3272 = vmatmul.mubr.bf16.gmra.mrb[48].mxu1 %v3370_v59 }
  0x87   : > { %3211 = vmatprep.mubr.bf16.mxu0 %v3371_v60  ;;  %3275 = vmatprep.mubr.bf16.mxu1 %v3372_v61 }
  0x8e   : > { %3212 = vmatmul.mubr.bf16.gmra.mrb[52].mxu0 %v3373_v62  ;;  %3276 = vmatmul.mubr.bf16.gmra.mrb[52].mxu1 %v3374_v63 }
  0x8f   : > { %3215 = vmatprep.mubr.bf16.mxu0 %v3375_v0  ;;  %3279 = vmatprep.mubr.bf16.mxu1 %v3376_v1 }
  0x96   : > { %3216 = vmatmul.mubr.bf16.gmra.mrb[56].mxu0 %v3377_v2  ;;  %3280 = vmatmul.mubr.bf16.gmra.mrb[56].mxu1 %v3378_v3 }
  0x97   : > { %3219 = vmatprep.mubr.bf16.mxu0 %v3379_v4  ;;  %3283 = vmatprep.mubr.bf16.mxu1 %v3380_v5 }
  0x9e   : > { %3220 = vmatmul.mubr.bf16.gmra.mrb[60].mxu0 %v3381_v6  ;;  %3284 = vmatmul.mubr.bf16.gmra.mrb[60].mxu1 %v3382_v7 }
  0xf9   : > { %v3161_v8 = vpop.f32.mrb[0].mxu0  ;;  %v3225_v9 = vpop.f32.mrb[0].mxu1 }
  0xfa   : > { %vm1271_vm0 = vcmp.ge.f32.partialorder %v3161_v8, 0.0  ;;  %v1399_v10 = vmul.f32 0.2, %v3161_v8  ;;  %v1463_v11 = vmul.f32 0.2, %v3225_v9  ;;  %vm1335_vm1 = vcmp.ge.f32.partialorder %v3225_v9, 0.0 }
  0xfb   : > { %v758_v12 = vpop.f32.mrb[1].mxu0  ;;  %v1014_v13 = vpop.f32.mrb[1].mxu1 }
  0xfc   : > { %v1397_v14 = vmul.f32 0.2, %v758_v12  ;;  %v3162_v15 = vpop.f32.mrb[2].mxu0  ;;  %v3226_v16 = vpop.f32.mrb[2].mxu1  ;;  %v1527_v17 = vsel %vm1271_vm0, %v3161_v8, %v1399_v10  ;;  %v1461_v18 = vmul.f32 0.2, %v1014_v13  ;;  %v1591_v20 = vsel %vm1335_vm1, %v3225_v9, %v1463_v11 }
  0xfd   : > { %vm1272_vm2 = vcmp.ge.f32.partialorder %v3162_v15, 0.0  ;;  %v1400_v19 = vmul.f32 0.2, %v3162_v15  ;;  %vm1269_vm3 = vcmp.ge.f32.partialorder %v758_v12, 0.0  ;;  %vm1336_vm4 = vcmp.ge.f32.partialorder %v3226_v16, 0.0  ;;  %v761_v22 = vpop.f32.mrb[3].mxu0 }
  0xfe   : > { %v1464_v21 = vmul.f32 0.2, %v3226_v16  ;;  %v1017_v23 = vpop.f32.mrb[3].mxu1  ;;  %vm1333_vm5 = vcmp.ge.f32.partialorder %v1014_v13, 0.0  ;;  %vm1270_vm6 = vcmp.ge.f32.partialorder %v761_v22, 0.0  ;;  %v1525_v29 = vsel %vm1269_vm3, %v758_v12, %v1397_v14 }
  0xff   : > { %v1528_v24 = vsel %vm1272_vm2, %v3162_v15, %v1400_v19  ;;  %v1398_v25 = vmul.f32 0.2, %v761_v22  ;;  %vm1334_vm7 = vcmp.ge.f32.partialorder %v1017_v23, 0.0  ;;  %v1462_v28 = vmul.f32 0.2, %v1017_v23 }
 0x100   : > { %v2696_v26 = vpack.c.bf16 %v1528_v24, %v1527_v17  ;;  %v1592_v27 = vsel %vm1336_vm4, %v3226_v16, %v1464_v21  ;;  %v1589_v34 = vsel %vm1333_vm5, %v1014_v13, %v1461_v18 }
 0x101   : > { %v2856_v30 = vpack.c.bf16 %v1592_v27, %v1591_v20  ;;  %v1526_v31 = vsel %vm1270_vm6, %v761_v22, %v1398_v25  ;;  %v3165_v32 = vpop.f32.mrb[4].mxu0  ;;  %v3229_v33 = vpop.f32.mrb[4].mxu1  ;;  %v1590_v36 = vsel %vm1334_vm7, %v1017_v23, %v1462_v28 }
 0x102   : > { %3008 = vst [vmem:[%s3517_s6 + $0x8] sm:$0xff] %v2696_v26   ;;  %v2691_v35 = vpack.c.bf16 %v1526_v31, %v1525_v29  ;;  %v1403_v37 = vmul.f32 0.2, %v3165_v32  ;;  %v774_v38 = vpop.f32.mrb[5].mxu0  ;;  %v1030_v39 = vpop.f32.mrb[5].mxu1  ;;  %v2851_v40 = vpack.c.bf16 %v1590_v36, %v1589_v34  ;;  %vm1275_vm8 = vcmp.ge.f32.partialorder %v3165_v32, 0.0 }
 0x103   : > { %3040 = vst [vmem:[%s3517_s6 + $0x108] sm:$0xff] %v2856_v30   ;;  %v1467_v41 = vmul.f32 0.2, %v3229_v33  ;;  %v3166_v42 = vpop.f32.mrb[6].mxu0  ;;  %v3230_v43 = vpop.f32.mrb[6].mxu1  ;;  %vm1339_vm9 = vcmp.ge.f32.partialorder %v3229_v33, 0.0 }
 0x104   : > { %2692 = vst [vmem:[%s3517_s6] sm:$0xff] %v2691_v35   ;;  %v1401_v44 = vmul.f32 0.2, %v774_v38  ;;  %v1465_v45 = vmul.f32 0.2, %v1030_v39  ;;  %v777_v46 = vpop.f32.mrb[7].mxu0  ;;  %3039 = vst [vmem:[%s3517_s6 + $0x100] sm:$0xff] %v2851_v40   ;;  %v1531_v49 = vsel %vm1275_vm8, %v3165_v32, %v1403_v37 }
 0x105   : > { %vm1273_vm10 = vcmp.ge.f32.partialorder %v774_v38, 0.0  ;;  %vm1276_vm11 = vcmp.ge.f32.partialorder %v3166_v42, 0.0  ;;  %v1404_v47 = vmul.f32 0.2, %v3166_v42  ;;  %vm1340_vm12 = vcmp.ge.f32.partialorder %v3230_v43, 0.0  ;;  %v1033_v48 = vpop.f32.mrb[7].mxu1 }
 0x106   : > { %vm1337_vm13 = vcmp.ge.f32.partialorder %v1030_v39, 0.0  ;;  %v1468_v50 = vmul.f32 0.2, %v3230_v43  ;;  %vm1274_vm14 = vcmp.ge.f32.partialorder %v777_v46, 0.0  ;;  %v1402_v52 = vmul.f32 0.2, %v777_v46 }
 0x107   : > { %v1532_v51 = vsel %vm1276_vm11, %v3166_v42, %v1404_v47  ;;  %vm1338_vm15 = vcmp.ge.f32.partialorder %v1033_v48, 0.0  ;;  %v1466_v53 = vmul.f32 0.2, %v1033_v48  ;;  %v1595_v54 = vsel %vm1339_vm9, %v3229_v33, %v1467_v41 }
 0x108   : > { %v1529_v55 = vsel %vm1273_vm10, %v774_v38, %v1401_v44  ;;  %v2706_v56 = vpack.c.bf16 %v1532_v51, %v1531_v49  ;;  %v1596_v57 = vsel %vm1340_vm12, %v3230_v43, %v1468_v50  ;;  %v1593_v58 = vsel %vm1337_vm13, %v1030_v39, %v1465_v45 }
 0x109   : > { %v2866_v59 = vpack.c.bf16 %v1596_v57, %v1595_v54  ;;  %v1530_v60 = vsel %vm1274_vm14, %v777_v46, %v1402_v52  ;;  %v1594_v61 = vsel %vm1338_vm15, %v1033_v48, %v1466_v53  ;;  %v3169_v62 = vpop.f32.mrb[8].mxu0  ;;  %v3233_v63 = vpop.f32.mrb[8].mxu1 }
 0x10a   : > { %3010 = vst [vmem:[%s3517_s6 + $0x18] sm:$0xff] %v2706_v56   ;;  %v2701_v0 = vpack.c.bf16 %v1530_v60, %v1529_v55  ;;  %v2861_v1 = vpack.c.bf16 %v1594_v61, %v1593_v58  ;;  %vm1279_vm0 = vcmp.ge.f32.partialorder %v3169_v62, 0.0  ;;  %v1407_v2 = vmul.f32 0.2, %v3169_v62  ;;  %v790_v3 = vpop.f32.mrb[9].mxu0  ;;  %v1046_v4 = vpop.f32.mrb[9].mxu1 }
 0x10b   : > { %3042 = vst [vmem:[%s3517_s6 + $0x118] sm:$0xff] %v2866_v59   ;;  %vm1343_vm1 = vcmp.ge.f32.partialorder %v3233_v63, 0.0  ;;  %v1471_v5 = vmul.f32 0.2, %v3233_v63  ;;  %v1405_v6 = vmul.f32 0.2, %v790_v3 }
 0x10c   : > { %3009 = vst [vmem:[%s3517_s6 + $0x10] sm:$0xff] %v2701_v0   ;;  %3041 = vst [vmem:[%s3517_s6 + $0x110] sm:$0xff] %v2861_v1   ;;  %v1469_v7 = vmul.f32 0.2, %v1046_v4  ;;  %v3170_v8 = vpop.f32.mrb[10].mxu0  ;;  %v3234_v9 = vpop.f32.mrb[10].mxu1  ;;  %v1535_v10 = vsel %vm1279_vm0, %v3169_v62, %v1407_v2 }
 0x10d   : > { %vm1277_vm2 = vcmp.ge.f32.partialorder %v790_v3, 0.0  ;;  %vm1280_vm3 = vcmp.ge.f32.partialorder %v3170_v8, 0.0  ;;  %v1408_v11 = vmul.f32 0.2, %v3170_v8  ;;  %v793_v12 = vpop.f32.mrb[11].mxu0  ;;  %v1049_v13 = vpop.f32.mrb[11].mxu1  ;;  %v1599_v18 = vsel %vm1343_vm1, %v3233_v63, %v1471_v5 }
 0x10e   : > { %vm1341_vm4 = vcmp.ge.f32.partialorder %v1046_v4, 0.0  ;;  %vm1344_vm5 = vcmp.ge.f32.partialorder %v3234_v9, 0.0  ;;  %v1472_v14 = vmul.f32 0.2, %v3234_v9  ;;  %vm1278_vm6 = vcmp.ge.f32.partialorder %v793_v12, 0.0 }
 0x10f   : > { %v1536_v15 = vsel %vm1280_vm3, %v3170_v8, %v1408_v11  ;;  %v1406_v16 = vmul.f32 0.2, %v793_v12  ;;  %vm1342_vm7 = vcmp.ge.f32.partialorder %v1049_v13, 0.0  ;;  %v1470_v17 = vmul.f32 0.2, %v1049_v13 }
 0x110   : > { %v1533_v19 = vsel %vm1277_vm2, %v790_v3, %v1405_v6  ;;  %v2716_v20 = vpack.c.bf16 %v1536_v15, %v1535_v10  ;;  %v1600_v21 = vsel %vm1344_vm5, %v3234_v9, %v1472_v14  ;;  %v1597_v22 = vsel %vm1341_vm4, %v1046_v4, %v1469_v7 }
 0x111   : > { %v2876_v23 = vpack.c.bf16 %v1600_v21, %v1599_v18  ;;  %v1534_v24 = vsel %vm1278_vm6, %v793_v12, %v1406_v16  ;;  %v1598_v25 = vsel %vm1342_vm7, %v1049_v13, %v1470_v17  ;;  %v3173_v26 = vpop.f32.mrb[12].mxu0  ;;  %v3237_v27 = vpop.f32.mrb[12].mxu1 }
 0x112   : > { %3012 = vst [vmem:[%s3517_s6 + $0x28] sm:$0xff] %v2716_v20   ;;  %v2711_v28 = vpack.c.bf16 %v1534_v24, %v1533_v19  ;;  %v2871_v29 = vpack.c.bf16 %v1598_v25, %v1597_v22  ;;  %vm1283_vm8 = vcmp.ge.f32.partialorder %v3173_v26, 0.0  ;;  %v1411_v30 = vmul.f32 0.2, %v3173_v26  ;;  %v806_v31 = vpop.f32.mrb[13].mxu0  ;;  %v1062_v32 = vpop.f32.mrb[13].mxu1 }
 0x113   : > { %3044 = vst [vmem:[%s3517_s6 + $0x128] sm:$0xff] %v2876_v23   ;;  %vm1347_vm9 = vcmp.ge.f32.partialorder %v3237_v27, 0.0  ;;  %v1475_v33 = vmul.f32 0.2, %v3237_v27  ;;  %v1409_v34 = vmul.f32 0.2, %v806_v31 }
 0x114   : > { %3011 = vst [vmem:[%s3517_s6 + $0x20] sm:$0xff] %v2711_v28   ;;  %3043 = vst [vmem:[%s3517_s6 + $0x120] sm:$0xff] %v2871_v29   ;;  %v1473_v35 = vmul.f32 0.2, %v1062_v32  ;;  %v3174_v36 = vpop.f32.mrb[14].mxu0  ;;  %v3238_v37 = vpop.f32.mrb[14].mxu1  ;;  %v1539_v38 = vsel %vm1283_vm8, %v3173_v26, %v1411_v30 }
 0x115   : > { %vm1281_vm10 = vcmp.ge.f32.partialorder %v806_v31, 0.0  ;;  %vm1284_vm11 = vcmp.ge.f32.partialorder %v3174_v36, 0.0  ;;  %v1412_v39 = vmul.f32 0.2, %v3174_v36  ;;  %v809_v40 = vpop.f32.mrb[15].mxu0  ;;  %v1065_v41 = vpop.f32.mrb[15].mxu1  ;;  %v1603_v46 = vsel %vm1347_vm9, %v3237_v27, %v1475_v33 }
 0x116   : > { %vm1345_vm12 = vcmp.ge.f32.partialorder %v1062_v32, 0.0  ;;  %vm1348_vm13 = vcmp.ge.f32.partialorder %v3238_v37, 0.0  ;;  %v1476_v42 = vmul.f32 0.2, %v3238_v37  ;;  %vm1282_vm14 = vcmp.ge.f32.partialorder %v809_v40, 0.0 }
 0x117   : > { %v1540_v43 = vsel %vm1284_vm11, %v3174_v36, %v1412_v39  ;;  %v1410_v44 = vmul.f32 0.2, %v809_v40  ;;  %vm1346_vm15 = vcmp.ge.f32.partialorder %v1065_v41, 0.0  ;;  %v1474_v45 = vmul.f32 0.2, %v1065_v41 }
 0x118   : > { %v1537_v47 = vsel %vm1281_vm10, %v806_v31, %v1409_v34  ;;  %v2726_v48 = vpack.c.bf16 %v1540_v43, %v1539_v38  ;;  %v1604_v49 = vsel %vm1348_vm13, %v3238_v37, %v1476_v42  ;;  %v1601_v50 = vsel %vm1345_vm12, %v1062_v32, %v1473_v35 }
 0x119   : > { %v2886_v51 = vpack.c.bf16 %v1604_v49, %v1603_v46  ;;  %v1538_v52 = vsel %vm1282_vm14, %v809_v40, %v1410_v44  ;;  %v1602_v53 = vsel %vm1346_vm15, %v1065_v41, %v1474_v45  ;;  %v3177_v54 = vpop.f32.mrb[16].mxu0  ;;  %v3241_v55 = vpop.f32.mrb[16].mxu1 }
 0x11a   : > { %3014 = vst [vmem:[%s3517_s6 + $0x38] sm:$0xff] %v2726_v48   ;;  %v2721_v56 = vpack.c.bf16 %v1538_v52, %v1537_v47  ;;  %v2881_v57 = vpack.c.bf16 %v1602_v53, %v1601_v50  ;;  %vm1287_vm0 = vcmp.ge.f32.partialorder %v3177_v54, 0.0  ;;  %v1415_v58 = vmul.f32 0.2, %v3177_v54  ;;  %v822_v59 = vpop.f32.mrb[17].mxu0  ;;  %v1078_v60 = vpop.f32.mrb[17].mxu1 }
 0x11b   : > { %3046 = vst [vmem:[%s3517_s6 + $0x138] sm:$0xff] %v2886_v51   ;;  %vm1351_vm1 = vcmp.ge.f32.partialorder %v3241_v55, 0.0  ;;  %v1479_v61 = vmul.f32 0.2, %v3241_v55  ;;  %v1413_v62 = vmul.f32 0.2, %v822_v59 }
 0x11c   : > { %3013 = vst [vmem:[%s3517_s6 + $0x30] sm:$0xff] %v2721_v56   ;;  %3045 = vst [vmem:[%s3517_s6 + $0x130] sm:$0xff] %v2881_v57   ;;  %v1477_v63 = vmul.f32 0.2, %v1078_v60  ;;  %v3178_v0 = vpop.f32.mrb[18].mxu0  ;;  %v3242_v1 = vpop.f32.mrb[18].mxu1  ;;  %v1543_v2 = vsel %vm1287_vm0, %v3177_v54, %v1415_v58 }
 0x11d   : > { %vm1285_vm2 = vcmp.ge.f32.partialorder %v822_v59, 0.0  ;;  %vm1288_vm3 = vcmp.ge.f32.partialorder %v3178_v0, 0.0  ;;  %v1416_v3 = vmul.f32 0.2, %v3178_v0  ;;  %v825_v4 = vpop.f32.mrb[19].mxu0  ;;  %v1081_v5 = vpop.f32.mrb[19].mxu1  ;;  %v1607_v10 = vsel %vm1351_vm1, %v3241_v55, %v1479_v61 }
 0x11e   : > { %vm1349_vm4 = vcmp.ge.f32.partialorder %v1078_v60, 0.0  ;;  %vm1352_vm5 = vcmp.ge.f32.partialorder %v3242_v1, 0.0  ;;  %v1480_v6 = vmul.f32 0.2, %v3242_v1  ;;  %vm1286_vm6 = vcmp.ge.f32.partialorder %v825_v4, 0.0 }
 0x11f   : > { %v1544_v7 = vsel %vm1288_vm3, %v3178_v0, %v1416_v3  ;;  %v1414_v8 = vmul.f32 0.2, %v825_v4  ;;  %vm1350_vm7 = vcmp.ge.f32.partialorder %v1081_v5, 0.0  ;;  %v1478_v9 = vmul.f32 0.2, %v1081_v5 }
 0x120   : > { %v1541_v11 = vsel %vm1285_vm2, %v822_v59, %v1413_v62  ;;  %v2736_v12 = vpack.c.bf16 %v1544_v7, %v1543_v2  ;;  %v1608_v13 = vsel %vm1352_vm5, %v3242_v1, %v1480_v6  ;;  %v1605_v14 = vsel %vm1349_vm4, %v1078_v60, %v1477_v63 }
 0x121   : > { %v2896_v15 = vpack.c.bf16 %v1608_v13, %v1607_v10  ;;  %v1542_v16 = vsel %vm1286_vm6, %v825_v4, %v1414_v8  ;;  %v1606_v17 = vsel %vm1350_vm7, %v1081_v5, %v1478_v9  ;;  %v3181_v18 = vpop.f32.mrb[20].mxu0  ;;  %v3245_v19 = vpop.f32.mrb[20].mxu1 }
 0x122   : > { %3016 = vst [vmem:[%s3517_s6 + $0x48] sm:$0xff] %v2736_v12   ;;  %v2731_v20 = vpack.c.bf16 %v1542_v16, %v1541_v11  ;;  %v2891_v21 = vpack.c.bf16 %v1606_v17, %v1605_v14  ;;  %vm1291_vm8 = vcmp.ge.f32.partialorder %v3181_v18, 0.0  ;;  %v1419_v22 = vmul.f32 0.2, %v3181_v18  ;;  %v838_v23 = vpop.f32.mrb[21].mxu0  ;;  %v1094_v24 = vpop.f32.mrb[21].mxu1 }
 0x123   : > { %3048 = vst [vmem:[%s3517_s6 + $0x148] sm:$0xff] %v2896_v15   ;;  %vm1355_vm9 = vcmp.ge.f32.partialorder %v3245_v19, 0.0  ;;  %v1483_v25 = vmul.f32 0.2, %v3245_v19  ;;  %v1417_v26 = vmul.f32 0.2, %v838_v23 }
 0x124   : > { %3015 = vst [vmem:[%s3517_s6 + $0x40] sm:$0xff] %v2731_v20   ;;  %3047 = vst [vmem:[%s3517_s6 + $0x140] sm:$0xff] %v2891_v21   ;;  %v1481_v27 = vmul.f32 0.2, %v1094_v24  ;;  %v3182_v28 = vpop.f32.mrb[22].mxu0  ;;  %v3246_v29 = vpop.f32.mrb[22].mxu1  ;;  %v1547_v30 = vsel %vm1291_vm8, %v3181_v18, %v1419_v22 }
 0x125   : > { %vm1289_vm10 = vcmp.ge.f32.partialorder %v838_v23, 0.0  ;;  %vm1292_vm11 = vcmp.ge.f32.partialorder %v3182_v28, 0.0  ;;  %v1420_v31 = vmul.f32 0.2, %v3182_v28  ;;  %v841_v32 = vpop.f32.mrb[23].mxu0  ;;  %v1097_v33 = vpop.f32.mrb[23].mxu1  ;;  %v1611_v38 = vsel %vm1355_vm9, %v3245_v19, %v1483_v25 }
 0x126   : > { %vm1353_vm12 = vcmp.ge.f32.partialorder %v1094_v24, 0.0  ;;  %vm1356_vm13 = vcmp.ge.f32.partialorder %v3246_v29, 0.0  ;;  %v1484_v34 = vmul.f32 0.2, %v3246_v29  ;;  %vm1290_vm14 = vcmp.ge.f32.partialorder %v841_v32, 0.0 }
 0x127   : > { %v1548_v35 = vsel %vm1292_vm11, %v3182_v28, %v1420_v31  ;;  %v1418_v36 = vmul.f32 0.2, %v841_v32  ;;  %vm1354_vm15 = vcmp.ge.f32.partialorder %v1097_v33, 0.0  ;;  %v1482_v37 = vmul.f32 0.2, %v1097_v33 }
 0x128   : > { %v1545_v39 = vsel %vm1289_vm10, %v838_v23, %v1417_v26  ;;  %v2746_v40 = vpack.c.bf16 %v1548_v35, %v1547_v30  ;;  %v1612_v41 = vsel %vm1356_vm13, %v3246_v29, %v1484_v34  ;;  %v1609_v42 = vsel %vm1353_vm12, %v1094_v24, %v1481_v27 }
 0x129   : > { %v2906_v43 = vpack.c.bf16 %v1612_v41, %v1611_v38  ;;  %v1546_v44 = vsel %vm1290_vm14, %v841_v32, %v1418_v36  ;;  %v1610_v45 = vsel %vm1354_vm15, %v1097_v33, %v1482_v37  ;;  %v3185_v46 = vpop.f32.mrb[24].mxu0  ;;  %v3249_v47 = vpop.f32.mrb[24].mxu1 }
 0x12a   : > { %3018 = vst [vmem:[%s3517_s6 + $0x58] sm:$0xff] %v2746_v40   ;;  %v2741_v48 = vpack.c.bf16 %v1546_v44, %v1545_v39  ;;  %v2901_v49 = vpack.c.bf16 %v1610_v45, %v1609_v42  ;;  %vm1295_vm0 = vcmp.ge.f32.partialorder %v3185_v46, 0.0  ;;  %v1423_v50 = vmul.f32 0.2, %v3185_v46  ;;  %v854_v51 = vpop.f32.mrb[25].mxu0  ;;  %v1110_v52 = vpop.f32.mrb[25].mxu1 }
 0x12b   : > { %3050 = vst [vmem:[%s3517_s6 + $0x158] sm:$0xff] %v2906_v43   ;;  %vm1359_vm1 = vcmp.ge.f32.partialorder %v3249_v47, 0.0  ;;  %v1487_v53 = vmul.f32 0.2, %v3249_v47  ;;  %v1421_v54 = vmul.f32 0.2, %v854_v51 }
 0x12c   : > { %3017 = vst [vmem:[%s3517_s6 + $0x50] sm:$0xff] %v2741_v48   ;;  %3049 = vst [vmem:[%s3517_s6 + $0x150] sm:$0xff] %v2901_v49   ;;  %v1485_v55 = vmul.f32 0.2, %v1110_v52  ;;  %v3186_v56 = vpop.f32.mrb[26].mxu0  ;;  %v3250_v57 = vpop.f32.mrb[26].mxu1  ;;  %v1551_v58 = vsel %vm1295_vm0, %v3185_v46, %v1423_v50 }
 0x12d   : > { %vm1293_vm2 = vcmp.ge.f32.partialorder %v854_v51, 0.0  ;;  %vm1296_vm3 = vcmp.ge.f32.partialorder %v3186_v56, 0.0  ;;  %v1424_v59 = vmul.f32 0.2, %v3186_v56  ;;  %v857_v60 = vpop.f32.mrb[27].mxu0  ;;  %v1113_v61 = vpop.f32.mrb[27].mxu1  ;;  %v1615_v2 = vsel %vm1359_vm1, %v3249_v47, %v1487_v53 }
 0x12e   : > { %vm1357_vm4 = vcmp.ge.f32.partialorder %v1110_v52, 0.0  ;;  %vm1360_vm5 = vcmp.ge.f32.partialorder %v3250_v57, 0.0  ;;  %v1488_v62 = vmul.f32 0.2, %v3250_v57  ;;  %vm1294_vm6 = vcmp.ge.f32.partialorder %v857_v60, 0.0 }
 0x12f   : > { %v1552_v63 = vsel %vm1296_vm3, %v3186_v56, %v1424_v59  ;;  %v1422_v0 = vmul.f32 0.2, %v857_v60  ;;  %vm1358_vm7 = vcmp.ge.f32.partialorder %v1113_v61, 0.0  ;;  %v1486_v1 = vmul.f32 0.2, %v1113_v61 }
 0x130   : > { %v1549_v3 = vsel %vm1293_vm2, %v854_v51, %v1421_v54  ;;  %v2756_v4 = vpack.c.bf16 %v1552_v63, %v1551_v58  ;;  %v1616_v5 = vsel %vm1360_vm5, %v3250_v57, %v1488_v62  ;;  %v1613_v6 = vsel %vm1357_vm4, %v1110_v52, %v1485_v55 }
 0x131   : > { %v2916_v7 = vpack.c.bf16 %v1616_v5, %v1615_v2  ;;  %v1550_v8 = vsel %vm1294_vm6, %v857_v60, %v1422_v0  ;;  %v1614_v9 = vsel %vm1358_vm7, %v1113_v61, %v1486_v1  ;;  %v3189_v10 = vpop.f32.mrb[28].mxu0  ;;  %v3253_v11 = vpop.f32.mrb[28].mxu1 }
 0x132   : > { %3020 = vst [vmem:[%s3517_s6 + $0x68] sm:$0xff] %v2756_v4   ;;  %v2751_v12 = vpack.c.bf16 %v1550_v8, %v1549_v3  ;;  %v2911_v13 = vpack.c.bf16 %v1614_v9, %v1613_v6  ;;  %vm1299_vm8 = vcmp.ge.f32.partialorder %v3189_v10, 0.0  ;;  %v1427_v14 = vmul.f32 0.2, %v3189_v10  ;;  %v870_v15 = vpop.f32.mrb[29].mxu0  ;;  %v1126_v16 = vpop.f32.mrb[29].mxu1 }
 0x133   : > { %3052 = vst [vmem:[%s3517_s6 + $0x168] sm:$0xff] %v2916_v7   ;;  %vm1363_vm9 = vcmp.ge.f32.partialorder %v3253_v11, 0.0  ;;  %v1491_v17 = vmul.f32 0.2, %v3253_v11  ;;  %v1425_v18 = vmul.f32 0.2, %v870_v15 }
 0x134   : > { %3019 = vst [vmem:[%s3517_s6 + $0x60] sm:$0xff] %v2751_v12   ;;  %3051 = vst [vmem:[%s3517_s6 + $0x160] sm:$0xff] %v2911_v13   ;;  %v1489_v19 = vmul.f32 0.2, %v1126_v16  ;;  %v3190_v20 = vpop.f32.mrb[30].mxu0  ;;  %v3254_v21 = vpop.f32.mrb[30].mxu1  ;;  %v1555_v22 = vsel %vm1299_vm8, %v3189_v10, %v1427_v14 }
 0x135   : > { %vm1297_vm10 = vcmp.ge.f32.partialorder %v870_v15, 0.0  ;;  %vm1300_vm11 = vcmp.ge.f32.partialorder %v3190_v20, 0.0  ;;  %v1428_v23 = vmul.f32 0.2, %v3190_v20  ;;  %v873_v24 = vpop.f32.mrb[31].mxu0  ;;  %v1129_v25 = vpop.f32.mrb[31].mxu1  ;;  %v1619_v30 = vsel %vm1363_vm9, %v3253_v11, %v1491_v17 }
 0x136   : > { %vm1361_vm12 = vcmp.ge.f32.partialorder %v1126_v16, 0.0  ;;  %vm1364_vm13 = vcmp.ge.f32.partialorder %v3254_v21, 0.0  ;;  %v1492_v26 = vmul.f32 0.2, %v3254_v21  ;;  %vm1298_vm14 = vcmp.ge.f32.partialorder %v873_v24, 0.0 }
 0x137   : > { %v1556_v27 = vsel %vm1300_vm11, %v3190_v20, %v1428_v23  ;;  %v1426_v28 = vmul.f32 0.2, %v873_v24  ;;  %vm1362_vm15 = vcmp.ge.f32.partialorder %v1129_v25, 0.0  ;;  %v1490_v29 = vmul.f32 0.2, %v1129_v25 }
 0x138   : > { %v1553_v31 = vsel %vm1297_vm10, %v870_v15, %v1425_v18  ;;  %v2766_v32 = vpack.c.bf16 %v1556_v27, %v1555_v22  ;;  %v1620_v33 = vsel %vm1364_vm13, %v3254_v21, %v1492_v26  ;;  %v1617_v34 = vsel %vm1361_vm12, %v1126_v16, %v1489_v19 }
 0x139   : > { %v2926_v35 = vpack.c.bf16 %v1620_v33, %v1619_v30  ;;  %v1554_v36 = vsel %vm1298_vm14, %v873_v24, %v1426_v28  ;;  %v1618_v37 = vsel %vm1362_vm15, %v1129_v25, %v1490_v29  ;;  %v3193_v38 = vpop.f32.mrb[32].mxu0  ;;  %v3257_v39 = vpop.f32.mrb[32].mxu1 }
 0x13a   : > { %3022 = vst [vmem:[%s3517_s6 + $0x78] sm:$0xff] %v2766_v32   ;;  %v2761_v40 = vpack.c.bf16 %v1554_v36, %v1553_v31  ;;  %v2921_v41 = vpack.c.bf16 %v1618_v37, %v1617_v34  ;;  %vm1303_vm0 = vcmp.ge.f32.partialorder %v3193_v38, 0.0  ;;  %v1431_v42 = vmul.f32 0.2, %v3193_v38  ;;  %v886_v43 = vpop.f32.mrb[33].mxu0  ;;  %v1142_v44 = vpop.f32.mrb[33].mxu1 }
 0x13b   : > { %3054 = vst [vmem:[%s3517_s6 + $0x178] sm:$0xff] %v2926_v35   ;;  %vm1367_vm1 = vcmp.ge.f32.partialorder %v3257_v39, 0.0  ;;  %v1495_v45 = vmul.f32 0.2, %v3257_v39  ;;  %v1429_v46 = vmul.f32 0.2, %v886_v43 }
 0x13c   : > { %3021 = vst [vmem:[%s3517_s6 + $0x70] sm:$0xff] %v2761_v40   ;;  %3053 = vst [vmem:[%s3517_s6 + $0x170] sm:$0xff] %v2921_v41   ;;  %v1493_v47 = vmul.f32 0.2, %v1142_v44  ;;  %v3194_v48 = vpop.f32.mrb[34].mxu0  ;;  %v3258_v49 = vpop.f32.mrb[34].mxu1  ;;  %v1559_v50 = vsel %vm1303_vm0, %v3193_v38, %v1431_v42 }
 0x13d   : > { %vm1301_vm2 = vcmp.ge.f32.partialorder %v886_v43, 0.0  ;;  %vm1304_vm3 = vcmp.ge.f32.partialorder %v3194_v48, 0.0  ;;  %v1432_v51 = vmul.f32 0.2, %v3194_v48  ;;  %v889_v52 = vpop.f32.mrb[35].mxu0  ;;  %v1145_v53 = vpop.f32.mrb[35].mxu1  ;;  %v1623_v58 = vsel %vm1367_vm1, %v3257_v39, %v1495_v45 }
 0x13e   : > { %vm1365_vm4 = vcmp.ge.f32.partialorder %v1142_v44, 0.0  ;;  %vm1368_vm5 = vcmp.ge.f32.partialorder %v3258_v49, 0.0  ;;  %v1496_v54 = vmul.f32 0.2, %v3258_v49  ;;  %vm1302_vm6 = vcmp.ge.f32.partialorder %v889_v52, 0.0 }
 0x13f   : > { %v1560_v55 = vsel %vm1304_vm3, %v3194_v48, %v1432_v51  ;;  %v1430_v56 = vmul.f32 0.2, %v889_v52  ;;  %vm1366_vm7 = vcmp.ge.f32.partialorder %v1145_v53, 0.0  ;;  %v1494_v57 = vmul.f32 0.2, %v1145_v53 }
 0x140   : > { %v1557_v59 = vsel %vm1301_vm2, %v886_v43, %v1429_v46  ;;  %v2776_v60 = vpack.c.bf16 %v1560_v55, %v1559_v50  ;;  %v1624_v61 = vsel %vm1368_vm5, %v3258_v49, %v1496_v54  ;;  %v1621_v62 = vsel %vm1365_vm4, %v1142_v44, %v1493_v47 }
 0x141   : > { %v2936_v63 = vpack.c.bf16 %v1624_v61, %v1623_v58  ;;  %v1558_v0 = vsel %vm1302_vm6, %v889_v52, %v1430_v56  ;;  %v1622_v1 = vsel %vm1366_vm7, %v1145_v53, %v1494_v57  ;;  %v3197_v2 = vpop.f32.mrb[36].mxu0  ;;  %v3261_v3 = vpop.f32.mrb[36].mxu1 }
 0x142   : > { %3024 = vst [vmem:[%s3517_s6 + $0x88] sm:$0xff] %v2776_v60   ;;  %v2771_v4 = vpack.c.bf16 %v1558_v0, %v1557_v59  ;;  %v2931_v5 = vpack.c.bf16 %v1622_v1, %v1621_v62  ;;  %vm1307_vm8 = vcmp.ge.f32.partialorder %v3197_v2, 0.0  ;;  %v1435_v6 = vmul.f32 0.2, %v3197_v2  ;;  %v902_v7 = vpop.f32.mrb[37].mxu0  ;;  %v1158_v8 = vpop.f32.mrb[37].mxu1 }
 0x143   : > { %3056 = vst [vmem:[%s3517_s6 + $0x188] sm:$0xff] %v2936_v63   ;;  %vm1371_vm9 = vcmp.ge.f32.partialorder %v3261_v3, 0.0  ;;  %v1499_v9 = vmul.f32 0.2, %v3261_v3  ;;  %v1433_v10 = vmul.f32 0.2, %v902_v7 }
 0x144   : > { %3023 = vst [vmem:[%s3517_s6 + $0x80] sm:$0xff] %v2771_v4   ;;  %3055 = vst [vmem:[%s3517_s6 + $0x180] sm:$0xff] %v2931_v5   ;;  %v1497_v11 = vmul.f32 0.2, %v1158_v8  ;;  %v3198_v12 = vpop.f32.mrb[38].mxu0  ;;  %v3262_v13 = vpop.f32.mrb[38].mxu1  ;;  %v1563_v14 = vsel %vm1307_vm8, %v3197_v2, %v1435_v6 }
 0x145   : > { %vm1305_vm10 = vcmp.ge.f32.partialorder %v902_v7, 0.0  ;;  %vm1308_vm11 = vcmp.ge.f32.partialorder %v3198_v12, 0.0  ;;  %v1436_v15 = vmul.f32 0.2, %v3198_v12  ;;  %v905_v16 = vpop.f32.mrb[39].mxu0  ;;  %v1161_v17 = vpop.f32.mrb[39].mxu1  ;;  %v1627_v22 = vsel %vm1371_vm9, %v3261_v3, %v1499_v9 }
 0x146   : > { %vm1369_vm12 = vcmp.ge.f32.partialorder %v1158_v8, 0.0  ;;  %vm1372_vm13 = vcmp.ge.f32.partialorder %v3262_v13, 0.0  ;;  %v1500_v18 = vmul.f32 0.2, %v3262_v13  ;;  %vm1306_vm14 = vcmp.ge.f32.partialorder %v905_v16, 0.0 }
 0x147   : > { %v1564_v19 = vsel %vm1308_vm11, %v3198_v12, %v1436_v15  ;;  %v1434_v20 = vmul.f32 0.2, %v905_v16  ;;  %vm1370_vm15 = vcmp.ge.f32.partialorder %v1161_v17, 0.0  ;;  %v1498_v21 = vmul.f32 0.2, %v1161_v17 }
 0x148   : > { %v1561_v23 = vsel %vm1305_vm10, %v902_v7, %v1433_v10  ;;  %v2786_v24 = vpack.c.bf16 %v1564_v19, %v1563_v14  ;;  %v1628_v25 = vsel %vm1372_vm13, %v3262_v13, %v1500_v18  ;;  %v1625_v26 = vsel %vm1369_vm12, %v1158_v8, %v1497_v11 }
 0x149   : > { %v2946_v27 = vpack.c.bf16 %v1628_v25, %v1627_v22  ;;  %v1562_v28 = vsel %vm1306_vm14, %v905_v16, %v1434_v20  ;;  %v1626_v29 = vsel %vm1370_vm15, %v1161_v17, %v1498_v21  ;;  %v3201_v30 = vpop.f32.mrb[40].mxu0  ;;  %v3265_v31 = vpop.f32.mrb[40].mxu1 }
 0x14a   : > { %3026 = vst [vmem:[%s3517_s6 + $0x98] sm:$0xff] %v2786_v24   ;;  %v2781_v32 = vpack.c.bf16 %v1562_v28, %v1561_v23  ;;  %v2941_v33 = vpack.c.bf16 %v1626_v29, %v1625_v26  ;;  %vm1311_vm0 = vcmp.ge.f32.partialorder %v3201_v30, 0.0  ;;  %v1439_v34 = vmul.f32 0.2, %v3201_v30  ;;  %v918_v35 = vpop.f32.mrb[41].mxu0  ;;  %v1174_v36 = vpop.f32.mrb[41].mxu1 }
 0x14b   : > { %3058 = vst [vmem:[%s3517_s6 + $0x198] sm:$0xff] %v2946_v27   ;;  %vm1375_vm1 = vcmp.ge.f32.partialorder %v3265_v31, 0.0  ;;  %v1503_v37 = vmul.f32 0.2, %v3265_v31  ;;  %v1437_v38 = vmul.f32 0.2, %v918_v35 }
 0x14c   : > { %3025 = vst [vmem:[%s3517_s6 + $0x90] sm:$0xff] %v2781_v32   ;;  %3057 = vst [vmem:[%s3517_s6 + $0x190] sm:$0xff] %v2941_v33   ;;  %v1501_v39 = vmul.f32 0.2, %v1174_v36  ;;  %v3202_v40 = vpop.f32.mrb[42].mxu0  ;;  %v3266_v41 = vpop.f32.mrb[42].mxu1  ;;  %v1567_v42 = vsel %vm1311_vm0, %v3201_v30, %v1439_v34 }
 0x14d   : > { %vm1309_vm2 = vcmp.ge.f32.partialorder %v918_v35, 0.0  ;;  %vm1312_vm3 = vcmp.ge.f32.partialorder %v3202_v40, 0.0  ;;  %v1440_v43 = vmul.f32 0.2, %v3202_v40  ;;  %v921_v44 = vpop.f32.mrb[43].mxu0  ;;  %v1177_v45 = vpop.f32.mrb[43].mxu1  ;;  %v1631_v50 = vsel %vm1375_vm1, %v3265_v31, %v1503_v37 }
 0x14e   : > { %vm1373_vm4 = vcmp.ge.f32.partialorder %v1174_v36, 0.0  ;;  %vm1376_vm5 = vcmp.ge.f32.partialorder %v3266_v41, 0.0  ;;  %v1504_v46 = vmul.f32 0.2, %v3266_v41  ;;  %vm1310_vm6 = vcmp.ge.f32.partialorder %v921_v44, 0.0 }
 0x14f   : > { %v1568_v47 = vsel %vm1312_vm3, %v3202_v40, %v1440_v43  ;;  %v1438_v48 = vmul.f32 0.2, %v921_v44  ;;  %vm1374_vm7 = vcmp.ge.f32.partialorder %v1177_v45, 0.0  ;;  %v1502_v49 = vmul.f32 0.2, %v1177_v45 }
 0x150   : > { %v1565_v51 = vsel %vm1309_vm2, %v918_v35, %v1437_v38  ;;  %v2796_v52 = vpack.c.bf16 %v1568_v47, %v1567_v42  ;;  %v1632_v53 = vsel %vm1376_vm5, %v3266_v41, %v1504_v46  ;;  %v1629_v54 = vsel %vm1373_vm4, %v1174_v36, %v1501_v39 }
 0x151   : > { %v2956_v55 = vpack.c.bf16 %v1632_v53, %v1631_v50  ;;  %v1566_v56 = vsel %vm1310_vm6, %v921_v44, %v1438_v48  ;;  %v1630_v57 = vsel %vm1374_vm7, %v1177_v45, %v1502_v49  ;;  %v3205_v58 = vpop.f32.mrb[44].mxu0  ;;  %v3269_v59 = vpop.f32.mrb[44].mxu1 }
 0x152   : > { %3028 = vst [vmem:[%s3517_s6 + $0xa8] sm:$0xff] %v2796_v52   ;;  %v2791_v60 = vpack.c.bf16 %v1566_v56, %v1565_v51  ;;  %v2951_v61 = vpack.c.bf16 %v1630_v57, %v1629_v54  ;;  %vm1315_vm8 = vcmp.ge.f32.partialorder %v3205_v58, 0.0  ;;  %v1443_v62 = vmul.f32 0.2, %v3205_v58  ;;  %v934_v63 = vpop.f32.mrb[45].mxu0  ;;  %v1190_v0 = vpop.f32.mrb[45].mxu1 }
 0x153   : > { %3060 = vst [vmem:[%s3517_s6 + $0x1a8] sm:$0xff] %v2956_v55   ;;  %vm1379_vm9 = vcmp.ge.f32.partialorder %v3269_v59, 0.0  ;;  %v1507_v1 = vmul.f32 0.2, %v3269_v59  ;;  %v1441_v2 = vmul.f32 0.2, %v934_v63 }
 0x154   : > { %3027 = vst [vmem:[%s3517_s6 + $0xa0] sm:$0xff] %v2791_v60   ;;  %3059 = vst [vmem:[%s3517_s6 + $0x1a0] sm:$0xff] %v2951_v61   ;;  %v1505_v3 = vmul.f32 0.2, %v1190_v0  ;;  %v3206_v4 = vpop.f32.mrb[46].mxu0  ;;  %v3270_v5 = vpop.f32.mrb[46].mxu1  ;;  %v1571_v6 = vsel %vm1315_vm8, %v3205_v58, %v1443_v62 }
 0x155   : > { %vm1313_vm10 = vcmp.ge.f32.partialorder %v934_v63, 0.0  ;;  %vm1316_vm11 = vcmp.ge.f32.partialorder %v3206_v4, 0.0  ;;  %v1444_v7 = vmul.f32 0.2, %v3206_v4  ;;  %v937_v8 = vpop.f32.mrb[47].mxu0  ;;  %v1193_v9 = vpop.f32.mrb[47].mxu1  ;;  %v1635_v14 = vsel %vm1379_vm9, %v3269_v59, %v1507_v1 }
 0x156   : > { %vm1377_vm12 = vcmp.ge.f32.partialorder %v1190_v0, 0.0  ;;  %vm1380_vm13 = vcmp.ge.f32.partialorder %v3270_v5, 0.0  ;;  %v1508_v10 = vmul.f32 0.2, %v3270_v5  ;;  %vm1314_vm14 = vcmp.ge.f32.partialorder %v937_v8, 0.0 }
 0x157   : > { %v1572_v11 = vsel %vm1316_vm11, %v3206_v4, %v1444_v7  ;;  %v1442_v12 = vmul.f32 0.2, %v937_v8  ;;  %vm1378_vm15 = vcmp.ge.f32.partialorder %v1193_v9, 0.0  ;;  %v1506_v13 = vmul.f32 0.2, %v1193_v9 }
 0x158   : > { %v1569_v15 = vsel %vm1313_vm10, %v934_v63, %v1441_v2  ;;  %v2806_v16 = vpack.c.bf16 %v1572_v11, %v1571_v6  ;;  %v1636_v17 = vsel %vm1380_vm13, %v3270_v5, %v1508_v10  ;;  %v1633_v18 = vsel %vm1377_vm12, %v1190_v0, %v1505_v3 }
 0x159   : > { %v2966_v19 = vpack.c.bf16 %v1636_v17, %v1635_v14  ;;  %v1570_v20 = vsel %vm1314_vm14, %v937_v8, %v1442_v12  ;;  %v1634_v21 = vsel %vm1378_vm15, %v1193_v9, %v1506_v13  ;;  %v3209_v22 = vpop.f32.mrb[48].mxu0  ;;  %v3273_v23 = vpop.f32.mrb[48].mxu1 }
 0x15a   : > { %3030 = vst [vmem:[%s3517_s6 + $0xb8] sm:$0xff] %v2806_v16   ;;  %v2801_v24 = vpack.c.bf16 %v1570_v20, %v1569_v15  ;;  %v2961_v25 = vpack.c.bf16 %v1634_v21, %v1633_v18  ;;  %vm1319_vm0 = vcmp.ge.f32.partialorder %v3209_v22, 0.0  ;;  %v1447_v26 = vmul.f32 0.2, %v3209_v22  ;;  %v950_v27 = vpop.f32.mrb[49].mxu0  ;;  %v1206_v28 = vpop.f32.mrb[49].mxu1 }
 0x15b   : > { %3062 = vst [vmem:[%s3517_s6 + $0x1b8] sm:$0xff] %v2966_v19   ;;  %vm1383_vm1 = vcmp.ge.f32.partialorder %v3273_v23, 0.0  ;;  %v1511_v29 = vmul.f32 0.2, %v3273_v23  ;;  %v1445_v30 = vmul.f32 0.2, %v950_v27 }
 0x15c   : > { %3029 = vst [vmem:[%s3517_s6 + $0xb0] sm:$0xff] %v2801_v24   ;;  %3061 = vst [vmem:[%s3517_s6 + $0x1b0] sm:$0xff] %v2961_v25   ;;  %v1509_v31 = vmul.f32 0.2, %v1206_v28  ;;  %v3210_v32 = vpop.f32.mrb[50].mxu0  ;;  %v3274_v33 = vpop.f32.mrb[50].mxu1  ;;  %v1575_v34 = vsel %vm1319_vm0, %v3209_v22, %v1447_v26 }
 0x15d   : > { %vm1317_vm2 = vcmp.ge.f32.partialorder %v950_v27, 0.0  ;;  %vm1320_vm3 = vcmp.ge.f32.partialorder %v3210_v32, 0.0  ;;  %v1448_v35 = vmul.f32 0.2, %v3210_v32  ;;  %v953_v36 = vpop.f32.mrb[51].mxu0  ;;  %v1209_v37 = vpop.f32.mrb[51].mxu1  ;;  %v1639_v42 = vsel %vm1383_vm1, %v3273_v23, %v1511_v29 }
 0x15e   : > { %vm1381_vm4 = vcmp.ge.f32.partialorder %v1206_v28, 0.0  ;;  %vm1384_vm5 = vcmp.ge.f32.partialorder %v3274_v33, 0.0  ;;  %v1512_v38 = vmul.f32 0.2, %v3274_v33  ;;  %vm1318_vm6 = vcmp.ge.f32.partialorder %v953_v36, 0.0 }
 0x15f   : > { %v1576_v39 = vsel %vm1320_vm3, %v3210_v32, %v1448_v35  ;;  %v1446_v40 = vmul.f32 0.2, %v953_v36  ;;  %vm1382_vm7 = vcmp.ge.f32.partialorder %v1209_v37, 0.0  ;;  %v1510_v41 = vmul.f32 0.2, %v1209_v37 }
 0x160   : > { %v1573_v43 = vsel %vm1317_vm2, %v950_v27, %v1445_v30  ;;  %v2816_v44 = vpack.c.bf16 %v1576_v39, %v1575_v34  ;;  %v1640_v45 = vsel %vm1384_vm5, %v3274_v33, %v1512_v38  ;;  %v1637_v46 = vsel %vm1381_vm4, %v1206_v28, %v1509_v31 }
 0x161   : > { %v2976_v47 = vpack.c.bf16 %v1640_v45, %v1639_v42  ;;  %v1574_v48 = vsel %vm1318_vm6, %v953_v36, %v1446_v40  ;;  %v1638_v49 = vsel %vm1382_vm7, %v1209_v37, %v1510_v41  ;;  %v3213_v50 = vpop.f32.mrb[52].mxu0  ;;  %v3277_v51 = vpop.f32.mrb[52].mxu1 }
 0x162   : > { %3032 = vst [vmem:[%s3517_s6 + $0xc8] sm:$0xff] %v2816_v44   ;;  %v2811_v52 = vpack.c.bf16 %v1574_v48, %v1573_v43  ;;  %v2971_v53 = vpack.c.bf16 %v1638_v49, %v1637_v46  ;;  %vm1323_vm8 = vcmp.ge.f32.partialorder %v3213_v50, 0.0  ;;  %v1451_v54 = vmul.f32 0.2, %v3213_v50  ;;  %v966_v55 = vpop.f32.mrb[53].mxu0  ;;  %v1222_v56 = vpop.f32.mrb[53].mxu1 }
 0x163   : > { %3064 = vst [vmem:[%s3517_s6 + $0x1c8] sm:$0xff] %v2976_v47   ;;  %vm1387_vm9 = vcmp.ge.f32.partialorder %v3277_v51, 0.0  ;;  %v1515_v57 = vmul.f32 0.2, %v3277_v51  ;;  %v1449_v58 = vmul.f32 0.2, %v966_v55 }
 0x164   : > { %3031 = vst [vmem:[%s3517_s6 + $0xc0] sm:$0xff] %v2811_v52   ;;  %3063 = vst [vmem:[%s3517_s6 + $0x1c0] sm:$0xff] %v2971_v53   ;;  %v1513_v59 = vmul.f32 0.2, %v1222_v56  ;;  %v3214_v60 = vpop.f32.mrb[54].mxu0  ;;  %v3278_v61 = vpop.f32.mrb[54].mxu1  ;;  %v1579_v62 = vsel %vm1323_vm8, %v3213_v50, %v1451_v54 }
 0x165   : > { %vm1321_vm10 = vcmp.ge.f32.partialorder %v966_v55, 0.0  ;;  %vm1324_vm11 = vcmp.ge.f32.partialorder %v3214_v60, 0.0  ;;  %v1452_v63 = vmul.f32 0.2, %v3214_v60  ;;  %v969_v0 = vpop.f32.mrb[55].mxu0  ;;  %v1225_v1 = vpop.f32.mrb[55].mxu1  ;;  %v1643_v6 = vsel %vm1387_vm9, %v3277_v51, %v1515_v57 }
 0x166   : > { %vm1385_vm12 = vcmp.ge.f32.partialorder %v1222_v56, 0.0  ;;  %vm1388_vm13 = vcmp.ge.f32.partialorder %v3278_v61, 0.0  ;;  %v1516_v2 = vmul.f32 0.2, %v3278_v61  ;;  %vm1322_vm14 = vcmp.ge.f32.partialorder %v969_v0, 0.0 }
 0x167   : > { %v1580_v3 = vsel %vm1324_vm11, %v3214_v60, %v1452_v63  ;;  %v1450_v4 = vmul.f32 0.2, %v969_v0  ;;  %vm1386_vm15 = vcmp.ge.f32.partialorder %v1225_v1, 0.0  ;;  %v1514_v5 = vmul.f32 0.2, %v1225_v1 }
 0x168   : > { %v1577_v7 = vsel %vm1321_vm10, %v966_v55, %v1449_v58  ;;  %v2826_v8 = vpack.c.bf16 %v1580_v3, %v1579_v62  ;;  %v1644_v9 = vsel %vm1388_vm13, %v3278_v61, %v1516_v2  ;;  %v1641_v10 = vsel %vm1385_vm12, %v1222_v56, %v1513_v59 }
 0x169   : > { %v2986_v11 = vpack.c.bf16 %v1644_v9, %v1643_v6  ;;  %v1578_v12 = vsel %vm1322_vm14, %v969_v0, %v1450_v4  ;;  %v1642_v13 = vsel %vm1386_vm15, %v1225_v1, %v1514_v5  ;;  %v3217_v14 = vpop.f32.mrb[56].mxu0  ;;  %v3281_v15 = vpop.f32.mrb[56].mxu1 }
 0x16a   : > { %3034 = vst [vmem:[%s3517_s6 + $0xd8] sm:$0xff] %v2826_v8   ;;  %v2821_v16 = vpack.c.bf16 %v1578_v12, %v1577_v7  ;;  %v2981_v17 = vpack.c.bf16 %v1642_v13, %v1641_v10  ;;  %vm1327_vm0 = vcmp.ge.f32.partialorder %v3217_v14, 0.0  ;;  %v1455_v18 = vmul.f32 0.2, %v3217_v14  ;;  %v982_v19 = vpop.f32.mrb[57].mxu0  ;;  %v1238_v20 = vpop.f32.mrb[57].mxu1 }
 0x16b   : > { %3066 = vst [vmem:[%s3517_s6 + $0x1d8] sm:$0xff] %v2986_v11   ;;  %vm1391_vm1 = vcmp.ge.f32.partialorder %v3281_v15, 0.0  ;;  %v1519_v21 = vmul.f32 0.2, %v3281_v15  ;;  %v1453_v22 = vmul.f32 0.2, %v982_v19 }
 0x16c   : > { %3033 = vst [vmem:[%s3517_s6 + $0xd0] sm:$0xff] %v2821_v16   ;;  %3065 = vst [vmem:[%s3517_s6 + $0x1d0] sm:$0xff] %v2981_v17   ;;  %v1517_v23 = vmul.f32 0.2, %v1238_v20  ;;  %v3218_v24 = vpop.f32.mrb[58].mxu0  ;;  %v3282_v25 = vpop.f32.mrb[58].mxu1  ;;  %v1583_v26 = vsel %vm1327_vm0, %v3217_v14, %v1455_v18 }
 0x16d   : > { %vm1325_vm2 = vcmp.ge.f32.partialorder %v982_v19, 0.0  ;;  %vm1328_vm3 = vcmp.ge.f32.partialorder %v3218_v24, 0.0  ;;  %v1456_v27 = vmul.f32 0.2, %v3218_v24  ;;  %v985_v28 = vpop.f32.mrb[59].mxu0  ;;  %v1241_v29 = vpop.f32.mrb[59].mxu1  ;;  %v1647_v34 = vsel %vm1391_vm1, %v3281_v15, %v1519_v21 }
 0x16e   : > { %vm1389_vm4 = vcmp.ge.f32.partialorder %v1238_v20, 0.0  ;;  %vm1392_vm5 = vcmp.ge.f32.partialorder %v3282_v25, 0.0  ;;  %v1520_v30 = vmul.f32 0.2, %v3282_v25  ;;  %vm1326_vm6 = vcmp.ge.f32.partialorder %v985_v28, 0.0 }
 0x16f   : > { %v1584_v31 = vsel %vm1328_vm3, %v3218_v24, %v1456_v27  ;;  %v1454_v32 = vmul.f32 0.2, %v985_v28  ;;  %vm1390_vm7 = vcmp.ge.f32.partialorder %v1241_v29, 0.0  ;;  %v1518_v33 = vmul.f32 0.2, %v1241_v29 }
 0x170   : > { %v1581_v35 = vsel %vm1325_vm2, %v982_v19, %v1453_v22  ;;  %v2836_v36 = vpack.c.bf16 %v1584_v31, %v1583_v26  ;;  %v1648_v37 = vsel %vm1392_vm5, %v3282_v25, %v1520_v30  ;;  %v1645_v38 = vsel %vm1389_vm4, %v1238_v20, %v1517_v23 }
 0x171   : > { %v2996_v39 = vpack.c.bf16 %v1648_v37, %v1647_v34  ;;  %v1582_v40 = vsel %vm1326_vm6, %v985_v28, %v1454_v32  ;;  %v1646_v41 = vsel %vm1390_vm7, %v1241_v29, %v1518_v33  ;;  %v3221_v42 = vpop.f32.mrb[60].mxu0  ;;  %v3285_v43 = vpop.f32.mrb[60].mxu1 }
 0x172   : > { %3036 = vst [vmem:[%s3517_s6 + $0xe8] sm:$0xff] %v2836_v36   ;;  %v2831_v44 = vpack.c.bf16 %v1582_v40, %v1581_v35  ;;  %v2991_v45 = vpack.c.bf16 %v1646_v41, %v1645_v38  ;;  %vm1331_vm8 = vcmp.ge.f32.partialorder %v3221_v42, 0.0  ;;  %v1459_v46 = vmul.f32 0.2, %v3221_v42  ;;  %v998_v47 = vpop.f32.mrb[61].mxu0  ;;  %v1254_v48 = vpop.f32.mrb[61].mxu1 }
 0x173   : > { %3068 = vst [vmem:[%s3517_s6 + $0x1e8] sm:$0xff] %v2996_v39   ;;  %vm1395_vm9 = vcmp.ge.f32.partialorder %v3285_v43, 0.0  ;;  %v1523_v49 = vmul.f32 0.2, %v3285_v43  ;;  %v1457_v50 = vmul.f32 0.2, %v998_v47 }
 0x174   : > { %3035 = vst [vmem:[%s3517_s6 + $0xe0] sm:$0xff] %v2831_v44   ;;  %3067 = vst [vmem:[%s3517_s6 + $0x1e0] sm:$0xff] %v2991_v45   ;;  %v1521_v51 = vmul.f32 0.2, %v1254_v48  ;;  %v3222_v52 = vpop.f32.mrb[62].mxu0  ;;  %v3286_v53 = vpop.f32.mrb[62].mxu1  ;;  %v1587_v54 = vsel %vm1331_vm8, %v3221_v42, %v1459_v46 }
 0x175   : > { %vm1329_vm10 = vcmp.ge.f32.partialorder %v998_v47, 0.0  ;;  %vm1332_vm11 = vcmp.ge.f32.partialorder %v3222_v52, 0.0  ;;  %v1460_v55 = vmul.f32 0.2, %v3222_v52  ;;  %v1001_v56 = vpop.f32.mrb[63].mxu0  ;;  %v1257_v57 = vpop.f32.mrb[63].mxu1  ;;  %v1651_v62 = vsel %vm1395_vm9, %v3285_v43, %v1523_v49 }
 0x176   : > { %vm1393_vm12 = vcmp.ge.f32.partialorder %v1254_v48, 0.0  ;;  %vm1396_vm13 = vcmp.ge.f32.partialorder %v3286_v53, 0.0  ;;  %v1524_v58 = vmul.f32 0.2, %v3286_v53  ;;  %vm1330_vm14 = vcmp.ge.f32.partialorder %v1001_v56, 0.0 }
 0x177   : > { %v1588_v59 = vsel %vm1332_vm11, %v3222_v52, %v1460_v55  ;;  %v1458_v60 = vmul.f32 0.2, %v1001_v56  ;;  %vm1394_vm15 = vcmp.ge.f32.partialorder %v1257_v57, 0.0  ;;  %v1522_v61 = vmul.f32 0.2, %v1257_v57 }
 0x178   : > { %v1585_v63 = vsel %vm1329_vm10, %v998_v47, %v1457_v50  ;;  %v2846_v0 = vpack.c.bf16 %v1588_v59, %v1587_v54  ;;  %v1652_v1 = vsel %vm1396_vm13, %v3286_v53, %v1524_v58  ;;  %v1649_v2 = vsel %vm1393_vm12, %v1254_v48, %v1521_v51 }
 0x179   : > { %v3006_v3 = vpack.c.bf16 %v1652_v1, %v1651_v62  ;;  %v1586_v4 = vsel %vm1330_vm14, %v1001_v56, %v1458_v60  ;;  %v1650_v5 = vsel %vm1394_vm15, %v1257_v57, %v1522_v61 }
 0x17a   : > { %3038 = vst [vmem:[%s3517_s6 + $0xf8] sm:$0xff] %v2846_v0   ;;  %v2841_v6 = vpack.c.bf16 %v1586_v4, %v1585_v63  ;;  %v3001_v7 = vpack.c.bf16 %v1650_v5, %v1649_v2 }
 0x17b   : > { %3070 = vst [vmem:[%s3517_s6 + $0x1f8] sm:$0xff] %v3006_v3  }
 0x17c   : > { %3037 = vst [vmem:[%s3517_s6 + $0xf0] sm:$0xff] %v2841_v6   ;;  %3069 = vst [vmem:[%s3517_s6 + $0x1f0] sm:$0xff] %v3001_v7  }
 0x17d PF: > { %s12_s9 = sadd.s32 1, %s3389_s9  }
 0x17e   : > { %p9_p4 = scmp.ge.s32.totalorder %s12_s9, 4  }
 0x180   :  { %11 = sbr.rel (!%p9_p4) target bundleno = 1 (0x1), region = 58 }

// kernel: discriminator_forward.6
= control target key start
LH: loop header
LB: loop body
LE: loop exit
PB: predicated region body
PF: predicated region fallthrough
CT: control target
= control target key end

     0   :  { %s1150_s9 = smov 0   ;;  %s1237_s0 = inlined_call_operand.vmem [shape: bf16[512,128], index: 0, kind: input, shape index: {}]   ;;  %s1238_s1 = inlined_call_operand.vmem [shape: bf16[128,128], index: 1, kind: input, shape index: {}]   ;;  %s1239_s2 = inlined_call_operand.vmem [shape: bf16[512,128], index: 2, kind: output, shape index: {}]  }
   0x1 LB: > { %s813_s10 = sadd.s32 4294967295, %s1133_s9   ;;  %p817_p0 = scmp.ge.s32.totalorder %s1133_s9, 1  ;;  %s1133_s9 = sphi %s1150_s9, %s12_s9  }
   0x2   : > { %p113_p1 = scmp.lt.s32.totalorder %s1133_s9, 3 }
   0x4   : > { %p114_p2 = pnand %p817_p0, %p113_p1 }
   0x5   : > { %v1103_v0 = vld [vmem:[%s1238_s1] sm:$0xff] (!%p114_p2)   ;;  %s818_s13 = sshll.u32 (!%p114_p2), %s813_s10, 5  ;;  %v1104_v1 = vld [vmem:[%s1238_s1 + $0x8] sm:$0xff] (!%p114_p2)   ;;  %v1105_v2 = vld [vmem:[%s1238_s1 + $0x10] sm:$0xff] (!%p114_p2)  }
   0x6   : > { %117 = sbr.rel (%p114_p2) target bundleno = 285 (0x11d), region = 28  ;;  %p136_p3 = scmp.lt.s32.totalorder (!%p114_p2), %s818_s13, 63  ;;  %1031 = vmatprep.subr.bf16.mxu0 (!%p114_p2), %v1103_v0  ;;  %1079 = vmatprep.subr.bf16.mxu1 (!%p114_p2), %v1103_v0  ;;  %v1106_v3 = vld [vmem:[%s1238_s1 + $0x18] sm:$0xff] (!%p114_p2)   ;;  %v1107_v6 = vld [vmem:[%s1238_s1 + $0x20] sm:$0xff] (!%p114_p2)   ;;  %v1108_v7 = vld [vmem:[%s1238_s1 + $0x28] sm:$0xff] (!%p114_p2)  }
   0x7   : > { %1032 = vmatpush3.bf16.msra.mxu0 (!%p114_p2), %v1103_v0  ;;  %1087 = vmatpush3.bf16.msra.mxu1 (!%p114_p2), %v1103_v0  ;;  %v1109_v8 = vld [vmem:[%s1238_s1 + $0x30] sm:$0xff] (!%p114_p2)   ;;  %v1110_v9 = vld [vmem:[%s1238_s1 + $0x38] sm:$0xff] (!%p114_p2)  }
   0x8   : > { %1033 = vmatprep.subr.bf16.mxu0 (!%p114_p2), %v1104_v1  ;;  %1080 = vmatprep.subr.bf16.mxu1 (!%p114_p2), %v1104_v1 }
   0xb   : > { %1034 = vmatpush3.bf16.msra.mxu0 (!%p114_p2), %v1104_v1  ;;  %1088 = vmatpush3.bf16.msra.mxu1 (!%p114_p2), %v1104_v1 }
   0xc   : > { %1035 = vmatprep.subr.bf16.mxu0 (!%p114_p2), %v1105_v2  ;;  %1081 = vmatprep.subr.bf16.mxu1 (!%p114_p2), %v1105_v2 }
   0xd   : > { %s1241_s13 = smov (!%p136_p3, %s818_s13), 63 }
   0xe   : > { %s819_s18 = sshll.u32 %s1241_s13, 2 }
   0xf   : > { %s1175_s21 = scalar_lea.vmem %s1237_s0, %s819_s18  ;;  %1036 = vmatpush3.bf16.msra.mxu0 %v1105_v2  ;;  %1089 = vmatpush3.bf16.msra.mxu1 %v1105_v2  ;;  %s1213_s6 = scalar_lea.vmem %s1239_s2, %s819_s18 }
  0x10   : > { %v1111_v4 = vld [vmem:[%s1175_s21] sm:$0xff]   ;;  %1037 = vmatprep.subr.bf16.mxu0 %v1106_v3  ;;  %1082 = vmatprep.subr.bf16.mxu1 %v1106_v3  ;;  %v1113_v10 = vld [vmem:[%s1175_s21 + $0x8] sm:$0xff]   ;;  %v1115_v12 = vld [vmem:[%s1175_s21 + $0x10] sm:$0xff]  }
  0x11   : > { %v1112_v5 = vld [vmem:[%s1175_s21 + $0x40] sm:$0xff]   ;;  %1047 = vmatprep.mubr.bf16.mxu0 %v1111_v4  ;;  %v1114_v11 = vld [vmem:[%s1175_s21 + $0x48] sm:$0xff]   ;;  %v1116_v13 = vld [vmem:[%s1175_s21 + $0x50] sm:$0xff]  }
  0x12   : > { %1063 = vmatprep.mubr.bf16.mxu1 %v1112_v5  ;;  %v1117_v14 = vld [vmem:[%s1175_s21 + $0x18] sm:$0xff]   ;;  %v1119_v16 = vld [vmem:[%s1175_s21 + $0x20] sm:$0xff]   ;;  %v1121_v18 = vld [vmem:[%s1175_s21 + $0x28] sm:$0xff]  }
  0x13   : > { %1038 = vmatpush3.bf16.msra.mxu0 %v1106_v3  ;;  %1090 = vmatpush3.bf16.msra.mxu1 %v1106_v3  ;;  %v1118_v15 = vld [vmem:[%s1175_s21 + $0x58] sm:$0xff]   ;;  %v1120_v17 = vld [vmem:[%s1175_s21 + $0x60] sm:$0xff]   ;;  %v1122_v19 = vld [vmem:[%s1175_s21 + $0x68] sm:$0xff]  }
  0x14   : > { %1039 = vmatprep.subr.bf16.mxu0 %v1107_v6  ;;  %1083 = vmatprep.subr.bf16.mxu1 %v1107_v6  ;;  %v1123_v20 = vld [vmem:[%s1175_s21 + $0x30] sm:$0xff]   ;;  %v1125_v22 = vld [vmem:[%s1175_s21 + $0x38] sm:$0xff]  }
  0x15   : > { %v1124_v21 = vld [vmem:[%s1175_s21 + $0x70] sm:$0xff]   ;;  %v1126_v23 = vld [vmem:[%s1175_s21 + $0x78] sm:$0xff]  }
  0x17   : > { %1040 = vmatpush3.bf16.msra.mxu0 %v1107_v6  ;;  %1091 = vmatpush3.bf16.msra.mxu1 %v1107_v6 }
  0x18   : > { %1041 = vmatprep.subr.bf16.mxu0 %v1108_v7  ;;  %1084 = vmatprep.subr.bf16.mxu1 %v1108_v7 }
  0x1b   : > { %1042 = vmatpush3.bf16.msra.mxu0 %v1108_v7  ;;  %1092 = vmatpush3.bf16.msra.mxu1 %v1108_v7 }
  0x1c   : > { %1043 = vmatprep.subr.bf16.mxu0 %v1109_v8  ;;  %1085 = vmatprep.subr.bf16.mxu1 %v1109_v8 }
  0x1f   : > { %1044 = vmatpush3.bf16.msra.mxu0 %v1109_v8  ;;  %1093 = vmatpush3.bf16.msra.mxu1 %v1109_v8 }
  0x20   : > { %1045 = vmatprep.subr.bf16.mxu0 %v1110_v9  ;;  %1086 = vmatprep.subr.bf16.mxu1 %v1110_v9 }
  0x23   : > { %1046 = vmatpush3.bf16.msra.mxu0 %v1110_v9  ;;  %1094 = vmatpush3.bf16.msra.mxu1 %v1110_v9 }
  0x26   : > { %1048 = vmatmul.mubr.bf16.vlgmr.msra.gmra.mrb[0].mxu0 %v1113_v10  ;;  %1064 = vmatmul.mubr.bf16.vlgmr.msra.gmra.mrb[0].mxu1 %v1114_v11 }
  0x27   : > { %1051 = vmatprep.mubr.bf16.mxu0 %v1115_v12  ;;  %1067 = vmatprep.mubr.bf16.mxu1 %v1116_v13 }
  0x2e   : > { %1052 = vmatmul.mubr.bf16.gmra.mrb[4].mxu0 %v1117_v14  ;;  %1068 = vmatmul.mubr.bf16.gmra.mrb[4].mxu1 %v1118_v15 }
  0x2f   : > { %1055 = vmatprep.mubr.bf16.mxu0 %v1119_v16  ;;  %1071 = vmatprep.mubr.bf16.mxu1 %v1120_v17 }
  0x36   : > { %1056 = vmatmul.mubr.bf16.gmra.mrb[8].mxu0 %v1121_v18  ;;  %1072 = vmatmul.mubr.bf16.gmra.mrb[8].mxu1 %v1122_v19 }
  0x37   : > { %1059 = vmatprep.mubr.bf16.mxu0 %v1123_v20  ;;  %1075 = vmatprep.mubr.bf16.mxu1 %v1124_v21 }
  0x3e   : > { %1060 = vmatmul.mubr.bf16.gmra.mrb[12].mxu0 %v1125_v22  ;;  %1076 = vmatmul.mubr.bf16.gmra.mrb[12].mxu1 %v1126_v23 }
  0xf9   : > { %v1049_v24 = vpop.f32.mrb[0].mxu0  ;;  %v1065_v25 = vpop.f32.mrb[0].mxu1 }
  0xfa   : > { %vm503_vm0 = vcmp.ge.f32.partialorder %v1049_v24, 0.0  ;;  %v535_v26 = vmul.f32 0.2, %v1049_v24  ;;  %v551_v27 = vmul.f32 0.2, %v1065_v25  ;;  %vm519_vm1 = vcmp.ge.f32.partialorder %v1065_v25, 0.0 }
  0xfb   : > { %v374_v28 = vpop.f32.mrb[1].mxu0  ;;  %v438_v29 = vpop.f32.mrb[1].mxu1 }
  0xfc   : > { %v533_v30 = vmul.f32 0.2, %v374_v28  ;;  %v1050_v31 = vpop.f32.mrb[2].mxu0  ;;  %v1066_v32 = vpop.f32.mrb[2].mxu1  ;;  %v567_v33 = vsel %vm503_vm0, %v1049_v24, %v535_v26  ;;  %v549_v34 = vmul.f32 0.2, %v438_v29  ;;  %v583_v36 = vsel %vm519_vm1, %v1065_v25, %v551_v27 }
  0xfd   : > { %vm504_vm2 = vcmp.ge.f32.partialorder %v1050_v31, 0.0  ;;  %v536_v35 = vmul.f32 0.2, %v1050_v31  ;;  %vm501_vm3 = vcmp.ge.f32.partialorder %v374_v28, 0.0  ;;  %vm520_vm4 = vcmp.ge.f32.partialorder %v1066_v32, 0.0  ;;  %v377_v38 = vpop.f32.mrb[3].mxu0 }
  0xfe   : > { %v552_v37 = vmul.f32 0.2, %v1066_v32  ;;  %v441_v39 = vpop.f32.mrb[3].mxu1  ;;  %vm517_vm5 = vcmp.ge.f32.partialorder %v438_v29, 0.0  ;;  %vm502_vm6 = vcmp.ge.f32.partialorder %v377_v38, 0.0  ;;  %v565_v45 = vsel %vm501_vm3, %v374_v28, %v533_v30 }
  0xff   : > { %v568_v40 = vsel %vm504_vm2, %v1050_v31, %v536_v35  ;;  %v534_v41 = vmul.f32 0.2, %v377_v38  ;;  %vm518_vm7 = vcmp.ge.f32.partialorder %v441_v39, 0.0  ;;  %v550_v44 = vmul.f32 0.2, %v441_v39 }
 0x100   : > { %v920_v42 = vpack.c.bf16 %v568_v40, %v567_v33  ;;  %v584_v43 = vsel %vm520_vm4, %v1066_v32, %v552_v37  ;;  %v581_v50 = vsel %vm517_vm5, %v438_v29, %v549_v34 }
 0x101   : > { %v960_v46 = vpack.c.bf16 %v584_v43, %v583_v36  ;;  %v566_v47 = vsel %vm502_vm6, %v377_v38, %v534_v41  ;;  %v1053_v48 = vpop.f32.mrb[4].mxu0  ;;  %v1069_v49 = vpop.f32.mrb[4].mxu1  ;;  %v582_v52 = vsel %vm518_vm7, %v441_v39, %v550_v44 }
 0x102   : > { %992 = vst [vmem:[%s1213_s6 + $0x8] sm:$0xff] %v920_v42   ;;  %v915_v51 = vpack.c.bf16 %v566_v47, %v565_v45  ;;  %v539_v53 = vmul.f32 0.2, %v1053_v48  ;;  %v390_v54 = vpop.f32.mrb[5].mxu0  ;;  %v454_v55 = vpop.f32.mrb[5].mxu1  ;;  %v955_v56 = vpack.c.bf16 %v582_v52, %v581_v50  ;;  %vm507_vm8 = vcmp.ge.f32.partialorder %v1053_v48, 0.0 }
 0x103   : > { %1000 = vst [vmem:[%s1213_s6 + $0x48] sm:$0xff] %v960_v46   ;;  %v555_v57 = vmul.f32 0.2, %v1069_v49  ;;  %v1054_v58 = vpop.f32.mrb[6].mxu0  ;;  %v1070_v59 = vpop.f32.mrb[6].mxu1  ;;  %vm523_vm9 = vcmp.ge.f32.partialorder %v1069_v49, 0.0 }
 0x104   : > { %916 = vst [vmem:[%s1213_s6] sm:$0xff] %v915_v51   ;;  %v537_v60 = vmul.f32 0.2, %v390_v54  ;;  %v553_v61 = vmul.f32 0.2, %v454_v55  ;;  %v393_v62 = vpop.f32.mrb[7].mxu0  ;;  %999 = vst [vmem:[%s1213_s6 + $0x40] sm:$0xff] %v955_v56   ;;  %v571_v1 = vsel %vm507_vm8, %v1053_v48, %v539_v53 }
 0x105   : > { %vm505_vm10 = vcmp.ge.f32.partialorder %v390_v54, 0.0  ;;  %vm508_vm11 = vcmp.ge.f32.partialorder %v1054_v58, 0.0  ;;  %v540_v63 = vmul.f32 0.2, %v1054_v58  ;;  %vm524_vm12 = vcmp.ge.f32.partialorder %v1070_v59, 0.0  ;;  %v457_v0 = vpop.f32.mrb[7].mxu1 }
 0x106   : > { %vm521_vm13 = vcmp.ge.f32.partialorder %v454_v55, 0.0  ;;  %v556_v2 = vmul.f32 0.2, %v1070_v59  ;;  %vm506_vm14 = vcmp.ge.f32.partialorder %v393_v62, 0.0  ;;  %v538_v4 = vmul.f32 0.2, %v393_v62 }
 0x107   : > { %v572_v3 = vsel %vm508_vm11, %v1054_v58, %v540_v63  ;;  %vm522_vm15 = vcmp.ge.f32.partialorder %v457_v0, 0.0  ;;  %v554_v5 = vmul.f32 0.2, %v457_v0  ;;  %v587_v6 = vsel %vm523_vm9, %v1069_v49, %v555_v57 }
 0x108   : > { %v569_v7 = vsel %vm505_vm10, %v390_v54, %v537_v60  ;;  %v930_v8 = vpack.c.bf16 %v572_v3, %v571_v1  ;;  %v588_v9 = vsel %vm524_vm12, %v1070_v59, %v556_v2  ;;  %v585_v10 = vsel %vm521_vm13, %v454_v55, %v553_v61 }
 0x109   : > { %v970_v11 = vpack.c.bf16 %v588_v9, %v587_v6  ;;  %v570_v12 = vsel %vm506_vm14, %v393_v62, %v538_v4  ;;  %v586_v13 = vsel %vm522_vm15, %v457_v0, %v554_v5  ;;  %v1057_v14 = vpop.f32.mrb[8].mxu0  ;;  %v1073_v15 = vpop.f32.mrb[8].mxu1 }
 0x10a   : > { %994 = vst [vmem:[%s1213_s6 + $0x18] sm:$0xff] %v930_v8   ;;  %v925_v16 = vpack.c.bf16 %v570_v12, %v569_v7  ;;  %v965_v17 = vpack.c.bf16 %v586_v13, %v585_v10  ;;  %vm511_vm0 = vcmp.ge.f32.partialorder %v1057_v14, 0.0  ;;  %v543_v18 = vmul.f32 0.2, %v1057_v14  ;;  %v406_v19 = vpop.f32.mrb[9].mxu0  ;;  %v470_v20 = vpop.f32.mrb[9].mxu1 }
 0x10b   : > { %1002 = vst [vmem:[%s1213_s6 + $0x58] sm:$0xff] %v970_v11   ;;  %vm527_vm1 = vcmp.ge.f32.partialorder %v1073_v15, 0.0  ;;  %v559_v21 = vmul.f32 0.2, %v1073_v15  ;;  %v541_v22 = vmul.f32 0.2, %v406_v19 }
 0x10c   : > { %993 = vst [vmem:[%s1213_s6 + $0x10] sm:$0xff] %v925_v16   ;;  %1001 = vst [vmem:[%s1213_s6 + $0x50] sm:$0xff] %v965_v17   ;;  %v557_v23 = vmul.f32 0.2, %v470_v20  ;;  %v1058_v24 = vpop.f32.mrb[10].mxu0  ;;  %v1074_v25 = vpop.f32.mrb[10].mxu1  ;;  %v575_v26 = vsel %vm511_vm0, %v1057_v14, %v543_v18 }
 0x10d   : > { %vm509_vm2 = vcmp.ge.f32.partialorder %v406_v19, 0.0  ;;  %vm512_vm3 = vcmp.ge.f32.partialorder %v1058_v24, 0.0  ;;  %v544_v27 = vmul.f32 0.2, %v1058_v24  ;;  %v409_v28 = vpop.f32.mrb[11].mxu0  ;;  %v473_v29 = vpop.f32.mrb[11].mxu1  ;;  %v591_v34 = vsel %vm527_vm1, %v1073_v15, %v559_v21 }
 0x10e   : > { %vm525_vm4 = vcmp.ge.f32.partialorder %v470_v20, 0.0  ;;  %vm528_vm5 = vcmp.ge.f32.partialorder %v1074_v25, 0.0  ;;  %v560_v30 = vmul.f32 0.2, %v1074_v25  ;;  %vm510_vm6 = vcmp.ge.f32.partialorder %v409_v28, 0.0 }
 0x10f   : > { %v576_v31 = vsel %vm512_vm3, %v1058_v24, %v544_v27  ;;  %v542_v32 = vmul.f32 0.2, %v409_v28  ;;  %vm526_vm7 = vcmp.ge.f32.partialorder %v473_v29, 0.0  ;;  %v558_v33 = vmul.f32 0.2, %v473_v29 }
 0x110   : > { %v573_v35 = vsel %vm509_vm2, %v406_v19, %v541_v22  ;;  %v940_v36 = vpack.c.bf16 %v576_v31, %v575_v26  ;;  %v592_v37 = vsel %vm528_vm5, %v1074_v25, %v560_v30  ;;  %v589_v38 = vsel %vm525_vm4, %v470_v20, %v557_v23 }
 0x111   : > { %v980_v39 = vpack.c.bf16 %v592_v37, %v591_v34  ;;  %v574_v40 = vsel %vm510_vm6, %v409_v28, %v542_v32  ;;  %v590_v41 = vsel %vm526_vm7, %v473_v29, %v558_v33  ;;  %v1061_v42 = vpop.f32.mrb[12].mxu0  ;;  %v1077_v43 = vpop.f32.mrb[12].mxu1 }
 0x112   : > { %996 = vst [vmem:[%s1213_s6 + $0x28] sm:$0xff] %v940_v36   ;;  %v935_v44 = vpack.c.bf16 %v574_v40, %v573_v35  ;;  %v975_v45 = vpack.c.bf16 %v590_v41, %v589_v38  ;;  %vm515_vm8 = vcmp.ge.f32.partialorder %v1061_v42, 0.0  ;;  %v547_v46 = vmul.f32 0.2, %v1061_v42  ;;  %v422_v47 = vpop.f32.mrb[13].mxu0  ;;  %v486_v48 = vpop.f32.mrb[13].mxu1 }
 0x113   : > { %1004 = vst [vmem:[%s1213_s6 + $0x68] sm:$0xff] %v980_v39   ;;  %vm531_vm9 = vcmp.ge.f32.partialorder %v1077_v43, 0.0  ;;  %v563_v49 = vmul.f32 0.2, %v1077_v43  ;;  %v545_v50 = vmul.f32 0.2, %v422_v47 }
 0x114   : > { %995 = vst [vmem:[%s1213_s6 + $0x20] sm:$0xff] %v935_v44   ;;  %1003 = vst [vmem:[%s1213_s6 + $0x60] sm:$0xff] %v975_v45   ;;  %v561_v51 = vmul.f32 0.2, %v486_v48  ;;  %v1062_v52 = vpop.f32.mrb[14].mxu0  ;;  %v1078_v53 = vpop.f32.mrb[14].mxu1  ;;  %v579_v54 = vsel %vm515_vm8, %v1061_v42, %v547_v46 }
 0x115   : > { %vm513_vm10 = vcmp.ge.f32.partialorder %v422_v47, 0.0  ;;  %vm516_vm11 = vcmp.ge.f32.partialorder %v1062_v52, 0.0  ;;  %v548_v55 = vmul.f32 0.2, %v1062_v52  ;;  %v425_v56 = vpop.f32.mrb[15].mxu0  ;;  %v489_v57 = vpop.f32.mrb[15].mxu1  ;;  %v595_v62 = vsel %vm531_vm9, %v1077_v43, %v563_v49 }
 0x116   : > { %vm529_vm12 = vcmp.ge.f32.partialorder %v486_v48, 0.0  ;;  %vm532_vm13 = vcmp.ge.f32.partialorder %v1078_v53, 0.0  ;;  %v564_v58 = vmul.f32 0.2, %v1078_v53  ;;  %vm514_vm14 = vcmp.ge.f32.partialorder %v425_v56, 0.0 }
 0x117   : > { %v580_v59 = vsel %vm516_vm11, %v1062_v52, %v548_v55  ;;  %v546_v60 = vmul.f32 0.2, %v425_v56  ;;  %vm530_vm15 = vcmp.ge.f32.partialorder %v489_v57, 0.0  ;;  %v562_v61 = vmul.f32 0.2, %v489_v57 }
 0x118   : > { %v577_v63 = vsel %vm513_vm10, %v422_v47, %v545_v50  ;;  %v950_v0 = vpack.c.bf16 %v580_v59, %v579_v54  ;;  %v596_v1 = vsel %vm532_vm13, %v1078_v53, %v564_v58  ;;  %v593_v2 = vsel %vm529_vm12, %v486_v48, %v561_v51 }
 0x119   : > { %v990_v3 = vpack.c.bf16 %v596_v1, %v595_v62  ;;  %v578_v4 = vsel %vm514_vm14, %v425_v56, %v546_v60  ;;  %v594_v5 = vsel %vm530_vm15, %v489_v57, %v562_v61 }
 0x11a   : > { %998 = vst [vmem:[%s1213_s6 + $0x38] sm:$0xff] %v950_v0   ;;  %v945_v6 = vpack.c.bf16 %v578_v4, %v577_v63  ;;  %v985_v7 = vpack.c.bf16 %v594_v5, %v593_v2 }
 0x11b   : > { %1006 = vst [vmem:[%s1213_s6 + $0x78] sm:$0xff] %v990_v3  }
 0x11c   : > { %997 = vst [vmem:[%s1213_s6 + $0x30] sm:$0xff] %v945_v6   ;;  %1005 = vst [vmem:[%s1213_s6 + $0x70] sm:$0xff] %v985_v7  }
 0x11d PF: > { %s12_s9 = sadd.s32 1, %s1133_s9  }
 0x11e   : > { %p9_p4 = scmp.ge.s32.totalorder %s12_s9, 4  }
 0x120   :  { %11 = sbr.rel (!%p9_p4) target bundleno = 1 (0x1), region = 58 }

// kernel: discriminator_forward.7
= control target key start
LH: loop header
LB: loop body
LE: loop exit
PB: predicated region body
PF: predicated region fallthrough
CT: control target
= control target key end

     0   :  { %s1634_s11 = smov 0   ;;  %s1861_s0 = inlined_call_operand.vmem [shape: bf16[2,64,256], index: 0, kind: input, shape index: {}]   ;;  %s1862_s1 = inlined_call_operand.vmem [shape: bf16[256,32], index: 1, kind: input, shape index: {}]   ;;  %s1863_s2 = inlined_call_operand.vmem [shape: bf16[32,4], index: 2, kind: input, shape index: {}]   ;;  %s1864_s3 = inlined_call_operand.vmem [shape: f32[1,4], index: 3, kind: input, shape index: {}]   ;;  %s1865_s4 = inlined_call_operand.vmem [shape: bf16[32,4], index: 4, kind: input, shape index: {}]   ;;  %s1866_s5 = inlined_call_operand.vmem [shape: f32[1,4], index: 5, kind: input, shape index: {}]   ;;  %s1867_s6 = inlined_call_operand.vmem [shape: bf16[32,32], index: 6, kind: input, shape index: {}]   ;;  %s1868_s7 = inlined_call_operand.vmem [shape: f32[1,32], index: 7, kind: input, shape index: {}]   ;;  %s1869_s8 = inlined_call_operand.<no memory space> [shape: f32[1,1], index: 8, kind: input, shape index: {}]   ;;  %s1870_s9 = inlined_call_operand.vmem [shape: bf16[2,64,32], index: 9, kind: output, shape index: {}]  }
   0x1   :  { %v14_v0 = vstv %s1869_s8 }
   0x2   :  { %15 = vst [vmem:[#allocation2] sm:$0x1] %v14_v0 }
   0x3 LB: > { %s1269_s12 = sadd.s32 4294967295, %s1579_s11   ;;  %p1273_p0 = scmp.ge.s32.totalorder %s1579_s11, 1  ;;  %s1579_s11 = sphi %s1634_s11, %s21_s11  }
   0x4   : > { %p289_p1 = scmp.lt.s32.totalorder %s1579_s11, 3 }
   0x6   : > { %p290_p2 = pnand %p1273_p0, %p289_p1 }
   0x7   : > { %v1507_v1 = vld [vmem:[%s1862_s1 + $0x40] sm:$0xff] (!%p290_p2)   ;;  %v1509_v3 = vld [vmem:[%s1862_s1 + $0x48] sm:$0xff] (!%p290_p2)   ;;  %p325_p3 = scmp.lt.s32.totalorder (!%p290_p2), %s1269_s12, 1  ;;  %v1511_v5 = vld [vmem:[%s1862_s1 + $0x50] sm:$0xff] (!%p290_p2)   ;;  %vm628_vm2 = vcmask (!%p290_p2), 261120   ;;  %vm890_vm9 = vcmask (!%p290_p2), 31744  }
   0x8   : > { %293 = sbr.rel (%p290_p2) target bundleno = 1312 (0x520), region = 56  ;;  %v1508_v2 = vld [vmem:[%s1862_s1] sm:$0xff] (!%p290_p2)   ;;  %1351 = vmatprep.subr.bf16.mxu0 (!%p290_p2), %v1507_v1  ;;  %v1510_v4 = vld [vmem:[%s1862_s1 + $0x8] sm:$0xff] (!%p290_p2)   ;;  %v1512_v6 = vld [vmem:[%s1862_s1 + $0x10] sm:$0xff] (!%p290_p2)   ;;  %vm980_vm10 = vcmask (!%p290_p2), 523264   ;;  %vm1205_vm11 = vcmask (!%p290_p2), 257024  }
   0x9   : > { %1352 = vmatpush3.bf16.msra.mxu0 (!%p290_p2), %v1508_v2  ;;  %v1513_v7 = vld [vmem:[%s1862_s1 + $0x58] sm:$0xff] (!%p290_p2)   ;;  %v1515_v9 = vld [vmem:[%s1862_s1 + $0x60] sm:$0xff] (!%p290_p2)   ;;  %v1517_v11 = vld [vmem:[%s1862_s1 + $0x68] sm:$0xff] (!%p290_p2)  }
   0xa   : > { %1353 = vmatprep.subr.bf16.mxu0 (!%p290_p2), %v1509_v3  ;;  %v1514_v8 = vld [vmem:[%s1862_s1 + $0x18] sm:$0xff] (!%p290_p2)   ;;  %v1516_v10 = vld [vmem:[%s1862_s1 + $0x20] sm:$0xff] (!%p290_p2)   ;;  %v1518_v13 = vld [vmem:[%s1862_s1 + $0x28] sm:$0xff] (!%p290_p2)  }
   0xb   : > { %v1519_v14 = vld [vmem:[%s1862_s1 + $0x70] sm:$0xff] (!%p290_p2)   ;;  %v1521_v16 = vld [vmem:[%s1862_s1 + $0x78] sm:$0xff] (!%p290_p2)   ;;  %v1535_v25 = vld [vmem:[%s1863_s2] sm:$0xff] (!%p290_p2)  }
   0xc   : > { %v1520_v15 = vld [vmem:[%s1862_s1 + $0x30] sm:$0xff] (!%p290_p2)   ;;  %v1522_v17 = vld [vmem:[%s1862_s1 + $0x38] sm:$0xff] (!%p290_p2)   ;;  %1425 = vmatprep.subr.bf16.mxu1 (!%p290_p2), %v1535_v25  ;;  %v1536_v26 = vld [vmem:[%s1863_s2 + $0x8] sm:$0xff] (!%p290_p2)  }
   0xd   : > { %1354 = vmatpush3.bf16.msra.mxu0 (!%p290_p2), %v1510_v4  ;;  %1426 = vmatpush3.bf16.msra.mxu1 (!%p290_p2), %v1535_v25  ;;  %v1537_v27 = vld [vmem:[%s1865_s4] sm:$0xff] (!%p290_p2)   ;;  %v1538_v52 = vld [vmem:[%s1865_s4 + $0x8] sm:$0xff] (!%p290_p2)  }
   0xe   : > { %1355 = vmatprep.subr.bf16.mxu0 (!%p290_p2), %v1511_v5  ;;  %1427 = vmatprep.subr.bf16.mxu1 (!%p290_p2), %v1536_v26  ;;  %v1539_v58 = vld [vmem:[%s1867_s6] sm:$0xff] (!%p290_p2)  }
   0xf   : > { %s1872_s12 = smov (!%p325_p3, %s1269_s12), 1 }
  0x10   : > { %s1341_s28 = sshll.u32 %s1872_s12, 6  ;;  %s1342_s27 = sshll.u32 %s1872_s12, 5 }
  0x11   : > { %1356 = vmatpush3.bf16.msra.mxu0 %v1512_v6  ;;  %s1675_s14 = scalar_lea.vmem %s1861_s0, %s1341_s28  ;;  %1428 = vmatpush3.bf16.msra.mxu1 %v1536_v26  ;;  %s1833_s30 = scalar_lea.vmem %s1870_s9, %s1342_s27 }
  0x12   : > { %1357 = vmatprep.subr.bf16.mxu0 %v1513_v7  ;;  %v1525_v12 = vld [vmem:[%s1675_s14 + $0x4] ss:$8 sps:$4 sm:$0xff]   ;;  %v1523_v18 = vld [vmem:[%s1675_s14] ss:$8 sps:$4 sm:$0xff]   ;;  %v1526_v19 = vld [vmem:[%s1675_s14 + $0x14] ss:$8 sps:$4 sm:$0xff]   ;;  %1437 = vmatprep.subr.bf16.mxu1 %v1537_v27 }
  0x13   : > { %544 = vmatprep.mubr.bf16.mxu0 %v1525_v12  ;;  %v1528_v20 = vld [vmem:[%s1675_s14 + $0x10] ss:$8 sps:$4 sm:$0xff]   ;;  %v1529_v21 = vld [vmem:[%s1675_s14 + $0x24] ss:$8 sps:$4 sm:$0xff]   ;;  %v1531_v22 = vld [vmem:[%s1675_s14 + $0x20] ss:$8 sps:$4 sm:$0xff]  }
  0x14   : > { %v1532_v23 = vld [vmem:[%s1675_s14 + $0x34] ss:$8 sps:$4 sm:$0xff]   ;;  %v1534_v24 = vld [vmem:[%s1675_s14 + $0x30] ss:$8 sps:$4 sm:$0xff]   ;;  %v1302_v12 = vld [vmem:[%s1864_s3] ss:$0 sm:$0xff] }
  0x15   : > { %1358 = vmatpush3.bf16.msra.mxu0 %v1514_v8 }
  0x16   : > { %1359 = vmatprep.subr.bf16.mxu0 %v1515_v9 }
  0x19   : > { %1360 = vmatpush3.bf16.msra.mxu0 %v1516_v10  ;;  %v1540_v10 = vld [vmem:[%s1867_s6 + $0x8] sm:$0xff]  }
  0x1a   : > { %1361 = vmatprep.subr.bf16.mxu0 %v1517_v11 }
  0x1d   : > { %1362 = vmatpush3.bf16.msra.mxu0 %v1518_v13 }
  0x1e   : > { %1363 = vmatprep.subr.bf16.mxu0 %v1519_v14 }
  0x21   : > { %1364 = vmatpush3.bf16.msra.mxu0 %v1520_v15 }
  0x22   : > { %1365 = vmatprep.subr.bf16.mxu0 %v1521_v16 }
  0x25   : > { %1366 = vmatpush3.bf16.msra.mxu0 %v1522_v17 }
  0x28   : > { %545 = vmatmul.mubr.bf16.vlgmr.msra.gmra.mrb[0].mxu0 %v1523_v18 }
  0x29   : > { %552 = vmatprep.mubr.bf16.mxu0 %v1526_v19 }
  0x30   : > { %553 = vmatmul.mubr.bf16.gmra.mrb[4].mxu0 %v1528_v20 }
  0x31   : > { %560 = vmatprep.mubr.bf16.mxu0 %v1529_v21 }
  0x38   : > { %561 = vmatmul.mubr.bf16.gmra.mrb[8].mxu0 %v1531_v22 }
  0x39   : > { %568 = vmatprep.mubr.bf16.mxu0 %v1532_v23 }
  0x40   : > { %569 = vmatmul.mubr.bf16.gmra.mrb[12].mxu0 %v1534_v24 }
  0xfb   : > { %v1367_v28 = vpop.f32.mrb[0].mxu0 }
  0xfc   : > { %v1368_v29 = vpop.f32.mrb[1].mxu0 }
  0xfd   : > { %v1369_v30 = vadd.f32 %v1368_v29, %v1367_v28  ;;  %v1370_v31 = vpop.f32.mrb[2].mxu0 }
  0xfe   : > { %v1371_v32 = vpop.f32.mrb[3].mxu0 }
  0xff   : > { %v585_v33 = vmul.f32 0.2, %v1369_v30  ;;  %v1372_v34 = vadd.f32 %v1371_v32, %v1370_v31  ;;  %vm577_vm0 = vcmp.ge.f32.partialorder %v1369_v30, 0.0 }
 0x101   : > { %vm578_vm1 = vcmp.ge.f32.partialorder %v1372_v34, 0.0  ;;  %v586_v35 = vmul.f32 0.2, %v1372_v34  ;;  %v1715_v37 = vsel %vm577_vm0, %v1369_v30, %v585_v33  ;;  %v1309_v33 = vld [vmem:[%s1866_s5] ss:$0 sm:$0xff] }
 0x103   : > { %v1373_v36 = vpop.f32.mrb[4].mxu0  ;;  %v1717_v38 = vsel %vm578_vm1, %v1372_v34, %v586_v35 }
 0x104   : > { %v1374_v39 = vpop.f32.mrb[5].mxu0  ;;  %v601_v40 = vpack.c.bf16 %v1717_v38, %v1715_v37 }
 0x105   : > { %v1375_v41 = vadd.f32 %v1374_v39, %v1373_v36  ;;  %v1376_v42 = vpop.f32.mrb[6].mxu0 }
 0x106   : > { %v1377_v43 = vpop.f32.mrb[7].mxu0  ;;  %1429 = vmatprep.mubr.msk.bf16.mxu1 %vm628_vm2, %v601_v40 }
 0x107   : > { %v587_v44 = vmul.f32 0.2, %v1375_v41  ;;  %v1378_v45 = vadd.f32 %v1377_v43, %v1376_v42  ;;  %vm579_vm3 = vcmp.ge.f32.partialorder %v1375_v41, 0.0 }
 0x109   : > { %vm580_vm4 = vcmp.ge.f32.partialorder %v1378_v45, 0.0  ;;  %v588_v46 = vmul.f32 0.2, %v1378_v45  ;;  %v1722_v47 = vsel %vm579_vm3, %v1375_v41, %v587_v44 }
 0x10b   : > { %v1724_v48 = vsel %vm580_vm4, %v1378_v45, %v588_v46  ;;  %v1379_v49 = vpop.f32.mrb[8].mxu0 }
 0x10c   : > { %v602_v50 = vpack.c.bf16 %v1724_v48, %v1722_v47  ;;  %v1380_v51 = vpop.f32.mrb[9].mxu0 }
 0x10d   : > { %v1381_v53 = vadd.f32 %v1380_v51, %v1379_v49  ;;  %v1382_v54 = vpop.f32.mrb[10].mxu0 }
 0x10e   : > { %v1383_v55 = vpop.f32.mrb[11].mxu0  ;;  %1430 = vmatmul.mubr.msk.bf16.vlgmr.msra.gmra.mrb[0].mxu1 %vm628_vm2, %v602_v50 }
 0x10f   : > { %v589_v56 = vmul.f32 0.2, %v1381_v53  ;;  %v1384_v57 = vadd.f32 %v1383_v55, %v1382_v54  ;;  %1438 = vmatpush3.bf16.msra.mxu1 %v1537_v27  ;;  %vm581_vm5 = vcmp.ge.f32.partialorder %v1381_v53, 0.0 }
 0x110   : > { %1439 = vmatprep.subr.bf16.mxu1 %v1538_v52 }
 0x111   : > { %vm582_vm6 = vcmp.ge.f32.partialorder %v1384_v57, 0.0  ;;  %v590_v59 = vmul.f32 0.2, %v1384_v57  ;;  %v1735_v60 = vsel %vm581_vm5, %v1381_v53, %v589_v56 }
 0x113   : > { %v1737_v61 = vsel %vm582_vm6, %v1384_v57, %v590_v59  ;;  %v1385_v62 = vpop.f32.mrb[12].mxu0  ;;  %1440 = vmatpush3.bf16.msra.mxu1 %v1538_v52  ;;  %v1316_v59 = vld [vmem:[%s1868_s7] ss:$0 sm:$0xff] }
 0x114   : > { %v603_v63 = vpack.c.bf16 %v1737_v61, %v1735_v60  ;;  %v1386_v0 = vpop.f32.mrb[13].mxu0  ;;  %1449 = vmatprep.subr.bf16.mxu1 %v1539_v58 }
 0x115   : > { %v1387_v1 = vadd.f32 %v1386_v0, %v1385_v62  ;;  %v1388_v2 = vpop.f32.mrb[14].mxu0 }
 0x116   : > { %v1389_v3 = vpop.f32.mrb[15].mxu0  ;;  %1433 = vmatprep.mubr.msk.bf16.mxu1 %vm628_vm2, %v603_v63 }
 0x117   : > { %v591_v4 = vmul.f32 0.2, %v1387_v1  ;;  %v1390_v5 = vadd.f32 %v1389_v3, %v1388_v2  ;;  %vm583_vm7 = vcmp.ge.f32.partialorder %v1387_v1, 0.0 }
 0x119   : > { %vm584_vm8 = vcmp.ge.f32.partialorder %v1390_v5, 0.0  ;;  %v592_v6 = vmul.f32 0.2, %v1390_v5  ;;  %v1742_v7 = vsel %vm583_vm7, %v1387_v1, %v591_v4 }
 0x11b   : > { %v1744_v8 = vsel %vm584_vm8, %v1390_v5, %v592_v6 }
 0x11c   : > { %v604_v9 = vpack.c.bf16 %v1744_v8, %v1742_v7 }
 0x11e   : > { %1434 = vmatmul.mubr.msk.bf16.gmra.mrb[4].mxu1 %vm628_vm2, %v604_v9 }
 0x11f   : > { %1441 = vmatprep.mubr.msk.bf16.mxu1 %vm628_vm2, %v601_v40 }
 0x126   : > { %1442 = vmatmul.mubr.msk.bf16.vlgmr.msra.gmra.mrb[8].mxu1 %vm628_vm2, %v602_v50 }
 0x127   : > { %1445 = vmatprep.mubr.msk.bf16.mxu1 %vm628_vm2, %v603_v63  ;;  %1450 = vmatpush3.bf16.msra.mxu1 %v1539_v58 }
 0x128   : > { %1451 = vmatprep.subr.bf16.mxu1 %v1540_v10 }
 0x12b   : > { %1452 = vmatpush3.bf16.msra.mxu1 %v1540_v10 }
 0x12e   : > { %1446 = vmatmul.mubr.msk.bf16.gmra.mrb[12].mxu1 %vm628_vm2, %v604_v9 }
 0x12f   : > { %1453 = vmatprep.mubr.msk.bf16.mxu1 %vm628_vm2, %v601_v40 }
 0x136   : > { %1454 = vmatmul.mubr.msk.bf16.vlgmr.msra.gmra.mrb[16].mxu1 %vm628_vm2, %v602_v50 }
 0x137   : > { %1457 = vmatprep.mubr.msk.bf16.mxu1 %vm628_vm2, %v603_v63 }
 0x13e   : > { %1458 = vmatmul.mubr.msk.bf16.gmra.mrb[20].mxu1 %vm628_vm2, %v604_v9 }
 0x1e1   : > { %v1431_v11 = vpop.f32.mrb[0].mxu1 }
 0x1e2   : > { %v675_v13 = vpop.f32.mrb[1].mxu1  ;;  %v1763_v15 = vadd.f32 %v1431_v11, %v1302_v12 }
 0x1e3   : > { %v1432_v14 = vpop.f32.mrb[2].mxu1  ;;  %v676_v18 = vadd.f32 %v1302_v12, %v675_v13 }
 0x1e4   : > { %v1765_v16 = vadd.f32 %v1432_v14, %v1302_v12  ;;  %v678_v17 = vpop.f32.mrb[3].mxu1 }
 0x1e5   : > { %v679_v19 = vadd.f32 %v1302_v12, %v678_v17 }
 0x1e6   : > { %v883_v20 = vpack.c.bf16 %v1765_v16, %v1763_v15 }
 0x1e7   : > { %v882_v21 = vpack.c.bf16 %v679_v19, %v676_v18 }
 0x1e9   : > { %1469 = vmatprep.mubr.msk.bf16.mxu0 %vm890_vm9, %v882_v21 }
 0x1f1   : > { %v1435_v22 = vpop.f32.mrb[4].mxu1 }
 0x1f2   : > { %v1770_v23 = vadd.f32 %v1435_v22, %v1302_v12  ;;  %v691_v24 = vpop.f32.mrb[5].mxu1 }
 0x1f3   : > { %v1436_v25 = vpop.f32.mrb[6].mxu1  ;;  %v1774_v28 = vadd.f32 %v1302_v12, %v691_v24 }
 0x1f4   : > { %v1772_v26 = vadd.f32 %v1436_v25, %v1302_v12  ;;  %v694_v27 = vpop.f32.mrb[7].mxu1 }
 0x1f5   : > { %v1776_v29 = vadd.f32 %v1302_v12, %v694_v27 }
 0x1f6   : > { %v885_v30 = vpack.c.bf16 %v1772_v26, %v1770_v23 }
 0x1f7   : > { %v884_v31 = vpack.c.bf16 %v1776_v29, %v1774_v28 }
 0x1f9   : > { %v1443_v32 = vpop.f32.mrb[8].mxu1 }
 0x1fa   : > { %v763_v34 = vpop.f32.mrb[9].mxu1  ;;  %v772_v36 = vadd.f32 %v1443_v32, %v1309_v33 }
 0x1fb   : > { %v1444_v35 = vpop.f32.mrb[10].mxu1  ;;  %v764_v41 = vadd.f32 %v1309_v33, %v763_v34 }
 0x1fc   : > { %v775_v39 = vadd.f32 %v1444_v35, %v1309_v33  ;;  %v766_v40 = vpop.f32.mrb[11].mxu1 }
 0x1fd   : > { %v767_v42 = vadd.f32 %v1309_v33, %v766_v40 }
 0x1fe   : > { %v887_v43 = vpack.c.bf16 %v775_v39, %v772_v36 }
 0x1ff   : > { %v886_v44 = vpack.c.bf16 %v767_v42, %v764_v41 }
 0x200   : > { %v907_v62 = vsel %vm890_vm9, %v887_v43, 0 }
 0x201   : > { %v1447_v45 = vpop.f32.mrb[12].mxu1  ;;  %1493 = vmatprep.subr.msk.bf16.mxu0 %vm890_vm9, %v886_v44  ;;  %v904_v46 = vsel %vm890_vm9, %v886_v44, 0 }
 0x202   : > { %v779_v49 = vpop.f32.mrb[13].mxu1  ;;  %1462 = vmatpush3.bf16.xpose.msra.mxu0 %v904_v46  ;;  %v788_v51 = vadd.f32 %v1447_v45, %v1309_v33 }
 0x203   : > { %v1448_v50 = vpop.f32.mrb[14].mxu1  ;;  %1494 = vmatprep.subr.msk.bf16.mxu0 %vm890_vm9, %v887_v43  ;;  %v780_v54 = vadd.f32 %v1309_v33, %v779_v49 }
 0x204   : > { %v791_v52 = vadd.f32 %v1448_v50, %v1309_v33  ;;  %v782_v53 = vpop.f32.mrb[15].mxu1 }
 0x205   : > { %v783_v55 = vadd.f32 %v1309_v33, %v782_v53 }
 0x206   : > { %v889_v56 = vpack.c.bf16 %v791_v52, %v788_v51 }
 0x207   : > { %v888_v57 = vpack.c.bf16 %v783_v55, %v780_v54 }
 0x208   : > { %v913_v25 = vsel %vm890_vm9, %v889_v56, 0 }
 0x209   : > { %v1455_v58 = vpop.f32.mrb[16].mxu1  ;;  %v910_v11 = vsel %vm890_vm9, %v888_v57, 0 }
 0x20a   : > { %v851_v63 = vpop.f32.mrb[17].mxu1  ;;  %1464 = vmatpush3.bf16.xpose.msra.mxu0 %v907_v62  ;;  %v860_v1 = vadd.f32 %v1455_v58, %v1316_v59 }
 0x20b   : > { %v1456_v0 = vpop.f32.mrb[18].mxu1  ;;  %1495 = vmatprep.subr.msk.bf16.mxu0 %vm890_vm9, %v888_v57  ;;  %v852_v4 = vadd.f32 %v1316_v59, %v851_v63 }
 0x20c   : > { %v863_v2 = vadd.f32 %v1456_v0, %v1316_v59  ;;  %v854_v3 = vpop.f32.mrb[19].mxu1 }
 0x20d   : > { %v855_v5 = vadd.f32 %v1316_v59, %v854_v3 }
 0x20e   : > { %v1074_v6 = vpack.c.bf16 %v863_v2, %v860_v1 }
 0x20f   : > { %v1073_v9 = vpack.c.bf16 %v855_v5, %v852_v4 }
 0x211   : > { %v1459_v10 = vpop.f32.mrb[20].mxu1  ;;  %1477 = vmatprep.subr.bf16.mxu1 %v1073_v9 }
 0x212   : > { %v867_v12 = vpop.f32.mrb[21].mxu1  ;;  %1466 = vmatpush3.bf16.xpose.msra.mxu0 %v910_v11  ;;  %1478 = vmatpush3.bf16.msra.mxu1 %v1073_v9  ;;  %v876_v14 = vadd.f32 %v1459_v10, %v1316_v59 }
 0x213   : > { %v1460_v13 = vpop.f32.mrb[22].mxu1  ;;  %1496 = vmatprep.subr.msk.bf16.mxu0 %vm890_vm9, %v889_v56  ;;  %1479 = vmatprep.subr.bf16.mxu1 %v1074_v6  ;;  %v868_v19 = vadd.f32 %v1316_v59, %v867_v12 }
 0x214   : > { %v879_v17 = vadd.f32 %v1460_v13, %v1316_v59  ;;  %v870_v18 = vpop.f32.mrb[23].mxu1 }
 0x215   : > { %v871_v21 = vadd.f32 %v1316_v59, %v870_v18 }
 0x216   : > { %v1076_v22 = vpack.c.bf16 %v879_v17, %v876_v14  ;;  %1480 = vmatpush3.bf16.msra.mxu1 %v1074_v6 }
 0x217   : > { %v1075_v24 = vpack.c.bf16 %v871_v21, %v868_v19 }
 0x219   : > { %1481 = vmatprep.subr.bf16.mxu1 %v1075_v24 }
 0x21a   : > { %1468 = vmatpush3.bf16.xpose.msra.mxu0 %v913_v25  ;;  %1482 = vmatpush3.bf16.msra.mxu1 %v1075_v24 }
 0x21b   : > { %1483 = vmatprep.subr.bf16.mxu1 %v1076_v22 }
 0x21e   : > { %1484 = vmatpush3.bf16.msra.mxu1 %v1076_v22 }
 0x221   : > { %1470 = vmatmul.mubr.msk.bf16.vlgmr.msra.gmra.mrb[16].mxu0 %vm890_vm9, %v883_v20 }
 0x222   : > { %1473 = vmatprep.mubr.msk.bf16.mxu0 %vm890_vm9, %v884_v31 }
 0x229   : > { %1474 = vmatmul.mubr.msk.bf16.gmra.mrb[20].mxu0 %vm890_vm9, %v885_v30 }
 0x2f4   : > { %v1471_v27 = vpop.f32.mrb[16].mxu0 }
 0x2f5   : > { %v949_v32 = vpop.f32.mrb[17].mxu0  ;;  %v987_v33 = vsel %vm980_vm10, %v1471_v27, -inf }
 0x2f6   : > { %988 = vmax.xlane.f32.xlu1 %v987_v33  ;;  %v1472_v34 = vpop.f32.mrb[18].mxu0  ;;  %v981_v15 = vsel %vm980_vm10, %v949_v32, -inf }
 0x2f7   : > { %982 = vmax.xlane.f32.xlu0 %v981_v15  ;;  %v952_v16 = vpop.f32.mrb[19].mxu0  ;;  %v990_v20 = vsel %vm980_vm10, %v1472_v34, -inf }
 0x2f8   : > { %v984_v28 = vsel %vm980_vm10, %v952_v16, -inf }
 0x2fa   : > { %991 = vmax.xlane.f32.xlu1 %v990_v20 }
 0x2fb   : > { %985 = vmax.xlane.f32.xlu0 %v984_v28 }
 0x2fc   : > { %v1475_v23 = vpop.f32.mrb[20].mxu0 }
 0x2fd   : > { %v965_v26 = vpop.f32.mrb[21].mxu0  ;;  %v999_v36 = vsel %vm980_vm10, %v1475_v23, -inf }
 0x2fe   : > { %v1476_v29 = vpop.f32.mrb[22].mxu0  ;;  %v993_v30 = vsel %vm980_vm10, %v965_v26, -inf }
 0x2ff   : > { %994 = vmax.xlane.f32.xlu0 %v993_v30  ;;  %v968_v31 = vpop.f32.mrb[23].mxu0  ;;  %v1002_v39 = vsel %vm980_vm10, %v1476_v29, -inf }
 0x300   : > { %v996_v35 = vsel %vm980_vm10, %v968_v31, -inf }
 0x301   : > { %997 = vmax.xlane.f32.xlu1 %v996_v35 }
 0x303   : > { %1000 = vmax.xlane.f32.xlu0 %v999_v36 }
 0x305   : > { %1003 = vmax.xlane.f32.xlu1 %v1002_v39 }
 0x383   : > { %v989_v40 = vpop.xlane.xlu1 %988 }
 0x384   : > { %v1007_v41 = vsub.f32 %v1471_v27, %v989_v40  ;;  %v983_v42 = vpop.xlane.xlu0 %982  ;;  %v1154_v27 = vld [vmem:[#allocation2] sm:$0x1] }
 0x385   : > { %v1005_v43 = vsub.f32 %v949_v32, %v983_v42  ;;  %1497 = vpush %v1154_v27 }
 0x386   : > { %v1017_v44 = vmul.f32 1.442695, %v1007_v41 }
 0x387   : > { %v1013_v45 = vmul.f32 1.442695, %v1005_v43  ;;  %v992_v46 = vpop.xlane.xlu1 %991 }
 0x388   : > { %v1008_v49 = vsub.f32 %v1472_v34, %v992_v46  ;;  %v986_v50 = vpop.xlane.xlu0 %985 }
 0x389   : > { %1541 = vpow2.f32 %v1013_v45  ;;  %v1006_v51 = vsub.f32 %v952_v16, %v986_v50 }
 0x38a   : > { %1543 = vpow2.f32 %v1017_v44  ;;  %v1019_v52 = vmul.f32 1.442695, %v1008_v49 }
 0x38b   : > { %v1015_v53 = vmul.f32 1.442695, %v1006_v51 }
 0x38c   : > { %v995_v54 = vpop.xlane.xlu0 %994 }
 0x38d   : > { %1545 = vpow2.f32 %v1015_v53  ;;  %v1009_v55 = vsub.f32 %v965_v26, %v995_v54 }
 0x38e   : > { %v998_v56 = vpop.xlane.xlu1 %997  ;;  %1547 = vpow2.f32 %v1019_v52 }
 0x38f   : > { %v1021_v57 = vmul.f32 1.442695, %v1009_v55  ;;  %v1010_v58 = vsub.f32 %v968_v31, %v998_v56 }
 0x390   : > { %v1001_v59 = vpop.xlane.xlu0 %1000 }
 0x391   : > { %1549 = vpow2.f32 %v1021_v57  ;;  %v1023_v62 = vmul.f32 1.442695, %v1010_v58  ;;  %v1011_v63 = vsub.f32 %v1475_v23, %v1001_v59 }
 0x392   : > { %v1004_v0 = vpop.xlane.xlu1 %1003 }
 0x393   : > { %v1542_v1 = vpop.eup %1541  ;;  %1551 = vpow2.f32 %v1023_v62  ;;  %v1025_v2 = vmul.f32 1.442695, %v1011_v63  ;;  %v1012_v3 = vsub.f32 %v1476_v29, %v1004_v0 }
 0x394   : > { %v1029_v4 = vsel %vm980_vm10, %v1542_v1, 0.0  ;;  %v1544_v5 = vpop.eup %1543 }
 0x395   : > { %1553 = vpow2.f32 %v1025_v2  ;;  %v1027_v6 = vmul.f32 1.442695, %v1012_v3  ;;  %1030 = vadd.xlane.f32.xlu0 %v1029_v4  ;;  %v1035_v10 = vsel %vm980_vm10, %v1544_v5, 0.0 }
 0x397   : > { %v1546_v9 = vpop.eup %1545  ;;  %1555 = vpow2.f32 %v1027_v6 }
 0x398   : > { %v1032_v11 = vsel %vm980_vm10, %v1546_v9, 0.0  ;;  %v1548_v12 = vpop.eup %1547 }
 0x399   : > { %1036 = vadd.xlane.f32.xlu0 %v1035_v10  ;;  %1033 = vadd.xlane.f32.xlu1 %v1032_v11  ;;  %v1038_v17 = vsel %vm980_vm10, %v1548_v12, 0.0 }
 0x39b   : > { %v1550_v13 = vpop.eup %1549 }
 0x39c   : > { %v1041_v14 = vsel %vm980_vm10, %v1550_v13, 0.0 }
 0x39d   : > { %v1552_v18 = vpop.eup %1551  ;;  %1042 = vadd.xlane.f32.xlu0 %v1041_v14  ;;  %1039 = vadd.xlane.f32.xlu1 %v1038_v17 }
 0x39e   : > { %v1044_v22 = vsel %vm980_vm10, %v1552_v18, 0.0 }
 0x39f   : > { %v1554_v19 = vpop.eup %1553 }
 0x3a0   : > { %v1047_v21 = vsel %vm980_vm10, %v1554_v19, 0.0 }
 0x3a1   : > { %v1556_v24 = vpop.eup %1555  ;;  %1048 = vadd.xlane.f32.xlu0 %v1047_v21  ;;  %1045 = vadd.xlane.f32.xlu1 %v1044_v22 }
 0x3a2   : > { %v1050_v25 = vsel %vm980_vm10, %v1556_v24, 0.0 }
 0x3a5   : > { %1051 = vadd.xlane.f32.xlu1 %v1050_v25 }
 0x3b6   : > { %s1498_s26 = spop %1497 }
 0x3b7   : > { %v1156_v55 = vstv %s1498_s26 }
 0x422   : > { %v1031_v32 = vpop.xlane.xlu0 %1030 }
 0x423   : > { %1557 = vrcp.f32 %v1031_v32 }
 0x426   : > { %v1037_v33 = vpop.xlane.xlu0 %1036  ;;  %v1034_v34 = vpop.xlane.xlu1 %1033 }
 0x427   : > { %1559 = vrcp.f32 %v1034_v34 }
 0x428   : > { %1561 = vrcp.f32 %v1037_v33 }
 0x42a   : > { %v1043_v15 = vpop.xlane.xlu0 %1042  ;;  %v1040_v16 = vpop.xlane.xlu1 %1039 }
 0x42b   : > { %1563 = vrcp.f32 %v1040_v16 }
 0x42c   : > { %1565 = vrcp.f32 %v1043_v15 }
 0x42d   : > { %v1558_v23 = vpop.eup %1557 }
 0x42e   : > { %v1049_v20 = vpop.xlane.xlu0 %1048  ;;  %v1046_v28 = vpop.xlane.xlu1 %1045  ;;  %v1061_v30 = vmul.f32 %v1558_v23, %v1542_v1 }
 0x42f   : > { %1567 = vrcp.f32 %v1046_v28 }
 0x430   : > { %1569 = vrcp.f32 %v1049_v20 }
 0x431   : > { %v1560_v26 = vpop.eup %1559 }
 0x432   : > { %v1052_v29 = vpop.xlane.xlu1 %1051  ;;  %v1062_v31 = vmul.f32 %v1560_v26, %v1546_v9  ;;  %v1562_v35 = vpop.eup %1561 }
 0x433   : > { %1571 = vrcp.f32 %v1052_v29  ;;  %v1063_v40 = vmul.f32 %v1562_v35, %v1544_v5 }
 0x434   : > { %v1069_v36 = vpack.c.bf16 %v1062_v31, %v1061_v30 }
 0x435   : > { %v1564_v39 = vpop.eup %1563 }
 0x436   : > { %v1064_v41 = vmul.f32 %v1564_v39, %v1548_v12  ;;  %1485 = vmatprep.mubr.msk.bf16.mxu1 %vm980_vm10, %v1069_v36  ;;  %v1566_v42 = vpop.eup %1565 }
 0x437   : > { %v1065_v46 = vmul.f32 %v1566_v42, %v1550_v13 }
 0x438   : > { %v1070_v43 = vpack.c.bf16 %v1064_v41, %v1063_v40 }
 0x439   : > { %v1568_v44 = vpop.eup %1567 }
 0x43a   : > { %v1570_v45 = vpop.eup %1569  ;;  %1486 = vmatmul.mubr.msk.bf16.vlgmr.msra.gmra.mrb[24].mxu1 %vm980_vm10, %v1070_v43  ;;  %v1066_v49 = vmul.f32 %v1568_v44, %v1552_v18 }
 0x43b   : > { %v1067_v52 = vmul.f32 %v1570_v45, %v1554_v19 }
 0x43c   : > { %v1071_v51 = vpack.c.bf16 %v1066_v49, %v1065_v46 }
 0x43d   : > { %v1572_v50 = vpop.eup %1571 }
 0x43e   : > { %v1068_v53 = vmul.f32 %v1572_v50, %v1556_v24  ;;  %1489 = vmatprep.mubr.msk.bf16.mxu1 %vm980_vm10, %v1071_v51 }
 0x440   : > { %v1072_v54 = vpack.c.bf16 %v1068_v53, %v1067_v52 }
 0x442   : > { %1490 = vmatmul.mubr.msk.bf16.gmra.mrb[28].mxu1 %vm980_vm10, %v1072_v54 }
 0x50d   : > { %v1487_v56 = vpop.f32.mrb[24].mxu1 }
 0x50e   : > { %v1159_v57 = vmul.f32 %v1487_v56, %v1156_v55  ;;  %v1123_v58 = vpop.f32.mrb[25].mxu1 }
 0x50f   : > { %v1157_v59 = vmul.f32 %v1156_v55, %v1123_v58  ;;  %v1488_v62 = vpop.f32.mrb[26].mxu1 }
 0x510   : > { %v1167_v63 = vadd.f32 %v1159_v57, %v1722_v47  ;;  %v1160_v0 = vmul.f32 %v1488_v62, %v1156_v55  ;;  %v1126_v1 = vpop.f32.mrb[27].mxu1 }
 0x511   : > { %v1165_v2 = vadd.f32 %v1157_v59, %v1715_v37  ;;  %v1158_v3 = vmul.f32 %v1156_v55, %v1126_v1 }
 0x512   : > { %v1345_v4 = vpack.c.bf16 %v1167_v63, %v1167_v63  ;;  %v1168_v5 = vadd.f32 %v1160_v0, %v1724_v48 }
 0x513   : > { %v1343_v6 = vpack.c.bf16 %v1165_v2, %v1165_v2  ;;  %v1166_v47 = vadd.f32 %v1158_v3, %v1717_v38 }
 0x514   : > { %1208 = vst.msk [vmem:[%s1833_s30 + $0x8] sm:$0xf] %vm1205_vm11, %v1345_v4  ;;  %v1346_v9 = vpack.c.bf16 %v1168_v5, %v1168_v5 }
 0x515   : > { %1206 = vst.msk [vmem:[%s1833_s30] sm:$0xf] %vm1205_vm11, %v1343_v6  ;;  %v1344_v10 = vpack.c.bf16 %v1166_v47, %v1166_v47  ;;  %v1491_v11 = vpop.f32.mrb[28].mxu1 }
 0x516   : > { %1209 = vst.msk [vmem:[%s1833_s30 + $0xc] sm:$0xf] %vm1205_vm11, %v1346_v9  ;;  %v1163_v12 = vmul.f32 %v1491_v11, %v1156_v55  ;;  %v1139_v37 = vpop.f32.mrb[29].mxu1 }
 0x517   : > { %1207 = vst.msk [vmem:[%s1833_s30 + $0x4] sm:$0xf] %vm1205_vm11, %v1344_v10  ;;  %v1161_v48 = vmul.f32 %v1156_v55, %v1139_v37  ;;  %v1492_v13 = vpop.f32.mrb[30].mxu1 }
 0x518   : > { %v1171_v38 = vadd.f32 %v1163_v12, %v1742_v7  ;;  %v1164_v14 = vmul.f32 %v1492_v13, %v1156_v55  ;;  %v1142_v17 = vpop.f32.mrb[31].mxu1 }
 0x519   : > { %v1169_v18 = vadd.f32 %v1161_v48, %v1735_v60  ;;  %v1162_v19 = vmul.f32 %v1156_v55, %v1142_v17 }
 0x51a   : > { %v1349_v21 = vpack.c.bf16 %v1171_v38, %v1171_v38  ;;  %v1172_v22 = vadd.f32 %v1164_v14, %v1744_v8 }
 0x51b   : > { %v1347_v24 = vpack.c.bf16 %v1169_v18, %v1169_v18  ;;  %v1170_v25 = vadd.f32 %v1162_v19, %v1737_v61 }
 0x51c   : > { %1212 = vst.msk [vmem:[%s1833_s30 + $0x18] sm:$0xf] %vm1205_vm11, %v1349_v21  ;;  %v1350_v27 = vpack.c.bf16 %v1172_v22, %v1172_v22 }
 0x51d   : > { %1210 = vst.msk [vmem:[%s1833_s30 + $0x10] sm:$0xf] %vm1205_vm11, %v1347_v24  ;;  %v1348_v32 = vpack.c.bf16 %v1170_v25, %v1170_v25 }
 0x51e   : > { %1213 = vst.msk [vmem:[%s1833_s30 + $0x1c] sm:$0xf] %vm1205_vm11, %v1350_v27 }
 0x51f   : > { %1211 = vst.msk [vmem:[%s1833_s30 + $0x14] sm:$0xf] %vm1205_vm11, %v1348_v32 }
 0x520 PF: > { %s21_s11 = sadd.s32 1, %s1579_s11  }
 0x521   : > { %p18_p4 = scmp.ge.s32.totalorder %s21_s11, 4  }
 0x523   :  { %20 = sbr.rel (!%p18_p4) target bundleno = 3 (0x3), region = 86 }

// kernel: discriminator_forward.8
= control target key start
LH: loop header
LB: loop body
LE: loop exit
PB: predicated region body
PF: predicated region fallthrough
CT: control target
= control target key end

     0   :  { %s1458_s11 = smov 0   ;;  %s1664_s0 = inlined_call_operand.vmem [shape: bf16[2,16,512], index: 0, kind: input, shape index: {}]   ;;  %s1665_s1 = inlined_call_operand.vmem [shape: bf16[512,64], index: 1, kind: input, shape index: {}]   ;;  %s1666_s2 = inlined_call_operand.vmem [shape: bf16[64,8], index: 2, kind: input, shape index: {}]   ;;  %s1667_s3 = inlined_call_operand.vmem [shape: f32[1,8], index: 3, kind: input, shape index: {}]   ;;  %s1668_s4 = inlined_call_operand.vmem [shape: bf16[64,8], index: 4, kind: input, shape index: {}]   ;;  %s1669_s5 = inlined_call_operand.vmem [shape: f32[1,8], index: 5, kind: input, shape index: {}]   ;;  %s1670_s6 = inlined_call_operand.vmem [shape: bf16[64,64], index: 6, kind: input, shape index: {}]   ;;  %s1671_s7 = inlined_call_operand.vmem [shape: f32[1,64], index: 7, kind: input, shape index: {}]   ;;  %s1672_s8 = inlined_call_operand.<no memory space> [shape: f32[1,1], index: 8, kind: input, shape index: {}]   ;;  %s1673_s9 = inlined_call_operand.vmem [shape: bf16[2,16,64], index: 9, kind: output, shape index: {}]  }
   0x1   :  { %v14_v0 = vstv %s1672_s8 }
   0x2   :  { %15 = vst [vmem:[#allocation2] sm:$0x1] %v14_v0 }
   0x3 LB: > { %s1141_s12 = sadd.s32 4294967295, %s1401_s11   ;;  %p1145_p0 = scmp.ge.s32.totalorder %s1401_s11, 1  ;;  %s1401_s11 = sphi %s1458_s11, %s21_s11  }
   0x4   : > { %p289_p1 = scmp.lt.s32.totalorder %s1401_s11, 3 }
   0x6   : > { %p290_p2 = pnand %p1145_p0, %p289_p1 }
   0x7   : > { %v1337_v1 = vld [vmem:[%s1665_s1 + $0x40] sm:$0xff] (!%p290_p2)   ;;  %v1341_v5 = vld [vmem:[%s1665_s1 + $0x48] sm:$0xff] (!%p290_p2)   ;;  %v1345_v9 = vld [vmem:[%s1665_s1 + $0x50] sm:$0xff] (!%p290_p2)   ;;  %p325_p3 = scmp.lt.s32.totalorder (!%p290_p2), %s1141_s12, 1  ;;  %v1403_v35 = vmov (!%p290_p2), 0.0   ;;  %vm1404_vm0 = vmmov (!%p290_p2), 0  }
   0x8   : > { %293 = sbr.rel (%p290_p2) target bundleno = 1245 (0x4dd), region = 56  ;;  %v1338_v2 = vld [vmem:[%s1665_s1 + $0xc0] sm:$0xff] (!%p290_p2)   ;;  %1214 = vmatprep.subr.bf16.mxu0 (!%p290_p2), %v1337_v1  ;;  %v1342_v6 = vld [vmem:[%s1665_s1 + $0xc8] sm:$0xff] (!%p290_p2)   ;;  %v1346_v10 = vld [vmem:[%s1665_s1 + $0xd0] sm:$0xff] (!%p290_p2)   ;;  %vm744_vm3 = vcmask (!%p290_p2), 523264   ;;  %vm951_vm4 = vcmask (!%p290_p2), 64512  }
   0x9   : > { %v1339_v3 = vld [vmem:[%s1665_s1] sm:$0xff] (!%p290_p2)   ;;  %1236 = vmatprep.subr.bf16.mxu1 (!%p290_p2), %v1338_v2  ;;  %v1343_v7 = vld [vmem:[%s1665_s1 + $0x8] sm:$0xff] (!%p290_p2)   ;;  %v1347_v11 = vld [vmem:[%s1665_s1 + $0x10] sm:$0xff] (!%p290_p2)   ;;  %vm999_vm5 = vcmask (!%p290_p2), 130048   ;;  %vm1083_vm6 = vcmask (!%p290_p2), 519168  }
   0xa   : > { %v1340_v4 = vld [vmem:[%s1665_s1 + $0x80] sm:$0xff] (!%p290_p2)   ;;  %1215 = vmatpush3.bf16.msra.mxu0 (!%p290_p2), %v1339_v3  ;;  %v1344_v8 = vld [vmem:[%s1665_s1 + $0x88] sm:$0xff] (!%p290_p2)   ;;  %v1348_v12 = vld [vmem:[%s1665_s1 + $0x90] sm:$0xff] (!%p290_p2)  }
   0xb   : > { %1237 = vmatpush3.bf16.msra.mxu1 (!%p290_p2), %v1340_v4  ;;  %1216 = vmatprep.subr.bf16.mxu0 (!%p290_p2), %v1341_v5  ;;  %v1349_v13 = vld [vmem:[%s1665_s1 + $0x58] sm:$0xff] (!%p290_p2)   ;;  %v1353_v17 = vld [vmem:[%s1665_s1 + $0x60] sm:$0xff] (!%p290_p2)   ;;  %v1357_v21 = vld [vmem:[%s1665_s1 + $0x68] sm:$0xff] (!%p290_p2)  }
   0xc   : > { %1238 = vmatprep.subr.bf16.mxu1 (!%p290_p2), %v1342_v6  ;;  %v1350_v14 = vld [vmem:[%s1665_s1 + $0xd8] sm:$0xff] (!%p290_p2)   ;;  %v1354_v18 = vld [vmem:[%s1665_s1 + $0xe0] sm:$0xff] (!%p290_p2)   ;;  %v1358_v22 = vld [vmem:[%s1665_s1 + $0xe8] sm:$0xff] (!%p290_p2)  }
   0xd   : > { %v1351_v15 = vld [vmem:[%s1665_s1 + $0x18] sm:$0xff] (!%p290_p2)   ;;  %v1355_v19 = vld [vmem:[%s1665_s1 + $0x20] sm:$0xff] (!%p290_p2)   ;;  %v1359_v23 = vld [vmem:[%s1665_s1 + $0x28] sm:$0xff] (!%p290_p2)  }
   0xe   : > { %1217 = vmatpush3.bf16.msra.mxu0 (!%p290_p2), %v1343_v7  ;;  %v1352_v16 = vld [vmem:[%s1665_s1 + $0x98] sm:$0xff] (!%p290_p2)   ;;  %v1356_v20 = vld [vmem:[%s1665_s1 + $0xa0] sm:$0xff] (!%p290_p2)   ;;  %v1360_v24 = vld [vmem:[%s1665_s1 + $0xa8] sm:$0xff] (!%p290_p2)  }
   0xf   : > { %1239 = vmatpush3.bf16.msra.mxu1 %v1344_v8  ;;  %1218 = vmatprep.subr.bf16.mxu0 %v1345_v9  ;;  %s1675_s12 = smov (!%p325_p3, %s1141_s12), 1  ;;  %v1361_v25 = vld [vmem:[%s1665_s1 + $0x70] sm:$0xff]   ;;  %v1365_v29 = vld [vmem:[%s1665_s1 + $0x78] sm:$0xff]   ;;  %v1375_v38 = vld [vmem:[%s1666_s2] sm:$0xff]  }
  0x10   : > { %1240 = vmatprep.subr.bf16.mxu1 %v1346_v10  ;;  %v1362_v26 = vld [vmem:[%s1665_s1 + $0xf0] sm:$0xff]   ;;  %s1210_s26 = sshll.u32 %s1675_s12, 5  ;;  %v1366_v30 = vld [vmem:[%s1665_s1 + $0xf8] sm:$0xff]   ;;  %v1376_v39 = vld [vmem:[%s1668_s4] sm:$0xff]   ;;  %s1211_s10 = sshll.u32 %s1675_s12, 3 }
  0x11   : > { %v1363_v27 = vld [vmem:[%s1665_s1 + $0x30] sm:$0xff]   ;;  %s329_s15 = scalar_lea.vmem %s1664_s0, %s1210_s26  ;;  %v1367_v31 = vld [vmem:[%s1665_s1 + $0x38] sm:$0xff]   ;;  %v1377_v40 = vld [vmem:[%s1666_s2 + $0x8] sm:$0xff]   ;;  %s334_s8 = scalar_lea.vmem %s1673_s9, %s1211_s10 }
  0x12   : > { %1219 = vmatpush3.bf16.msra.mxu0 %v1347_v11  ;;  %v1364_v28 = vld [vmem:[%s1665_s1 + $0xb0] sm:$0xff]   ;;  %v1368_v32 = vld [vmem:[%s1665_s1 + $0xb8] sm:$0xff]   ;;  %v1378_v41 = vld [vmem:[%s1668_s4 + $0x8] sm:$0xff]  }
  0x13   : > { %1241 = vmatpush3.bf16.msra.mxu1 %v1348_v12  ;;  %1220 = vmatprep.subr.bf16.mxu0 %v1349_v13  ;;  %v1369_v33 = vld [vmem:[%s329_s15] ss:$16 sps:$4 sm:$0xff]   ;;  %v1371_v34 = vld [vmem:[%s329_s15 + $0x4] ss:$16 sps:$4 sm:$0xff]   ;;  %v1372_v36 = vld [vmem:[%s329_s15 + $0x8] ss:$16 sps:$4 sm:$0xff]  }
  0x14   : > { %1242 = vmatprep.subr.bf16.mxu1 %v1350_v14  ;;  %v1374_v37 = vld [vmem:[%s329_s15 + $0xc] ss:$16 sps:$4 sm:$0xff]   ;;  %648 = vmatprep.mubr.bf16.mxu0 %v1371_v34  ;;  %v1379_v42 = vld [vmem:[%s1666_s2 + $0x10] sm:$0xff]   ;;  %v1383_v0 = vld [vmem:[%s1670_s6] sm:$0xff]  }
  0x15   : > { %689 = vmatprep.mubr.bf16.mxu1 %v1374_v37  ;;  %v1380_v43 = vld [vmem:[%s1668_s4 + $0x10] sm:$0xff]   ;;  %v1381_v44 = vld [vmem:[%s1666_s2 + $0x18] sm:$0xff]   ;;  %v1384_v2 = vld [vmem:[%s1670_s6 + $0x8] sm:$0xff]  }
  0x16   : > { %1221 = vmatpush3.bf16.msra.mxu0 %v1351_v15  ;;  %v1382_v45 = vld [vmem:[%s1668_s4 + $0x18] sm:$0xff]   ;;  %v1385_v3 = vld [vmem:[%s1670_s6 + $0x10] sm:$0xff]   ;;  %v1186_v5 = vld [vmem:[%s1667_s3] ss:$0 sm:$0xff] }
  0x17   : > { %1243 = vmatpush3.bf16.msra.mxu1 %v1352_v16  ;;  %1222 = vmatprep.subr.bf16.mxu0 %v1353_v17  ;;  %v1386_v4 = vld [vmem:[%s1670_s6 + $0x18] sm:$0xff]   ;;  %v1192_v7 = vld [vmem:[%s1669_s5] ss:$0 sm:$0xff] }
  0x18   : > { %1244 = vmatprep.subr.bf16.mxu1 %v1354_v18 }
  0x1a   : > { %1223 = vmatpush3.bf16.msra.mxu0 %v1355_v19 }
  0x1b   : > { %1245 = vmatpush3.bf16.msra.mxu1 %v1356_v20  ;;  %1224 = vmatprep.subr.bf16.mxu0 %v1357_v21 }
  0x1c   : > { %1246 = vmatprep.subr.bf16.mxu1 %v1358_v22  ;;  %v1198_v22 = vld [vmem:[%s1671_s7] ss:$0 sm:$0xff] }
  0x1e   : > { %1225 = vmatpush3.bf16.msra.mxu0 %v1359_v23 }
  0x1f   : > { %1247 = vmatpush3.bf16.msra.mxu1 %v1360_v24  ;;  %1226 = vmatprep.subr.bf16.mxu0 %v1361_v25 }
  0x20   : > { %1248 = vmatprep.subr.bf16.mxu1 %v1362_v26 }
  0x22   : > { %1227 = vmatpush3.bf16.msra.mxu0 %v1363_v27 }
  0x23   : > { %1249 = vmatpush3.bf16.msra.mxu1 %v1364_v28  ;;  %1228 = vmatprep.subr.bf16.mxu0 %v1365_v29 }
  0x24   : > { %1250 = vmatprep.subr.bf16.mxu1 %v1366_v30 }
  0x26   : > { %1229 = vmatpush3.bf16.msra.mxu0 %v1367_v31 }
  0x27   : > { %1251 = vmatpush3.bf16.msra.mxu1 %v1368_v32  ;;  %1277 = vmatprep.subr.bf16.mxu0 %v1403_v35 }
  0x28   : > { %1289 = vmatprep.subr.bf16.mxu1 %v1403_v35 }
  0x29   : > { %649 = vmatmul.mubr.bf16.vlgmr.msra.gmra.mrb[0].mxu0 %v1369_v33 }
  0x2a   : > { %690 = vmatmul.mubr.bf16.vlgmr.msra.gmra.mrb[0].mxu1 %v1372_v36  ;;  %1278 = vmatpush3.bf16.msra.mxu0 %v1375_v38 }
  0x2b   : > { %1290 = vmatpush3.bf16.msra.mxu1 %v1376_v39  ;;  %1279 = vmatprep.subr.bf16.mxu0 %v1403_v35 }
  0x2c   : > { %1291 = vmatprep.subr.bf16.mxu1 %v1403_v35  ;;  %1285 = vmatprep.mubr.msk.bf16.mxu0 %vm1404_vm0, %v1403_v35 }
  0x2d   : > { %1297 = vmatprep.mubr.msk.bf16.mxu1 %vm1404_vm0, %v1403_v35 }
  0x2e   : > { %1280 = vmatpush3.bf16.msra.mxu0 %v1377_v40 }
  0x2f   : > { %1292 = vmatpush3.bf16.msra.mxu1 %v1378_v41  ;;  %1281 = vmatprep.subr.bf16.mxu0 %v1403_v35 }
  0x30   : > { %1293 = vmatprep.subr.bf16.mxu1 %v1403_v35 }
  0x32   : > { %1282 = vmatpush3.bf16.msra.mxu0 %v1379_v42 }
  0x33   : > { %1294 = vmatpush3.bf16.msra.mxu1 %v1380_v43  ;;  %1283 = vmatprep.subr.bf16.mxu0 %v1403_v35 }
  0x34   : > { %1295 = vmatprep.subr.bf16.mxu1 %v1403_v35 }
  0x36   : > { %1284 = vmatpush3.bf16.msra.mxu0 %v1381_v44 }
  0x37   : > { %1296 = vmatpush3.bf16.msra.mxu1 %v1382_v45  ;;  %1301 = vmatprep.subr.bf16.mxu0 %v1403_v35 }
  0x38   : > { %1313 = vmatprep.subr.bf16.mxu1 %v1403_v35 }
  0xfc   : > { %v1230_v46 = vpop.f32.mrb[0].mxu0 }
  0xfd   : > { %v1252_v47 = vpop.f32.mrb[0].mxu1  ;;  %v1231_v48 = vpop.f32.mrb[1].mxu0 }
  0xfe   : > { %v1232_v49 = vadd.f32 %v1231_v48, %v1230_v46  ;;  %v1253_v50 = vpop.f32.mrb[1].mxu1  ;;  %v1233_v51 = vpop.f32.mrb[2].mxu0  ;;  %v1068_v46 = vld [vmem:[#allocation2] sm:$0x1] }
  0xff   : > { %v1254_v52 = vadd.f32 %v1253_v50, %v1252_v47  ;;  %v1255_v53 = vpop.f32.mrb[2].mxu1  ;;  %v1234_v54 = vpop.f32.mrb[3].mxu0  ;;  %1325 = vpush %v1068_v46 }
 0x100   : > { %v1235_v55 = vadd.f32 %v1234_v54, %v1233_v51  ;;  %v1256_v56 = vpop.f32.mrb[3].mxu1 }
 0x101   : > { %v692_v57 = vadd.f32 %v1254_v52, %v1232_v49  ;;  %v1257_v58 = vadd.f32 %v1256_v56, %v1255_v53 }
 0x103   : > { %v700_v59 = vmul.f32 0.2, %v692_v57  ;;  %v695_v60 = vadd.f32 %v1257_v58, %v1235_v55  ;;  %vm698_vm1 = vcmp.ge.f32.partialorder %v692_v57, 0.0 }
 0x105   : > { %vm699_vm2 = vcmp.ge.f32.partialorder %v695_v60, 0.0  ;;  %v701_v61 = vmul.f32 0.2, %v695_v60  ;;  %v1610_v62 = vsel %vm698_vm1, %v692_v57, %v700_v59 }
 0x107   : > { %v1612_v63 = vsel %vm699_vm2, %v695_v60, %v701_v61 }
 0x108   : > { %v704_v1 = vpack.c.bf16 %v1612_v63, %v1610_v62 }
 0x10a   : > { %1286 = vmatmul.mubr.msk.bf16.vlgmr.msra.gmra.mrb[4].mxu0 %vm744_vm3, %v704_v1  ;;  %1298 = vmatmul.mubr.msk.bf16.vlgmr.msra.gmra.mrb[4].mxu1 %vm744_vm3, %v704_v1 }
 0x10b   : > { %1302 = vmatpush3.bf16.msra.mxu0 %v1383_v0  ;;  %1309 = vmatprep.mubr.msk.bf16.mxu0 %vm1404_vm0, %v1403_v35 }
 0x10c   : > { %1303 = vmatprep.subr.bf16.mxu0 %v1403_v35  ;;  %1315 = vmatprep.mubr.msk.bf16.mxu1 %vm1404_vm0, %v1403_v35 }
 0x10f   : > { %1304 = vmatpush3.bf16.msra.mxu0 %v1384_v2 }
 0x110   : > { %1305 = vmatprep.subr.bf16.mxu0 %v1403_v35 }
 0x113   : > { %1306 = vmatpush3.bf16.msra.mxu0 %v1385_v3 }
 0x114   : > { %1307 = vmatprep.subr.bf16.mxu0 %v1403_v35 }
 0x117   : > { %1308 = vmatpush3.bf16.msra.mxu0 %v1386_v4 }
 0x11a   : > { %1310 = vmatmul.mubr.msk.bf16.vlgmr.msra.gmra.mrb[8].mxu0 %vm744_vm3, %v704_v1 }
 0x130   : > { %s1326_s30 = spop %1325 }
 0x131   : > { %v1070_v54 = vstv %s1326_s30 }
 0x1dd   : > { %v782_v6 = vpop.f32.mrb[4].mxu0  ;;  %v862_v8 = vpop.f32.mrb[4].mxu1 }
 0x1de   : > { %v1287_v9 = vpop.f32.mrb[5].mxu0  ;;  %v1299_v10 = vpop.f32.mrb[5].mxu1  ;;  %v783_v13 = vadd.f32 %v1186_v5, %v782_v6  ;;  %v863_v14 = vadd.f32 %v1192_v7, %v862_v8 }
 0x1df   : > { %v785_v11 = vpop.f32.mrb[6].mxu0  ;;  %v865_v12 = vpop.f32.mrb[6].mxu1 }
 0x1e0   : > { %v786_v15 = vadd.f32 %v1186_v5, %v785_v11  ;;  %v866_v16 = vadd.f32 %v1192_v7, %v865_v12  ;;  %v1288_v17 = vpop.f32.mrb[7].mxu0  ;;  %v1300_v18 = vpop.f32.mrb[7].mxu1 }
 0x1e2   : > { %v949_v19 = vpack.c.bf16 %v786_v15, %v783_v13  ;;  %v950_v20 = vpack.c.bf16 %v866_v16, %v863_v14 }
 0x1e4   : > { %v956_v21 = vsel %vm951_vm4, %v950_v20, 0 }
 0x1e5   : > { %1314 = vmatpush3.bf16.xpose.msra.mxu1 %v956_v21 }
 0x1e6   : > { %1319 = vmatprep.subr.bf16.mxu1 %v1403_v35 }
 0x1ec   : > { %1316 = vmatmul.mubr.msk.bf16.vlgmr.msra.gmra.mrb[8].mxu1 %vm951_vm4, %v949_v19 }
 0x1ed   : > { %v942_v23 = vpop.f32.mrb[8].mxu0  ;;  %1321 = vmatprep.mubr.msk.bf16.mxu1 %vm1404_vm0, %v1403_v35 }
 0x1ee   : > { %v1311_v24 = vpop.f32.mrb[9].mxu0  ;;  %v943_v26 = vadd.f32 %v1198_v22, %v942_v23 }
 0x1ef   : > { %v945_v25 = vpop.f32.mrb[10].mxu0 }
 0x1f0   : > { %v946_v27 = vadd.f32 %v1198_v22, %v945_v25  ;;  %v1312_v28 = vpop.f32.mrb[11].mxu0 }
 0x1f2   : > { %v1023_v29 = vpack.c.bf16 %v946_v27, %v943_v26 }
 0x1f4   : > { %1320 = vmatpush3.bf16.msra.mxu1 %v1023_v29 }
 0x2bf   : > { %v992_v30 = vpop.f32.mrb[8].mxu1 }
 0x2c0   : > { %v1317_v31 = vpop.f32.mrb[9].mxu1  ;;  %v1000_v32 = vsel %vm999_vm5, %v992_v30, -inf }
 0x2c1   : > { %1001 = vmax.xlane.f32.xlu0 %v1000_v32  ;;  %v995_v33 = vpop.f32.mrb[10].mxu1 }
 0x2c2   : > { %v1318_v34 = vpop.f32.mrb[11].mxu1  ;;  %v1003_v36 = vsel %vm999_vm5, %v995_v33, -inf }
 0x2c5   : > { %1004 = vmax.xlane.f32.xlu0 %v1003_v36 }
 0x34e   : > { %v1002_v37 = vpop.xlane.xlu0 %1001 }
 0x34f   : > { %v1006_v35 = vsub.f32 %v992_v30, %v1002_v37 }
 0x351   : > { %v1008_v38 = vmul.f32 1.442695, %v1006_v35 }
 0x352   : > { %v1005_v39 = vpop.xlane.xlu0 %1004 }
 0x353   : > { %1387 = vpow2.f32 %v1008_v38  ;;  %v1007_v40 = vsub.f32 %v995_v33, %v1005_v39 }
 0x355   : > { %v1010_v41 = vmul.f32 1.442695, %v1007_v40 }
 0x357   : > { %1389 = vpow2.f32 %v1010_v41 }
 0x35d   : > { %v1388_v42 = vpop.eup %1387 }
 0x35e   : > { %v1012_v43 = vsel %vm999_vm5, %v1388_v42, 0.0 }
 0x35f   : > { %1013 = vadd.xlane.f32.xlu1 %v1012_v43 }
 0x361   : > { %v1390_v44 = vpop.eup %1389 }
 0x362   : > { %v1015_v45 = vsel %vm999_vm5, %v1390_v44, 0.0 }
 0x363   : > { %1016 = vadd.xlane.f32.xlu1 %v1015_v45 }
 0x3ec   : > { %v1014_v47 = vpop.xlane.xlu1 %1013 }
 0x3ed   : > { %1391 = vrcp.f32 %v1014_v47 }
 0x3f0   : > { %v1017_v48 = vpop.xlane.xlu1 %1016 }
 0x3f1   : > { %1393 = vrcp.f32 %v1017_v48 }
 0x3f7   : > { %v1392_v49 = vpop.eup %1391 }
 0x3f8   : > { %v1020_v51 = vmul.f32 %v1392_v49, %v1388_v42 }
 0x3fb   : > { %v1394_v50 = vpop.eup %1393 }
 0x3fc   : > { %v1021_v52 = vmul.f32 %v1394_v50, %v1390_v44 }
 0x3fe   : > { %v1022_v53 = vpack.c.bf16 %v1021_v52, %v1020_v51 }
 0x400   : > { %1322 = vmatmul.mubr.msk.bf16.vlgmr.msra.gmra.mrb[12].mxu1 %vm999_vm5, %v1022_v53 }
 0x4d3   : > { %v1061_v55 = vpop.f32.mrb[12].mxu1 }
 0x4d4   : > { %v1071_v56 = vmul.f32 %v1070_v54, %v1061_v55  ;;  %v1323_v57 = vpop.f32.mrb[13].mxu1 }
 0x4d5   : > { %v1064_v58 = vpop.f32.mrb[14].mxu1 }
 0x4d6   : > { %v1073_v59 = vadd.f32 %v1071_v56, %v1610_v62  ;;  %v1072_v60 = vmul.f32 %v1070_v54, %v1064_v58  ;;  %v1324_v61 = vpop.f32.mrb[15].mxu1 }
 0x4d8   : > { %v1212_v0 = vpack.c.bf16 %v1073_v59, %v1073_v59  ;;  %v1074_v1 = vadd.f32 %v1072_v60, %v1612_v63 }
 0x4da   : > { %1084 = vst.msk [vmem:[%s334_s8] sm:$0xf] %vm1083_vm6, %v1212_v0  ;;  %v1213_v2 = vpack.c.bf16 %v1074_v1, %v1074_v1 }
 0x4dc   : > { %1085 = vst.msk [vmem:[%s334_s8 + $0x4] sm:$0xf] %vm1083_vm6, %v1213_v2 }
 0x4dd PF: > { %s21_s11 = sadd.s32 1, %s1401_s11  }
 0x4de   : > { %p18_p4 = scmp.ge.s32.totalorder %s21_s11, 4  }
 0x4e0   :  { %20 = sbr.rel (!%p18_p4) target bundleno = 3 (0x3), region = 86 }

// kernel: discriminator_forward.9
= control target key start
LH: loop header
LB: loop body
LE: loop exit
PB: predicated region body
PF: predicated region fallthrough
CT: control target
= control target key end

     0   :  { %s991_s20 = smov 0   ;;  %s1137_s0 = inlined_call_operand.vmem [shape: bf16[2,16,576], index: 0, kind: input, shape index: {}]   ;;  %s1138_s1 = inlined_call_operand.vmem [shape: f32[2,16,64], index: 1, kind: input, shape index: {}]   ;;  %s1139_s2 = inlined_call_operand.vmem [shape: bf16[576,64], index: 2, kind: input, shape index: {}]   ;;  %s1140_s3 = inlined_call_operand.vmem [shape: f32[16,64], index: 3, kind: input, shape index: {}]   ;;  %s1141_s4 = inlined_call_operand.<no memory space> [shape: f32[1,1], index: 4, kind: input, shape index: {}]   ;;  %s1142_s5 = inlined_call_operand.vmem [shape: f32[2,1,1], index: 5, kind: output, shape index: {}]  }
   0x1   :  { %v10_v0 = vstv %s1141_s4 }
   0x2   :  { %11 = vst [vmem:[#allocation2] sm:$0x1] %v10_v0 }
   0x3 LB: > { %s780_s21 = sadd.s32 4294967295, %s954_s20   ;;  %p784_p0 = scmp.ge.s32.totalorder %s954_s20, 1  ;;  %s954_s20 = sphi %s991_s20, %s17_s20  }
   0x4   : > { %p199_p1 = scmp.lt.s32.totalorder %s954_s20, 3 }
   0x6   : > { %p200_p2 = pnand %p784_p0, %p199_p1 }
   0x7   : > { %v905_v1 = vld [vmem:[%s1139_s2 + $0x40] sm:$0xff] (!%p200_p2)   ;;  %v909_v5 = vld [vmem:[%s1139_s2 + $0x48] sm:$0xff] (!%p200_p2)   ;;  %v913_v9 = vld [vmem:[%s1139_s2 + $0x50] sm:$0xff] (!%p200_p2)   ;;  %p230_p3 = scmp.lt.s32.totalorder (!%p200_p2), %s780_s21, 1  ;;  %v956_v35 = vmov (!%p200_p2), 0.0   ;;  %vm957_vm0 = vmmov (!%p200_p2), 0  }
   0x8   : > { %203 = sbr.rel (%p200_p2) target bundleno = 440 (0x1b8), region = 40  ;;  %v906_v2 = vld [vmem:[%s1139_s2 + $0xc0] sm:$0xff] (!%p200_p2)   ;;  %833 = vmatprep.subr.bf16.mxu0 (!%p200_p2), %v905_v1  ;;  %v910_v6 = vld [vmem:[%s1139_s2 + $0xc8] sm:$0xff] (!%p200_p2)   ;;  %v914_v10 = vld [vmem:[%s1139_s2 + $0xd0] sm:$0xff] (!%p200_p2)   ;;  %vm563_vm1 = vcmask (!%p200_p2), 523264   ;;  %vm719_vm4 = vcmask (!%p200_p2), 0  }
   0x9   : > { %v907_v3 = vld [vmem:[%s1139_s2] sm:$0xff] (!%p200_p2)   ;;  %855 = vmatprep.subr.bf16.mxu1 (!%p200_p2), %v906_v2  ;;  %v911_v7 = vld [vmem:[%s1139_s2 + $0x8] sm:$0xff] (!%p200_p2)   ;;  %v915_v11 = vld [vmem:[%s1139_s2 + $0x10] sm:$0xff] (!%p200_p2)  }
   0xa   : > { %v908_v4 = vld [vmem:[%s1139_s2 + $0x80] sm:$0xff] (!%p200_p2)   ;;  %834 = vmatpush3.bf16.msra.mxu0 (!%p200_p2), %v907_v3  ;;  %v912_v8 = vld [vmem:[%s1139_s2 + $0x88] sm:$0xff] (!%p200_p2)   ;;  %v916_v12 = vld [vmem:[%s1139_s2 + $0x90] sm:$0xff] (!%p200_p2)  }
   0xb   : > { %856 = vmatpush3.bf16.msra.mxu1 (!%p200_p2), %v908_v4  ;;  %835 = vmatprep.subr.bf16.mxu0 (!%p200_p2), %v909_v5  ;;  %v917_v13 = vld [vmem:[%s1139_s2 + $0x58] sm:$0xff] (!%p200_p2)   ;;  %v921_v17 = vld [vmem:[%s1139_s2 + $0x60] sm:$0xff] (!%p200_p2)   ;;  %v925_v21 = vld [vmem:[%s1139_s2 + $0x68] sm:$0xff] (!%p200_p2)  }
   0xc   : > { %857 = vmatprep.subr.bf16.mxu1 (!%p200_p2), %v910_v6  ;;  %v918_v14 = vld [vmem:[%s1139_s2 + $0xd8] sm:$0xff] (!%p200_p2)   ;;  %v922_v18 = vld [vmem:[%s1139_s2 + $0xe0] sm:$0xff] (!%p200_p2)   ;;  %v926_v22 = vld [vmem:[%s1139_s2 + $0xe8] sm:$0xff] (!%p200_p2)  }
   0xd   : > { %v919_v15 = vld [vmem:[%s1139_s2 + $0x18] sm:$0xff] (!%p200_p2)   ;;  %v923_v19 = vld [vmem:[%s1139_s2 + $0x20] sm:$0xff] (!%p200_p2)   ;;  %v927_v23 = vld [vmem:[%s1139_s2 + $0x28] sm:$0xff] (!%p200_p2)  }
   0xe   : > { %836 = vmatpush3.bf16.msra.mxu0 (!%p200_p2), %v911_v7  ;;  %v920_v16 = vld [vmem:[%s1139_s2 + $0x98] sm:$0xff] (!%p200_p2)   ;;  %v924_v20 = vld [vmem:[%s1139_s2 + $0xa0] sm:$0xff] (!%p200_p2)   ;;  %v928_v24 = vld [vmem:[%s1139_s2 + $0xa8] sm:$0xff] (!%p200_p2)  }
   0xf   : > { %858 = vmatpush3.bf16.msra.mxu1 %v912_v8  ;;  %837 = vmatprep.subr.bf16.mxu0 %v913_v9  ;;  %s1144_s21 = smov (!%p230_p3, %s780_s21), 1  ;;  %v929_v25 = vld [vmem:[%s1139_s2 + $0x70] sm:$0xff]   ;;  %v933_v29 = vld [vmem:[%s1139_s2 + $0x78] sm:$0xff]   ;;  %v943_v38 = vld [vmem:[%s1139_s2 + $0x100] sm:$0xff]  }
  0x10   : > { %859 = vmatprep.subr.bf16.mxu1 %v914_v10  ;;  %v930_v26 = vld [vmem:[%s1139_s2 + $0xf0] sm:$0xff]   ;;  %s894_s25 = smul.u32 40, %s1144_s21  ;;  %v934_v30 = vld [vmem:[%s1139_s2 + $0xf8] sm:$0xff]   ;;  %v944_v39 = vld [vmem:[%s1139_s2 + $0x108] sm:$0xff]   ;;  %s242_s10 = scalar_lea.vmem %s1142_s5, %s1144_s21 }
  0x11   : > { %v931_v27 = vld [vmem:[%s1139_s2 + $0x30] sm:$0xff]   ;;  %v935_v31 = vld [vmem:[%s1139_s2 + $0x38] sm:$0xff]   ;;  %v696_v57 = vld [vmem:[%s1140_s3] sm:$0xff] }
  0x12   : > { %838 = vmatpush3.bf16.msra.mxu0 %v915_v11  ;;  %v932_v28 = vld [vmem:[%s1139_s2 + $0xb0] sm:$0xff]   ;;  %s234_s11 = scalar_lea.vmem %s1137_s0, %s894_s25  ;;  %v936_v32 = vld [vmem:[%s1139_s2 + $0xb8] sm:$0xff]   ;;  %s832_s25 = sshll.u32 %s1144_s21, 4  ;;  %v697_v62 = vld [vmem:[%s1140_s3 + $0x8] sm:$0xff] }
  0x13   : > { %860 = vmatpush3.bf16.msra.mxu1 %v916_v12  ;;  %839 = vmatprep.subr.bf16.mxu0 %v917_v13  ;;  %v937_v33 = vld [vmem:[%s234_s11] ss:$20 sps:$4 sm:$0xff]   ;;  %v939_v34 = vld [vmem:[%s234_s11 + $0x4] ss:$20 sps:$4 sm:$0xff]   ;;  %v940_v36 = vld [vmem:[%s234_s11 + $0x8] ss:$20 sps:$4 sm:$0xff]   ;;  %s239_s28 = scalar_lea.vmem %s1138_s1, %s832_s25 }
  0x14   : > { %861 = vmatprep.subr.bf16.mxu1 %v918_v14  ;;  %v942_v37 = vld [vmem:[%s234_s11 + $0xc] ss:$20 sps:$4 sm:$0xff]   ;;  %599 = vmatprep.mubr.bf16.mxu0 %v939_v34  ;;  %v945_v40 = vld [vmem:[%s1139_s2 + $0x110] sm:$0xff]   ;;  %v946_v41 = vld [vmem:[%s1139_s2 + $0x118] sm:$0xff]  }
  0x15   : > { %640 = vmatprep.mubr.bf16.mxu1 %v942_v37  ;;  %v947_v42 = vld [vmem:[%s234_s11 + $0x10] ss:$20 sps:$4 sm:$0xff]   ;;  %v699_v63 = vld [vmem:[%s239_s28 + $0x8] sm:$0xff] }
  0x16   : > { %840 = vmatpush3.bf16.msra.mxu0 %v919_v15  ;;  %v698_v58 = vld [vmem:[%s239_s28] sm:$0xff]  ;;  %v701_v5 = vadd.f32 %v699_v63, %v697_v62 }
  0x17   : > { %862 = vmatpush3.bf16.msra.mxu1 %v920_v16  ;;  %841 = vmatprep.subr.bf16.mxu0 %v921_v17  ;;  %v700_v1 = vadd.f32 %v698_v58, %v696_v57 }
  0x18   : > { %863 = vmatprep.subr.bf16.mxu1 %v922_v18 }
  0x1a   : > { %842 = vmatpush3.bf16.msra.mxu0 %v923_v19 }
  0x1b   : > { %864 = vmatpush3.bf16.msra.mxu1 %v924_v20  ;;  %843 = vmatprep.subr.bf16.mxu0 %v925_v21  ;;  %v717_v21 = vld [vmem:[#allocation2] sm:$0x1] }
  0x1c   : > { %865 = vmatprep.subr.bf16.mxu1 %v926_v22 }
  0x1e   : > { %844 = vmatpush3.bf16.msra.mxu0 %v927_v23 }
  0x1f   : > { %866 = vmatpush3.bf16.msra.mxu1 %v928_v24  ;;  %845 = vmatprep.subr.bf16.mxu0 %v929_v25 }
  0x20   : > { %867 = vmatprep.subr.bf16.mxu1 %v930_v26 }
  0x22   : > { %846 = vmatpush3.bf16.msra.mxu0 %v931_v27 }
  0x23   : > { %868 = vmatpush3.bf16.msra.mxu1 %v932_v28  ;;  %847 = vmatprep.subr.bf16.mxu0 %v933_v29 }
  0x24   : > { %869 = vmatprep.subr.bf16.mxu1 %v934_v30 }
  0x26   : > { %848 = vmatpush3.bf16.msra.mxu0 %v935_v31 }
  0x27   : > { %870 = vmatpush3.bf16.msra.mxu1 %v936_v32  ;;  %882 = vmatprep.subr.bf16.mxu0 %v956_v35 }
  0x29   : > { %600 = vmatmul.mubr.bf16.vlgmr.msra.gmra.mrb[0].mxu0 %v937_v33 }
  0x2a   : > { %641 = vmatmul.mubr.bf16.vlgmr.msra.gmra.mrb[0].mxu1 %v940_v36  ;;  %883 = vmatpush3.bf16.msra.mxu0 %v943_v38 }
  0x2b   : > { %884 = vmatprep.subr.bf16.mxu0 %v956_v35  ;;  %890 = vmatprep.mubr.msk.bf16.mxu0 %vm957_vm0, %v956_v35 }
  0x2e   : > { %885 = vmatpush3.bf16.msra.mxu0 %v944_v39 }
  0x2f   : > { %886 = vmatprep.subr.bf16.mxu0 %v956_v35 }
  0x32   : > { %887 = vmatpush3.bf16.msra.mxu0 %v945_v40 }
  0x33   : > { %888 = vmatprep.subr.bf16.mxu0 %v956_v35 }
  0x36   : > { %889 = vmatpush3.bf16.msra.mxu0 %v946_v41 }
  0x39   : > { %891 = vmatmul.mubr.msk.bf16.vlgmr.msra.gmra.mrb[4].mxu0 %vm563_vm1, %v947_v42 }
  0xfc   : > { %v849_v43 = vpop.f32.mrb[0].mxu0 }
  0xfd   : > { %v871_v44 = vpop.f32.mrb[0].mxu1  ;;  %v850_v45 = vpop.f32.mrb[1].mxu0 }
  0xfe   : > { %v851_v46 = vadd.f32 %v850_v45, %v849_v43  ;;  %v872_v47 = vpop.f32.mrb[1].mxu1  ;;  %v852_v48 = vpop.f32.mrb[2].mxu0 }
  0xff   : > { %v873_v49 = vadd.f32 %v872_v47, %v871_v44  ;;  %v874_v50 = vpop.f32.mrb[2].mxu1  ;;  %v853_v51 = vpop.f32.mrb[3].mxu0 }
 0x100   : > { %v854_v52 = vadd.f32 %v853_v51, %v852_v48  ;;  %v875_v53 = vpop.f32.mrb[3].mxu1 }
 0x101   : > { %v876_v54 = vadd.f32 %v875_v53, %v874_v50  ;;  %v643_v55 = vadd.f32 %v873_v49, %v851_v46 }
 0x103   : > { %v646_v56 = vadd.f32 %v876_v54, %v854_v52 }
 0x10c   : > { %v683_v59 = vpop.f32.mrb[4].mxu0 }
 0x10d   : > { %v684_v60 = vadd.f32 %v683_v59, %v643_v55  ;;  %v892_v61 = vpop.f32.mrb[5].mxu0 }
 0x10e   : > { %v686_v0 = vpop.f32.mrb[6].mxu0 }
 0x10f   : > { %v692_v2 = vmul.f32 0.2, %v684_v60  ;;  %v687_v3 = vadd.f32 %v686_v0, %v646_v56  ;;  %v893_v4 = vpop.f32.mrb[7].mxu0  ;;  %vm690_vm2 = vcmp.ge.f32.partialorder %v684_v60, 0.0 }
 0x111   : > { %vm691_vm3 = vcmp.ge.f32.partialorder %v687_v3, 0.0  ;;  %v693_v6 = vmul.f32 0.2, %v687_v3  ;;  %v694_v7 = vsel %vm690_vm2, %v684_v60, %v692_v2 }
 0x112   : > { %v702_v8 = vmul.f32 %v700_v1, %v694_v7 }
 0x113   : > { %v695_v9 = vsel %vm691_vm3, %v687_v3, %v693_v6 }
 0x114   : > { %v704_v10 = vsel %vm563_vm1, %v702_v8, 0.0  ;;  %v703_v11 = vmul.f32 %v701_v5, %v695_v9 }
 0x115   : > { %705 = vadd.xlane.f32.xlu0 %v704_v10 }
 0x116   : > { %v707_v12 = vsel %vm563_vm1, %v703_v11, 0.0 }
 0x119   : > { %708 = vadd.xlane.f32.xlu0 %v707_v12 }
 0x1a2   : > { %v706_v13 = vpop.xlane.xlu0 %705 }
 0x1a6   : > { %v709_v14 = vpop.xlane.xlu0 %708 }
 0x1a7   : > { %v710_v15 = vadd.f32 %v709_v14, %v706_v13 }
 0x1a9   : > { %v711_v16 = vrot.slane %v710_v15, 4 }
 0x1ab   : > { %v712_v17 = vadd.f32 %v711_v16, %v710_v15 }
 0x1ad   : > { %v713_v18 = vrot.slane %v712_v17, 2 }
 0x1af   : > { %v714_v19 = vadd.f32 %v713_v18, %v712_v17 }
 0x1b1   : > { %v715_v20 = vrot.slane %v714_v19, 1 }
 0x1b3   : > { %v716_v22 = vadd.f32 %v715_v20, %v714_v19 }
 0x1b5   : > { %v718_v23 = vadd.f32 %v717_v21, %v716_v22 }
 0x1b7   : > { %720 = vst.msk [vmem:[%s242_s10] sm:$0x1] %vm719_vm4, %v718_v23 }
 0x1b8 PF: > { %s17_s20 = sadd.s32 1, %s954_s20  }
 0x1b9   : > { %p14_p4 = scmp.ge.s32.totalorder %s17_s20, 4  }
 0x1bb   :  { %16 = sbr.rel (!%p14_p4) target bundleno = 3 (0x3), region = 73 }

</bundles_post_ra>
